<compile_context>
chip_gen: v6e
topology: v6e:2x2x1
jax: 0.10.0
libtpu: 0.0.40
codegen_flags: <defaults>
</compile_context>

<pallas_src>
import functools

import jax
import jax.numpy as jnp
from jax.experimental import pallas as pl
from jax.experimental.pallas import tpu as pltpu


# ----------------------------------------------------------------------------
# Pallas kernels
# ----------------------------------------------------------------------------
def _matmul_bn_relu_kernel(x_ref, w_ref, scale_ref, shift_ref, o_ref):
    # (tm, K) @ (K, Npad) on the MXU; BN affine + ReLU on the VPU, f32 epilogue.
    acc = jnp.dot(x_ref[...], w_ref[...], preferred_element_type=jnp.float32)
    y = jnp.maximum(acc * scale_ref[...] + shift_ref[...], 0.0)
    o_ref[...] = y.astype(o_ref.dtype)


def _choose_tm(M):
    """Per-layer row tile: big tiles but >=2 grid steps for large M (megacore),
    a single full block for small M (no padded-row waste)."""
    if M <= 64:
        return M
    half = -(-M // 2)                 # ceil(M / 2)
    half = ((half + 7) // 8) * 8      # sublane multiple
    return min(1024, half)


def matmul_bn_relu(patches, w_mat, scale, shift):
    """relu((patches @ w_mat) * scale + shift); w_mat/scale/shift pre-padded
    so the output last dim is a multiple of 128 (lane-dense stores)."""
    M, K = patches.shape
    K2, Np = w_mat.shape
    assert K == K2 and Np % 128 == 0
    tm = _choose_tm(M)
    grid_m = pl.cdiv(M, tm)
    return pl.pallas_call(
        _matmul_bn_relu_kernel,
        out_shape=jax.ShapeDtypeStruct((M, Np), jnp.bfloat16),
        grid=(grid_m,),
        in_specs=[
            pl.BlockSpec((tm, K), lambda i: (i, 0)),
            pl.BlockSpec((K, Np), lambda i: (0, 0)),
            pl.BlockSpec((1, Np), lambda i: (0, 0)),
            pl.BlockSpec((1, Np), lambda i: (0, 0)),
        ],
        out_specs=pl.BlockSpec((tm, Np), lambda i: (i, 0)),
        compiler_params=pltpu.CompilerParams(
            dimension_semantics=("parallel",),
            vmem_limit_bytes=32 * 1024 * 1024,
        ),
    )(patches, w_mat, scale, shift)


def _fc_tail_kernel(x_ref,
                    w9_ref, s9_ref, b9_ref,
                    w10_ref, s10_ref, b10_ref,
                    w11_ref, s11_ref, b11_ref,
                    o_ref, *, n_classes):
    # fc9 + BN + ReLU
    h = jnp.dot(x_ref[...], w9_ref[...], preferred_element_type=jnp.float32)
    h = jnp.maximum(h * s9_ref[...] + b9_ref[...], 0.0)
    # fc10 + BN + ReLU
    h = jnp.dot(h.astype(w10_ref.dtype), w10_ref[...],
                preferred_element_type=jnp.float32)
    h = jnp.maximum(h * s10_ref[...] + b10_ref[...], 0.0)
    # fc11 + BN (no ReLU)
    h = jnp.dot(h.astype(w11_ref.dtype), w11_ref[...],
                preferred_element_type=jnp.float32)
    logits = h * s11_ref[...] + b11_ref[...]
    # mask padded class columns, then stable log_softmax in f32
    col = jax.lax.broadcasted_iota(jnp.int32, logits.shape, 1)
    logits = jnp.where(col < n_classes, logits, jnp.float32(-1e30))
    m = jnp.max(logits, axis=-1, keepdims=True)
    z = logits - m
    lse = jnp.log(jnp.sum(jnp.exp(z), axis=-1, keepdims=True))
    o_ref[...] = (z - lse).astype(o_ref.dtype)


def fc_tail_logsoftmax(x, fc_params, n_classes):
    # B is small (batch); single full-array block for the whole fused FC tail.
    (w9, s9, b9), (w10, s10, b10), (w11, s11, b11) = fc_params
    B = x.shape[0]
    npad = w11.shape[1]
    out = pl.pallas_call(
        functools.partial(_fc_tail_kernel, n_classes=n_classes),
        out_shape=jax.ShapeDtypeStruct((B, npad), jnp.float32),
        compiler_params=pltpu.CompilerParams(
            vmem_limit_bytes=32 * 1024 * 1024),
    )(x.astype(jnp.bfloat16), w9, s9, b9, w10, s10, b10, w11, s11, b11)
    return out[:, :n_classes]


# ----------------------------------------------------------------------------
# Glue: im2col + layer wrappers
# ----------------------------------------------------------------------------
def im2col(x_nhwc, ksize, stride, pad):
    B, H, W, C = x_nhwc.shape
    xp = jnp.pad(x_nhwc, ((0, 0), (pad, pad), (pad, pad), (0, 0)))
    Ho = (H + 2 * pad - ksize) // stride + 1
    Wo = (W + 2 * pad - ksize) // stride + 1
    cols = []
    for dy in range(ksize):
        for dx in range(ksize):
            cols.append(
                xp[:, dy:dy + stride * Ho:stride, dx:dx + stride * Wo:stride, :])
    # patch feature ordering: (kh, kw, Cin)
    patches = jnp.concatenate(cols, axis=-1)
    return patches.reshape(B * Ho * Wo, ksize * ksize * C), (B, Ho, Wo)


def conv_bn_relu(x_nhwc, w_mat, scale, shift, cout, stride):
    patches, (B, Ho, Wo) = im2col(x_nhwc, 3, stride, 1)
    out = matmul_bn_relu(patches, w_mat, scale, shift)
    return out[:, :cout].reshape(B, Ho, Wo, cout)


# ----------------------------------------------------------------------------
# Parameter construction / preparation
# ----------------------------------------------------------------------------
def _round_up(n, m):
    return ((n + m - 1) // m) * m


def _bn_fold(bias, gamma, beta, mean, var, eps=1e-5):
    scale = gamma / jnp.sqrt(var + eps)
    shift = (bias - mean) * scale + beta
    return scale, shift


def _init_layer(key, w_shape, cout):
    k = jax.random.split(key, 6)
    w = 0.1 * jax.random.normal(k[0], w_shape, jnp.float32)
    b = 0.1 * jax.random.normal(k[1], (cout,), jnp.float32)
    gamma = 1.0 + 0.1 * jax.random.normal(k[2], (cout,), jnp.float32)
    beta = 0.1 * jax.random.normal(k[3], (cout,), jnp.float32)
    mean = 0.1 * jax.random.normal(k[4], (cout,), jnp.float32)
    var = 1.0 + 0.1 * jnp.abs(jax.random.normal(k[5], (cout,), jnp.float32))
    return (w, b, gamma, beta, mean, var)


def make_params(key, conv_channels, fc_sizes):
    params = {}
    keys = jax.random.split(key, 11)
    cin = 3
    for i, cout in enumerate(conv_channels):
        params[f"conv{i + 1}"] = _init_layer(keys[i], (cout, cin, 3, 3), cout)
        cin = cout
    fin = fc_sizes[0]
    for j, fout in enumerate(fc_sizes[1:]):
        params[f"fc{9 + j}"] = _init_layer(keys[8 + j], (fout, fin), fout)
        fin = fout
    return params


def prepare_params(params):
    """Fold BN, reshape weights to matmul layout, pad output dims to 128
    (lane-dense), cast matmul operands to bf16."""
    prepped = {}
    # conv layers: w (Cout, Cin, kh, kw) -> (kh*kw*Cin, Npad)
    for i in range(8):
        w, b, g, beta, mean, var = params[f"conv{i + 1}"]
        cout, cin, kh, kw = w.shape
        w_mat = jnp.transpose(w, (2, 3, 1, 0)).reshape(kh * kw * cin, cout)
        scale, shift = _bn_fold(b, g, beta, mean, var)
        npad = _round_up(cout, 128)
        w_mat = jnp.pad(w_mat, ((0, 0), (0, npad - cout))).astype(jnp.bfloat16)
        scale = jnp.pad(scale, (0, npad - cout)).reshape(1, npad).astype(jnp.float32)
        shift = jnp.pad(shift, (0, npad - cout)).reshape(1, npad).astype(jnp.float32)
        prepped[f"conv{i + 1}"] = (w_mat, scale, shift)
    # fused FC tail: fc9, fc10, fc11 — pad K to previous padded width, N to 128
    fin_pad = params["fc9"][0].shape[1]      # flatten width (exact, no pad)
    fcs = []
    for name in ("fc9", "fc10", "fc11"):
        w, b, g, beta, mean, var = params[name]
        fout, fin = w.shape
        scale, shift = _bn_fold(b, g, beta, mean, var)
        fout_pad = _round_up(fout, 128)
        w_mat = jnp.pad(w.T, ((0, fin_pad - fin), (0, fout_pad - fout))).astype(jnp.bfloat16)
        scale = jnp.pad(scale, (0, fout_pad - fout)).reshape(1, fout_pad).astype(jnp.float32)
        shift = jnp.pad(shift, (0, fout_pad - fout)).reshape(1, fout_pad).astype(jnp.float32)
        fcs.append((w_mat, scale, shift))
        fin_pad = fout_pad
    prepped["fc_tail"] = tuple(fcs)
    return prepped


# ----------------------------------------------------------------------------
# Forward pass (sVGG11.forward, isCalVnorm=False, ANN activation path)
# ----------------------------------------------------------------------------
STRIDE_LIST = [1, 2, 1, 2, 1, 2, 1, 2]


def svgg11_forward(x_nchw, prepped, *, conv_channels, n_classes):
    # x.view(-1, 3*32*32) -> ZeroExpandInput -> x.view(-1, 3, 32, 32)
    # (identity on the ANN path `x`; spiking branch omitted, see TODO above)
    x = jnp.transpose(x_nchw, (0, 2, 3, 1)).astype(jnp.bfloat16)   # NCHW -> NHWC
    for i, cout in enumerate(conv_channels):
        w_mat, scale, shift = prepped[f"conv{i + 1}"]
        x = conv_bn_relu(x, w_mat, scale, shift, cout, STRIDE_LIST[i])
    B = x.shape[0]
    x = jnp.transpose(x, (0, 3, 1, 2)).reshape(B, -1)   # PyTorch view(B, -1) order
    # fc9 + fc10 + fc11 + log_softmax fused in one kernel
    return fc_tail_logsoftmax(x, prepped["fc_tail"], n_classes)


# ----------------------------------------------------------------------------
if __name__ == "__main__":
    key = jax.random.PRNGKey(0)
    k_x, k_p = jax.random.split(key)

    # Spatial size is hard-coded to 3x32x32 by the module; channel widths kept
    # small for this synthetic test.  After strides [1,2,1,2,1,2,1,2] the
    # spatial map is 2x2, so the flatten dim is 32*2*2 = 128.
    conv_channels = [8, 16, 16, 16, 32, 32, 32, 32]
    fc_sizes = [32 * 2 * 2, 64, 64, 10]

    x = jax.random.normal(k_x, (2, 3, 32, 32), jnp.float32)
    params = make_params(k_p, conv_channels, fc_sizes)
    prepped = prepare_params(params)

    fwd = jax.jit(functools.partial(
        svgg11_forward,
        conv_channels=tuple(conv_channels),
        n_classes=fc_sizes[-1]))
    out = jax.block_until_ready(fwd(x, prepped))

    assert out.shape == (2, 10), out.shape
    # log_softmax rows should sum (in prob space) to ~1
    assert jnp.allclose(jnp.sum(jnp.exp(out), axis=1), 1.0, atol=1e-4)
    print("KERNEL_OK")
</pallas_src>

<mosaic_0001>
module attributes {stable_mosaic.version = 11 : i64} {
  func.func @_matmul_bn_relu_kernel(%arg0: i32, %arg1: memref<1024x27xbf16, #tpu.memory_space<vmem>>, %arg2: memref<27x128xbf16, #tpu.memory_space<vmem>>, %arg3: memref<1x128xf32, #tpu.memory_space<vmem>>, %arg4: memref<1x128xf32, #tpu.memory_space<vmem>>, %arg5: memref<1024x128xbf16, #tpu.memory_space<vmem>>) attributes {dimension_semantics = [#tpu.dimension_semantics<parallel>], iteration_bounds = array<i64: 2>, scalar_prefetch = 0 : i64, scratch_operands = 0 : i64, tpu.core_type = #tpu.core_type<tc>, window_params = [{transform_indices = @transform_0, window_bounds = array<i64: 1024, 27>}, {pipeline_mode = #tpu.pipeline_mode<synchronous>, transform_indices = @transform_1, window_bounds = array<i64: 27, 128>}, {pipeline_mode = #tpu.pipeline_mode<synchronous>, transform_indices = @transform_2, window_bounds = array<i64: 1, 128>}, {pipeline_mode = #tpu.pipeline_mode<synchronous>, transform_indices = @transform_3, window_bounds = array<i64: 1, 128>}, {transform_indices = @transform_4, window_bounds = array<i64: 1024, 128>}]} {
    %c0 = arith.constant 0 : index
    %c0_0 = arith.constant 0 : index
    %0 = vector.load %arg1[%c0, %c0_0] : memref<1024x27xbf16, #tpu.memory_space<vmem>>, vector<1024x27xbf16>
    %c0_1 = arith.constant 0 : index
    %c0_2 = arith.constant 0 : index
    %1 = vector.load %arg2[%c0_1, %c0_2] : memref<27x128xbf16, #tpu.memory_space<vmem>>, vector<27x128xbf16>
    %cst = arith.constant dense<0.000000e+00> : vector<1024x128xf32>
    %2 = tpu.matmul %0, %1, %cst {dimension_numbers = #tpu.dot_dimension_numbers<[1], [0], [0], [1], [0, 0, 1, 1], [], []>} : vector<1024x27xbf16>, vector<27x128xbf16>, vector<1024x128xf32> -> vector<1024x128xf32>
    %c0_3 = arith.constant 0 : index
    %c0_4 = arith.constant 0 : index
    %3 = vector.load %arg3[%c0_3, %c0_4] : memref<1x128xf32, #tpu.memory_space<vmem>>, vector<1x128xf32>
    %4 = vector.broadcast %3 : vector<1x128xf32> to vector<1024x128xf32>
    %5 = arith.mulf %2, %4 : vector<1024x128xf32>
    %c0_5 = arith.constant 0 : index
    %c0_6 = arith.constant 0 : index
    %6 = vector.load %arg4[%c0_5, %c0_6] : memref<1x128xf32, #tpu.memory_space<vmem>>, vector<1x128xf32>
    %7 = vector.broadcast %6 : vector<1x128xf32> to vector<1024x128xf32>
    %8 = arith.addf %5, %7 : vector<1024x128xf32>
    %cst_7 = arith.constant 0.000000e+00 : f32
    %9 = vector.broadcast %cst_7 : f32 to vector<1024x128xf32>
    %10 = arith.maximumf %8, %9 : vector<1024x128xf32>
    %11 = arith.truncf %10 : vector<1024x128xf32> to vector<1024x128xbf16>
    %c0_8 = arith.constant 0 : index
    %c0_9 = arith.constant 0 : index
    %12 = vector.load %arg5[%c0_8, %c0_9] : memref<1024x128xbf16, #tpu.memory_space<vmem>>, vector<1024x128xbf16>
    tpu.vector_store %arg5[%c0_8, %c0_9], %11 {strides = array<i32>} : memref<1024x128xbf16, #tpu.memory_space<vmem>>, vector<1024x128xbf16>,
    return
  }
  func.func @transform_0(%arg0: i32) -> (i32, i32) {
    %c0_i32 = arith.constant 0 : i32
    %c0_i32_0 = arith.constant 0 : i32
    return %arg0, %c0_i32 : i32, i32
  }
  func.func @transform_1(%arg0: i32) -> (i32, i32) {
    %c0_i32 = arith.constant 0 : i32
    %c0_i32_0 = arith.constant 0 : i32
    %c0_i32_1 = arith.constant 0 : i32
    return %c0_i32, %c0_i32_0 : i32, i32
  }
  func.func @transform_2(%arg0: i32) -> (i32, i32) {
    %c0_i32 = arith.constant 0 : i32
    %c0_i32_0 = arith.constant 0 : i32
    %c0_i32_1 = arith.constant 0 : i32
    return %c0_i32, %c0_i32_0 : i32, i32
  }
  func.func @transform_3(%arg0: i32) -> (i32, i32) {
    %c0_i32 = arith.constant 0 : i32
    %c0_i32_0 = arith.constant 0 : i32
    %c0_i32_1 = arith.constant 0 : i32
    return %c0_i32, %c0_i32_0 : i32, i32
  }
  func.func @transform_4(%arg0: i32) -> (i32, i32) {
    %c0_i32 = arith.constant 0 : i32
    %c0_i32_0 = arith.constant 0 : i32
    return %arg0, %c0_i32 : i32, i32
  }
}

module attributes {stable_mosaic.version = 11 : i64} {
  func.func @_matmul_bn_relu_kernel(%arg0: i32, %arg1: memref<256x72xbf16, #tpu.memory_space<vmem>>, %arg2: memref<72x128xbf16, #tpu.memory_space<vmem>>, %arg3: memref<1x128xf32, #tpu.memory_space<vmem>>, %arg4: memref<1x128xf32, #tpu.memory_space<vmem>>, %arg5: memref<256x128xbf16, #tpu.memory_space<vmem>>) attributes {dimension_semantics = [#tpu.dimension_semantics<parallel>], iteration_bounds = array<i64: 2>, scalar_prefetch = 0 : i64, scratch_operands = 0 : i64, tpu.core_type = #tpu.core_type<tc>, window_params = [{transform_indices = @transform_0, window_bounds = array<i64: 256, 72>}, {pipeline_mode = #tpu.pipeline_mode<synchronous>, transform_indices = @transform_1, window_bounds = array<i64: 72, 128>}, {pipeline_mode = #tpu.pipeline_mode<synchronous>, transform_indices = @transform_2, window_bounds = array<i64: 1, 128>}, {pipeline_mode = #tpu.pipeline_mode<synchronous>, transform_indices = @transform_3, window_bounds = array<i64: 1, 128>}, {transform_indices = @transform_4, window_bounds = array<i64: 256, 128>}]} {
    %c0 = arith.constant 0 : index
    %c0_0 = arith.constant 0 : index
    %0 = vector.load %arg1[%c0, %c0_0] : memref<256x72xbf16, #tpu.memory_space<vmem>>, vector<256x72xbf16>
    %c0_1 = arith.constant 0 : index
    %c0_2 = arith.constant 0 : index
    %1 = vector.load %arg2[%c0_1, %c0_2] : memref<72x128xbf16, #tpu.memory_space<vmem>>, vector<72x128xbf16>
    %cst = arith.constant dense<0.000000e+00> : vector<256x128xf32>
    %2 = tpu.matmul %0, %1, %cst {dimension_numbers = #tpu.dot_dimension_numbers<[1], [0], [0], [1], [0, 0, 1, 1], [], []>} : vector<256x72xbf16>, vector<72x128xbf16>, vector<256x128xf32> -> vector<256x128xf32>
    %c0_3 = arith.constant 0 : index
    %c0_4 = arith.constant 0 : index
    %3 = vector.load %arg3[%c0_3, %c0_4] : memref<1x128xf32, #tpu.memory_space<vmem>>, vector<1x128xf32>
    %4 = vector.broadcast %3 : vector<1x128xf32> to vector<256x128xf32>
    %5 = arith.mulf %2, %4 : vector<256x128xf32>
    %c0_5 = arith.constant 0 : index
    %c0_6 = arith.constant 0 : index
    %6 = vector.load %arg4[%c0_5, %c0_6] : memref<1x128xf32, #tpu.memory_space<vmem>>, vector<1x128xf32>
    %7 = vector.broadcast %6 : vector<1x128xf32> to vector<256x128xf32>
    %8 = arith.addf %5, %7 : vector<256x128xf32>
    %cst_7 = arith.constant 0.000000e+00 : f32
    %9 = vector.broadcast %cst_7 : f32 to vector<256x128xf32>
    %10 = arith.maximumf %8, %9 : vector<256x128xf32>
    %11 = arith.truncf %10 : vector<256x128xf32> to vector<256x128xbf16>
    %c0_8 = arith.constant 0 : index
    %c0_9 = arith.constant 0 : index
    %12 = vector.load %arg5[%c0_8, %c0_9] : memref<256x128xbf16, #tpu.memory_space<vmem>>, vector<256x128xbf16>
    tpu.vector_store %arg5[%c0_8, %c0_9], %11 {strides = array<i32>} : memref<256x128xbf16, #tpu.memory_space<vmem>>, vector<256x128xbf16>,
    return
  }
  func.func @transform_0(%arg0: i32) -> (i32, i32) {
    %c0_i32 = arith.constant 0 : i32
    %c0_i32_0 = arith.constant 0 : i32
    return %arg0, %c0_i32 : i32, i32
  }
  func.func @transform_1(%arg0: i32) -> (i32, i32) {
    %c0_i32 = arith.constant 0 : i32
    %c0_i32_0 = arith.constant 0 : i32
    %c0_i32_1 = arith.constant 0 : i32
    return %c0_i32, %c0_i32_0 : i32, i32
  }
  func.func @transform_2(%arg0: i32) -> (i32, i32) {
    %c0_i32 = arith.constant 0 : i32
    %c0_i32_0 = arith.constant 0 : i32
    %c0_i32_1 = arith.constant 0 : i32
    return %c0_i32, %c0_i32_0 : i32, i32
  }
  func.func @transform_3(%arg0: i32) -> (i32, i32) {
    %c0_i32 = arith.constant 0 : i32
    %c0_i32_0 = arith.constant 0 : i32
    %c0_i32_1 = arith.constant 0 : i32
    return %c0_i32, %c0_i32_0 : i32, i32
  }
  func.func @transform_4(%arg0: i32) -> (i32, i32) {
    %c0_i32 = arith.constant 0 : i32
    %c0_i32_0 = arith.constant 0 : i32
    return %arg0, %c0_i32 : i32, i32
  }
}

module attributes {stable_mosaic.version = 11 : i64} {
  func.func @_matmul_bn_relu_kernel(%arg0: i32, %arg1: memref<256x144xbf16, #tpu.memory_space<vmem>>, %arg2: memref<144x128xbf16, #tpu.memory_space<vmem>>, %arg3: memref<1x128xf32, #tpu.memory_space<vmem>>, %arg4: memref<1x128xf32, #tpu.memory_space<vmem>>, %arg5: memref<256x128xbf16, #tpu.memory_space<vmem>>) attributes {dimension_semantics = [#tpu.dimension_semantics<parallel>], iteration_bounds = array<i64: 2>, scalar_prefetch = 0 : i64, scratch_operands = 0 : i64, tpu.core_type = #tpu.core_type<tc>, window_params = [{transform_indices = @transform_0, window_bounds = array<i64: 256, 144>}, {pipeline_mode = #tpu.pipeline_mode<synchronous>, transform_indices = @transform_1, window_bounds = array<i64: 144, 128>}, {pipeline_mode = #tpu.pipeline_mode<synchronous>, transform_indices = @transform_2, window_bounds = array<i64: 1, 128>}, {pipeline_mode = #tpu.pipeline_mode<synchronous>, transform_indices = @transform_3, window_bounds = array<i64: 1, 128>}, {transform_indices = @transform_4, window_bounds = array<i64: 256, 128>}]} {
    %c0 = arith.constant 0 : index
    %c0_0 = arith.constant 0 : index
    %0 = vector.load %arg1[%c0, %c0_0] : memref<256x144xbf16, #tpu.memory_space<vmem>>, vector<256x144xbf16>
    %c0_1 = arith.constant 0 : index
    %c0_2 = arith.constant 0 : index
    %1 = vector.load %arg2[%c0_1, %c0_2] : memref<144x128xbf16, #tpu.memory_space<vmem>>, vector<144x128xbf16>
    %cst = arith.constant dense<0.000000e+00> : vector<256x128xf32>
    %2 = tpu.matmul %0, %1, %cst {dimension_numbers = #tpu.dot_dimension_numbers<[1], [0], [0], [1], [0, 0, 1, 1], [], []>} : vector<256x144xbf16>, vector<144x128xbf16>, vector<256x128xf32> -> vector<256x128xf32>
    %c0_3 = arith.constant 0 : index
    %c0_4 = arith.constant 0 : index
    %3 = vector.load %arg3[%c0_3, %c0_4] : memref<1x128xf32, #tpu.memory_space<vmem>>, vector<1x128xf32>
    %4 = vector.broadcast %3 : vector<1x128xf32> to vector<256x128xf32>
    %5 = arith.mulf %2, %4 : vector<256x128xf32>
    %c0_5 = arith.constant 0 : index
    %c0_6 = arith.constant 0 : index
    %6 = vector.load %arg4[%c0_5, %c0_6] : memref<1x128xf32, #tpu.memory_space<vmem>>, vector<1x128xf32>
    %7 = vector.broadcast %6 : vector<1x128xf32> to vector<256x128xf32>
    %8 = arith.addf %5, %7 : vector<256x128xf32>
    %cst_7 = arith.constant 0.000000e+00 : f32
    %9 = vector.broadcast %cst_7 : f32 to vector<256x128xf32>
    %10 = arith.maximumf %8, %9 : vector<256x128xf32>
    %11 = arith.truncf %10 : vector<256x128xf32> to vector<256x128xbf16>
    %c0_8 = arith.constant 0 : index
    %c0_9 = arith.constant 0 : index
    %12 = vector.load %arg5[%c0_8, %c0_9] : memref<256x128xbf16, #tpu.memory_space<vmem>>, vector<256x128xbf16>
    tpu.vector_store %arg5[%c0_8, %c0_9], %11 {strides = array<i32>} : memref<256x128xbf16, #tpu.memory_space<vmem>>, vector<256x128xbf16>,
    return
  }
  func.func @transform_0(%arg0: i32) -> (i32, i32) {
    %c0_i32 = arith.constant 0 : i32
    %c0_i32_0 = arith.constant 0 : i32
    return %arg0, %c0_i32 : i32, i32
  }
  func.func @transform_1(%arg0: i32) -> (i32, i32) {
    %c0_i32 = arith.constant 0 : i32
    %c0_i32_0 = arith.constant 0 : i32
    %c0_i32_1 = arith.constant 0 : i32
    return %c0_i32, %c0_i32_0 : i32, i32
  }
  func.func @transform_2(%arg0: i32) -> (i32, i32) {
    %c0_i32 = arith.constant 0 : i32
    %c0_i32_0 = arith.constant 0 : i32
    %c0_i32_1 = arith.constant 0 : i32
    return %c0_i32, %c0_i32_0 : i32, i32
  }
  func.func @transform_3(%arg0: i32) -> (i32, i32) {
    %c0_i32 = arith.constant 0 : i32
    %c0_i32_0 = arith.constant 0 : i32
    %c0_i32_1 = arith.constant 0 : i32
    return %c0_i32, %c0_i32_0 : i32, i32
  }
  func.func @transform_4(%arg0: i32) -> (i32, i32) {
    %c0_i32 = arith.constant 0 : i32
    %c0_i32_0 = arith.constant 0 : i32
    return %arg0, %c0_i32 : i32, i32
  }
}

module attributes {stable_mosaic.version = 11 : i64} {
  func.func @_matmul_bn_relu_kernel(%arg0: i32, %arg1: memref<64x144xbf16, #tpu.memory_space<vmem>>, %arg2: memref<144x128xbf16, #tpu.memory_space<vmem>>, %arg3: memref<1x128xf32, #tpu.memory_space<vmem>>, %arg4: memref<1x128xf32, #tpu.memory_space<vmem>>, %arg5: memref<64x128xbf16, #tpu.memory_space<vmem>>) attributes {dimension_semantics = [#tpu.dimension_semantics<parallel>], iteration_bounds = array<i64: 2>, scalar_prefetch = 0 : i64, scratch_operands = 0 : i64, tpu.core_type = #tpu.core_type<tc>, window_params = [{transform_indices = @transform_0, window_bounds = array<i64: 64, 144>}, {pipeline_mode = #tpu.pipeline_mode<synchronous>, transform_indices = @transform_1, window_bounds = array<i64: 144, 128>}, {pipeline_mode = #tpu.pipeline_mode<synchronous>, transform_indices = @transform_2, window_bounds = array<i64: 1, 128>}, {pipeline_mode = #tpu.pipeline_mode<synchronous>, transform_indices = @transform_3, window_bounds = array<i64: 1, 128>}, {transform_indices = @transform_4, window_bounds = array<i64: 64, 128>}]} {
    %c0 = arith.constant 0 : index
    %c0_0 = arith.constant 0 : index
    %0 = vector.load %arg1[%c0, %c0_0] : memref<64x144xbf16, #tpu.memory_space<vmem>>, vector<64x144xbf16>
    %c0_1 = arith.constant 0 : index
    %c0_2 = arith.constant 0 : index
    %1 = vector.load %arg2[%c0_1, %c0_2] : memref<144x128xbf16, #tpu.memory_space<vmem>>, vector<144x128xbf16>
    %cst = arith.constant dense<0.000000e+00> : vector<64x128xf32>
    %2 = tpu.matmul %0, %1, %cst {dimension_numbers = #tpu.dot_dimension_numbers<[1], [0], [0], [1], [0, 0, 1, 1], [], []>} : vector<64x144xbf16>, vector<144x128xbf16>, vector<64x128xf32> -> vector<64x128xf32>
    %c0_3 = arith.constant 0 : index
    %c0_4 = arith.constant 0 : index
    %3 = vector.load %arg3[%c0_3, %c0_4] : memref<1x128xf32, #tpu.memory_space<vmem>>, vector<1x128xf32>
    %4 = vector.broadcast %3 : vector<1x128xf32> to vector<64x128xf32>
    %5 = arith.mulf %2, %4 : vector<64x128xf32>
    %c0_5 = arith.constant 0 : index
    %c0_6 = arith.constant 0 : index
    %6 = vector.load %arg4[%c0_5, %c0_6] : memref<1x128xf32, #tpu.memory_space<vmem>>, vector<1x128xf32>
    %7 = vector.broadcast %6 : vector<1x128xf32> to vector<64x128xf32>
    %8 = arith.addf %5, %7 : vector<64x128xf32>
    %cst_7 = arith.constant 0.000000e+00 : f32
    %9 = vector.broadcast %cst_7 : f32 to vector<64x128xf32>
    %10 = arith.maximumf %8, %9 : vector<64x128xf32>
    %11 = arith.truncf %10 : vector<64x128xf32> to vector<64x128xbf16>
    %c0_8 = arith.constant 0 : index
    %c0_9 = arith.constant 0 : index
    %12 = vector.load %arg5[%c0_8, %c0_9] : memref<64x128xbf16, #tpu.memory_space<vmem>>, vector<64x128xbf16>
    tpu.vector_store %arg5[%c0_8, %c0_9], %11 {strides = array<i32>} : memref<64x128xbf16, #tpu.memory_space<vmem>>, vector<64x128xbf16>,
    return
  }
  func.func @transform_0(%arg0: i32) -> (i32, i32) {
    %c0_i32 = arith.constant 0 : i32
    %c0_i32_0 = arith.constant 0 : i32
    return %arg0, %c0_i32 : i32, i32
  }
  func.func @transform_1(%arg0: i32) -> (i32, i32) {
    %c0_i32 = arith.constant 0 : i32
    %c0_i32_0 = arith.constant 0 : i32
    %c0_i32_1 = arith.constant 0 : i32
    return %c0_i32, %c0_i32_0 : i32, i32
  }
  func.func @transform_2(%arg0: i32) -> (i32, i32) {
    %c0_i32 = arith.constant 0 : i32
    %c0_i32_0 = arith.constant 0 : i32
    %c0_i32_1 = arith.constant 0 : i32
    return %c0_i32, %c0_i32_0 : i32, i32
  }
  func.func @transform_3(%arg0: i32) -> (i32, i32) {
    %c0_i32 = arith.constant 0 : i32
    %c0_i32_0 = arith.constant 0 : i32
    %c0_i32_1 = arith.constant 0 : i32
    return %c0_i32, %c0_i32_0 : i32, i32
  }
  func.func @transform_4(%arg0: i32) -> (i32, i32) {
    %c0_i32 = arith.constant 0 : i32
    %c0_i32_0 = arith.constant 0 : i32
    return %arg0, %c0_i32 : i32, i32
  }
}

module attributes {stable_mosaic.version = 11 : i64} {
  func.func @_matmul_bn_relu_kernel(%arg0: i32, %arg1: memref<32x288xbf16, #tpu.memory_space<vmem>>, %arg2: memref<288x128xbf16, #tpu.memory_space<vmem>>, %arg3: memref<1x128xf32, #tpu.memory_space<vmem>>, %arg4: memref<1x128xf32, #tpu.memory_space<vmem>>, %arg5: memref<32x128xbf16, #tpu.memory_space<vmem>>) attributes {dimension_semantics = [#tpu.dimension_semantics<parallel>], iteration_bounds = array<i64: 1>, scalar_prefetch = 0 : i64, scratch_operands = 0 : i64, tpu.core_type = #tpu.core_type<tc>, window_params = [{transform_indices = @transform_0, window_bounds = array<i64: 32, 288>}, {pipeline_mode = #tpu.pipeline_mode<synchronous>, transform_indices = @transform_1, window_bounds = array<i64: 288, 128>}, {pipeline_mode = #tpu.pipeline_mode<synchronous>, transform_indices = @transform_2, window_bounds = array<i64: 1, 128>}, {pipeline_mode = #tpu.pipeline_mode<synchronous>, transform_indices = @transform_3, window_bounds = array<i64: 1, 128>}, {transform_indices = @transform_4, window_bounds = array<i64: 32, 128>}]} {
    %c0 = arith.constant 0 : index
    %c0_0 = arith.constant 0 : index
    %0 = vector.load %arg1[%c0, %c0_0] : memref<32x288xbf16, #tpu.memory_space<vmem>>, vector<32x288xbf16>
    %c0_1 = arith.constant 0 : index
    %c0_2 = arith.constant 0 : index
    %1 = vector.load %arg2[%c0_1, %c0_2] : memref<288x128xbf16, #tpu.memory_space<vmem>>, vector<288x128xbf16>
    %cst = arith.constant dense<0.000000e+00> : vector<32x128xf32>
    %2 = tpu.matmul %0, %1, %cst {dimension_numbers = #tpu.dot_dimension_numbers<[1], [0], [0], [1], [0, 0, 1, 1], [], []>} : vector<32x288xbf16>, vector<288x128xbf16>, vector<32x128xf32> -> vector<32x128xf32>
    %c0_3 = arith.constant 0 : index
    %c0_4 = arith.constant 0 : index
    %3 = vector.load %arg3[%c0_3, %c0_4] : memref<1x128xf32, #tpu.memory_space<vmem>>, vector<1x128xf32>
    %4 = vector.broadcast %3 : vector<1x128xf32> to vector<32x128xf32>
    %5 = arith.mulf %2, %4 : vector<32x128xf32>
    %c0_5 = arith.constant 0 : index
    %c0_6 = arith.constant 0 : index
    %6 = vector.load %arg4[%c0_5, %c0_6] : memref<1x128xf32, #tpu.memory_space<vmem>>, vector<1x128xf32>
    %7 = vector.broadcast %6 : vector<1x128xf32> to vector<32x128xf32>
    %8 = arith.addf %5, %7 : vector<32x128xf32>
    %cst_7 = arith.constant 0.000000e+00 : f32
    %9 = vector.broadcast %cst_7 : f32 to vector<32x128xf32>
    %10 = arith.maximumf %8, %9 : vector<32x128xf32>
    %11 = arith.truncf %10 : vector<32x128xf32> to vector<32x128xbf16>
    %c0_8 = arith.constant 0 : index
    %c0_9 = arith.constant 0 : index
    %12 = vector.load %arg5[%c0_8, %c0_9] : memref<32x128xbf16, #tpu.memory_space<vmem>>, vector<32x128xbf16>
    tpu.vector_store %arg5[%c0_8, %c0_9], %11 {strides = array<i32>} : memref<32x128xbf16, #tpu.memory_space<vmem>>, vector<32x128xbf16>,
    return
  }
  func.func @transform_0(%arg0: i32) -> (i32, i32) {
    %c0_i32 = arith.constant 0 : i32
    %c0_i32_0 = arith.constant 0 : i32
    return %arg0, %c0_i32 : i32, i32
  }
  func.func @transform_1(%arg0: i32) -> (i32, i32) {
    %c0_i32 = arith.constant 0 : i32
    %c0_i32_0 = arith.constant 0 : i32
    %c0_i32_1 = arith.constant 0 : i32
    return %c0_i32, %c0_i32_0 : i32, i32
  }
  func.func @transform_2(%arg0: i32) -> (i32, i32) {
    %c0_i32 = arith.constant 0 : i32
    %c0_i32_0 = arith.constant 0 : i32
    %c0_i32_1 = arith.constant 0 : i32
    return %c0_i32, %c0_i32_0 : i32, i32
  }
  func.func @transform_3(%arg0: i32) -> (i32, i32) {
    %c0_i32 = arith.constant 0 : i32
    %c0_i32_0 = arith.constant 0 : i32
    %c0_i32_1 = arith.constant 0 : i32
    return %c0_i32, %c0_i32_0 : i32, i32
  }
  func.func @transform_4(%arg0: i32) -> (i32, i32) {
    %c0_i32 = arith.constant 0 : i32
    %c0_i32_0 = arith.constant 0 : i32
    return %arg0, %c0_i32 : i32, i32
  }
}

module attributes {stable_mosaic.version = 11 : i64} {
  func.func @_matmul_bn_relu_kernel(%arg0: i32, %arg1: memref<8x288xbf16, #tpu.memory_space<vmem>>, %arg2: memref<288x128xbf16, #tpu.memory_space<vmem>>, %arg3: memref<1x128xf32, #tpu.memory_space<vmem>>, %arg4: memref<1x128xf32, #tpu.memory_space<vmem>>, %arg5: memref<8x128xbf16, #tpu.memory_space<vmem>>) attributes {dimension_semantics = [#tpu.dimension_semantics<parallel>], iteration_bounds = array<i64: 1>, scalar_prefetch = 0 : i64, scratch_operands = 0 : i64, tpu.core_type = #tpu.core_type<tc>, window_params = [{transform_indices = @transform_0, window_bounds = array<i64: 8, 288>}, {pipeline_mode = #tpu.pipeline_mode<synchronous>, transform_indices = @transform_1, window_bounds = array<i64: 288, 128>}, {pipeline_mode = #tpu.pipeline_mode<synchronous>, transform_indices = @transform_2, window_bounds = array<i64: 1, 128>}, {pipeline_mode = #tpu.pipeline_mode<synchronous>, transform_indices = @transform_3, window_bounds = array<i64: 1, 128>}, {transform_indices = @transform_4, window_bounds = array<i64: 8, 128>}]} {
    %c0 = arith.constant 0 : index
    %c0_0 = arith.constant 0 : index
    %0 = vector.load %arg1[%c0, %c0_0] : memref<8x288xbf16, #tpu.memory_space<vmem>>, vector<8x288xbf16>
    %c0_1 = arith.constant 0 : index
    %c0_2 = arith.constant 0 : index
    %1 = vector.load %arg2[%c0_1, %c0_2] : memref<288x128xbf16, #tpu.memory_space<vmem>>, vector<288x128xbf16>
    %cst = arith.constant dense<0.000000e+00> : vector<8x128xf32>
    %2 = tpu.matmul %0, %1, %cst {dimension_numbers = #tpu.dot_dimension_numbers<[1], [0], [0], [1], [0, 0, 1, 1], [], []>} : vector<8x288xbf16>, vector<288x128xbf16>, vector<8x128xf32> -> vector<8x128xf32>
    %c0_3 = arith.constant 0 : index
    %c0_4 = arith.constant 0 : index
    %3 = vector.load %arg3[%c0_3, %c0_4] : memref<1x128xf32, #tpu.memory_space<vmem>>, vector<1x128xf32>
    %4 = vector.broadcast %3 : vector<1x128xf32> to vector<8x128xf32>
    %5 = arith.mulf %2, %4 : vector<8x128xf32>
    %c0_5 = arith.constant 0 : index
    %c0_6 = arith.constant 0 : index
    %6 = vector.load %arg4[%c0_5, %c0_6] : memref<1x128xf32, #tpu.memory_space<vmem>>, vector<1x128xf32>
    %7 = vector.broadcast %6 : vector<1x128xf32> to vector<8x128xf32>
    %8 = arith.addf %5, %7 : vector<8x128xf32>
    %cst_7 = arith.constant 0.000000e+00 : f32
    %9 = vector.broadcast %cst_7 : f32 to vector<8x128xf32>
    %10 = arith.maximumf %8, %9 : vector<8x128xf32>
    %11 = arith.truncf %10 : vector<8x128xf32> to vector<8x128xbf16>
    %c0_8 = arith.constant 0 : index
    %c0_9 = arith.constant 0 : index
    %12 = vector.load %arg5[%c0_8, %c0_9] : memref<8x128xbf16, #tpu.memory_space<vmem>>, vector<8x128xbf16>
    tpu.vector_store %arg5[%c0_8, %c0_9], %11 {strides = array<i32>} : memref<8x128xbf16, #tpu.memory_space<vmem>>, vector<8x128xbf16>,
    return
  }
  func.func @transform_0(%arg0: i32) -> (i32, i32) {
    %c0_i32 = arith.constant 0 : i32
    %c0_i32_0 = arith.constant 0 : i32
    return %arg0, %c0_i32 : i32, i32
  }
  func.func @transform_1(%arg0: i32) -> (i32, i32) {
    %c0_i32 = arith.constant 0 : i32
    %c0_i32_0 = arith.constant 0 : i32
    %c0_i32_1 = arith.constant 0 : i32
    return %c0_i32, %c0_i32_0 : i32, i32
  }
  func.func @transform_2(%arg0: i32) -> (i32, i32) {
    %c0_i32 = arith.constant 0 : i32
    %c0_i32_0 = arith.constant 0 : i32
    %c0_i32_1 = arith.constant 0 : i32
    return %c0_i32, %c0_i32_0 : i32, i32
  }
  func.func @transform_3(%arg0: i32) -> (i32, i32) {
    %c0_i32 = arith.constant 0 : i32
    %c0_i32_0 = arith.constant 0 : i32
    %c0_i32_1 = arith.constant 0 : i32
    return %c0_i32, %c0_i32_0 : i32, i32
  }
  func.func @transform_4(%arg0: i32) -> (i32, i32) {
    %c0_i32 = arith.constant 0 : i32
    %c0_i32_0 = arith.constant 0 : i32
    return %arg0, %c0_i32 : i32, i32
  }
}

module attributes {stable_mosaic.version = 11 : i64} {
  func.func @_fc_tail_kernel(%arg0: memref<2x128xbf16, #tpu.memory_space<vmem>>, %arg1: memref<128x128xbf16, #tpu.memory_space<vmem>>, %arg2: memref<1x128xf32, #tpu.memory_space<vmem>>, %arg3: memref<1x128xf32, #tpu.memory_space<vmem>>, %arg4: memref<128x128xbf16, #tpu.memory_space<vmem>>, %arg5: memref<1x128xf32, #tpu.memory_space<vmem>>, %arg6: memref<1x128xf32, #tpu.memory_space<vmem>>, %arg7: memref<128x128xbf16, #tpu.memory_space<vmem>>, %arg8: memref<1x128xf32, #tpu.memory_space<vmem>>, %arg9: memref<1x128xf32, #tpu.memory_space<vmem>>, %arg10: memref<2x128xf32, #tpu.memory_space<vmem>>) attributes {dimension_semantics = [], scalar_prefetch = 0 : i64, scratch_operands = 0 : i64, tpu.core_type = #tpu.core_type<tc>} {
    %c0 = arith.constant 0 : index
    %c0_0 = arith.constant 0 : index
    %0 = vector.load %arg0[%c0, %c0_0] : memref<2x128xbf16, #tpu.memory_space<vmem>>, vector<2x128xbf16>
    %c0_1 = arith.constant 0 : index
    %c0_2 = arith.constant 0 : index
    %1 = vector.load %arg1[%c0_1, %c0_2] : memref<128x128xbf16, #tpu.memory_space<vmem>>, vector<128x128xbf16>
    %cst = arith.constant dense<0.000000e+00> : vector<2x128xf32>
    %2 = tpu.matmul %0, %1, %cst {dimension_numbers = #tpu.dot_dimension_numbers<[1], [0], [0], [1], [0, 0, 1, 1], [], []>} : vector<2x128xbf16>, vector<128x128xbf16>, vector<2x128xf32> -> vector<2x128xf32>
    %c0_3 = arith.constant 0 : index
    %c0_4 = arith.constant 0 : index
    %3 = vector.load %arg2[%c0_3, %c0_4] : memref<1x128xf32, #tpu.memory_space<vmem>>, vector<1x128xf32>
    %4 = vector.broadcast %3 : vector<1x128xf32> to vector<2x128xf32>
    %5 = arith.mulf %2, %4 : vector<2x128xf32>
    %c0_5 = arith.constant 0 : index
    %c0_6 = arith.constant 0 : index
    %6 = vector.load %arg3[%c0_5, %c0_6] : memref<1x128xf32, #tpu.memory_space<vmem>>, vector<1x128xf32>
    %7 = vector.broadcast %6 : vector<1x128xf32> to vector<2x128xf32>
    %8 = arith.addf %5, %7 : vector<2x128xf32>
    %cst_7 = arith.constant 0.000000e+00 : f32
    %9 = vector.broadcast %cst_7 : f32 to vector<2x128xf32>
    %10 = arith.maximumf %8, %9 : vector<2x128xf32>
    %11 = arith.truncf %10 : vector<2x128xf32> to vector<2x128xbf16>
    %c0_8 = arith.constant 0 : index
    %c0_9 = arith.constant 0 : index
    %12 = vector.load %arg4[%c0_8, %c0_9] : memref<128x128xbf16, #tpu.memory_space<vmem>>, vector<128x128xbf16>
    %cst_10 = arith.constant dense<0.000000e+00> : vector<2x128xf32>
    %13 = tpu.matmul %11, %12, %cst_10 {dimension_numbers = #tpu.dot_dimension_numbers<[1], [0], [0], [1], [0, 0, 1, 1], [], []>} : vector<2x128xbf16>, vector<128x128xbf16>, vector<2x128xf32> -> vector<2x128xf32>
    %c0_11 = arith.constant 0 : index
    %c0_12 = arith.constant 0 : index
    %14 = vector.load %arg5[%c0_11, %c0_12] : memref<1x128xf32, #tpu.memory_space<vmem>>, vector<1x128xf32>
    %15 = vector.broadcast %14 : vector<1x128xf32> to vector<2x128xf32>
    %16 = arith.mulf %13, %15 : vector<2x128xf32>
    %c0_13 = arith.constant 0 : index
    %c0_14 = arith.constant 0 : index
    %17 = vector.load %arg6[%c0_13, %c0_14] : memref<1x128xf32, #tpu.memory_space<vmem>>, vector<1x128xf32>
    %18 = vector.broadcast %17 : vector<1x128xf32> to vector<2x128xf32>
    %19 = arith.addf %16, %18 : vector<2x128xf32>
    %cst_15 = arith.constant 0.000000e+00 : f32
    %20 = vector.broadcast %cst_15 : f32 to vector<2x128xf32>
    %21 = arith.maximumf %19, %20 : vector<2x128xf32>
    %22 = arith.truncf %21 : vector<2x128xf32> to vector<2x128xbf16>
    %c0_16 = arith.constant 0 : index
    %c0_17 = arith.constant 0 : index
    %23 = vector.load %arg7[%c0_16, %c0_17] : memref<128x128xbf16, #tpu.memory_space<vmem>>, vector<128x128xbf16>
    %cst_18 = arith.constant dense<0.000000e+00> : vector<2x128xf32>
    %24 = tpu.matmul %22, %23, %cst_18 {dimension_numbers = #tpu.dot_dimension_numbers<[1], [0], [0], [1], [0, 0, 1, 1], [], []>} : vector<2x128xbf16>, vector<128x128xbf16>, vector<2x128xf32> -> vector<2x128xf32>
    %c0_19 = arith.constant 0 : index
    %c0_20 = arith.constant 0 : index
    %25 = vector.load %arg8[%c0_19, %c0_20] : memref<1x128xf32, #tpu.memory_space<vmem>>, vector<1x128xf32>
    %26 = vector.broadcast %25 : vector<1x128xf32> to vector<2x128xf32>
    %27 = arith.mulf %24, %26 : vector<2x128xf32>
    %c0_21 = arith.constant 0 : index
    %c0_22 = arith.constant 0 : index
    %28 = vector.load %arg9[%c0_21, %c0_22] : memref<1x128xf32, #tpu.memory_space<vmem>>, vector<1x128xf32>
    %29 = vector.broadcast %28 : vector<1x128xf32> to vector<2x128xf32>
    %30 = arith.addf %27, %29 : vector<2x128xf32>
    %31 = tpu.iota {dimensions = array<i32: 1>} : vector<2x128xi32>
    %c10_i32 = arith.constant 10 : i32
    %32 = vector.broadcast %c10_i32 : i32 to vector<2x128xi32>
    %33 = arith.cmpi slt, %31, %32 : vector<2x128xi32>
    %cst_23 = arith.constant -1.000000e+30 : f32
    %34 = vector.broadcast %cst_23 : f32 to vector<2x128xf32>
    %35 = arith.select %33, %30, %34 : vector<2x128xi1>, vector<2x128xf32>
    %cst_24 = arith.constant dense<0xFF800000> : vector<2xf32>
    %36 = vector.multi_reduction <maximumf>, %35, %cst_24 [1] : vector<2x128xf32> to vector<2xf32>
    %37 = vector.shape_cast %36 : vector<2xf32> to vector<2x1xf32>
    %38 = vector.broadcast %37 : vector<2x1xf32> to vector<2x128xf32>
    %39 = arith.subf %35, %38 : vector<2x128xf32>
    %40 = math.exp %39 : vector<2x128xf32>
    %cst_25 = arith.constant dense<0.000000e+00> : vector<2xf32>
    %41 = vector.multi_reduction <add>, %40, %cst_25 [1] : vector<2x128xf32> to vector<2xf32>
    %42 = vector.shape_cast %41 : vector<2xf32> to vector<2x1xf32>
    %43 = math.log %42 : vector<2x1xf32>
    %44 = vector.broadcast %43 : vector<2x1xf32> to vector<2x128xf32>
    %45 = arith.subf %39, %44 : vector<2x128xf32>
    %c0_26 = arith.constant 0 : index
    %c0_27 = arith.constant 0 : index
    %46 = vector.load %arg10[%c0_26, %c0_27] : memref<2x128xf32, #tpu.memory_space<vmem>>, vector<2x128xf32>
    tpu.vector_store %arg10[%c0_26, %c0_27], %45 {strides = array<i32>} : memref<2x128xf32, #tpu.memory_space<vmem>>, vector<2x128xf32>,
    return
  }
}

</mosaic_0001>

<bundles_post_ra>
// kernel: svgg11_forward.9
= control target key start
LH: loop header
LB: loop body
LE: loop exit
PB: predicated region body
PF: predicated region fallthrough
CT: control target
= control target key end

     0   :  { %s3599_s15 = smov 0   ;;  %s4101_s0 = inlined_call_operand.vmem [shape: bf16[2048,27], index: 0, kind: input, shape index: {}]   ;;  %s4102_s1 = inlined_call_operand.vmem [shape: bf16[27,128], index: 1, kind: input, shape index: {}]   ;;  %s4103_s2 = inlined_call_operand.vmem [shape: f32[1,128], index: 2, kind: input, shape index: {}]   ;;  %s4104_s3 = inlined_call_operand.vmem [shape: f32[1,128], index: 3, kind: input, shape index: {}]   ;;  %s4105_s4 = inlined_call_operand.vmem [shape: bf16[2048,128], index: 4, kind: output, shape index: {}]  }
   0x1 LB: > { %s2504_s16 = sadd.s32 4294967295, %s3571_s15   ;;  %p2508_p0 = scmp.ge.s32.totalorder %s3571_s15, 1  ;;  %s3571_s15 = sphi %s3599_s15, %s14_s15  }
   0x2   : > { %p163_p1 = scmp.lt.s32.totalorder %s3571_s15, 3 }
   0x4   : > { %p164_p2 = pnand %p2508_p0, %p163_p1 }
   0x5   : > { %s2509_s19 = sshll.u32 (!%p164_p2), %s2504_s16, 7 }
   0x6   : > { %167 = sbr.rel (%p164_p2) target bundleno = 352 (0x160), region = 36  ;;  %p190_p3 = scmp.lt.s32.totalorder (!%p164_p2), %s2509_s19, 255 }
   0xb   : > { %v3497_v0 = vld [vmem:[%s4102_s1 + $0x8] sm:$0x3f]   ;;  %vm858_vm0 = vcmask 1044480   ;;  %vm859_vm1 = vcmask 1045504   ;;  %v3573_v1 = vmov 65535   ;;  %v3498_v5 = vld [vmem:[%s4102_s1] sm:$0xff]  }
   0xc   : > { %v860_v2 = vsel %vm858_vm0, 4294967295, %v3573_v1  ;;  %s4107_s19 = smov (!%p190_p3, %s2509_s19), 255  ;;  %vm665_vm2 = vcmask 220160  }
   0xd   : > { %v861_v3 = vsel %vm859_vm1, %v860_v2, 0  ;;  %s2510_s22 = sshll.u32 %s4107_s19, 2 }
   0xe   : > { %v863_v4 = vand.u32 %v3497_v0, %v861_v3  ;;  %s3621_s25 = scalar_lea.vmem %s4101_s0, %s2510_s22  ;;  %s3784_s6 = scalar_lea.vmem %s4105_s4, %s2510_s22 }
   0xf   : > { %v3499_v6 = vld [vmem:[%s3621_s25] sm:$0xff]   ;;  %v3501_v8 = vld [vmem:[%s3621_s25 + $0x8] sm:$0xff]   ;;  %v3503_v10 = vld [vmem:[%s3621_s25 + $0x10] sm:$0xff]  }
  0x10   : > { %3352 = vmatprep.subr.bf16.mxu0 %v863_v4  ;;  %3484 = vmatprep.subr.bf16.mxu1 %v863_v4  ;;  %v3500_v7 = vld [vmem:[%s3621_s25 + $0x100] sm:$0xff]   ;;  %v3502_v9 = vld [vmem:[%s3621_s25 + $0x108] sm:$0xff]   ;;  %v3504_v11 = vld [vmem:[%s3621_s25 + $0x110] sm:$0xff]  }
  0x11   : > { %3353 = vmatpush3.bf16.msra.mxu0 %v863_v4  ;;  %3486 = vmatpush3.bf16.msra.mxu1 %v863_v4  ;;  %v3505_v12 = vld [vmem:[%s3621_s25 + $0x18] sm:$0xff]   ;;  %v3507_v14 = vld [vmem:[%s3621_s25 + $0x20] sm:$0xff]   ;;  %v3509_v16 = vld [vmem:[%s3621_s25 + $0x28] sm:$0xff]  }
  0x12   : > { %3354 = vmatprep.subr.bf16.mxu0 %v3498_v5  ;;  %3485 = vmatprep.subr.bf16.mxu1 %v3498_v5  ;;  %v3506_v13 = vld [vmem:[%s3621_s25 + $0x118] sm:$0xff]   ;;  %v3508_v15 = vld [vmem:[%s3621_s25 + $0x120] sm:$0xff]   ;;  %v3510_v17 = vld [vmem:[%s3621_s25 + $0x128] sm:$0xff]  }
  0x13   : > { %3356 = vmatprep.mubr.msk.bf16.mxu0 %vm665_vm2, %v3499_v6  ;;  %3420 = vmatprep.mubr.msk.bf16.mxu1 %vm665_vm2, %v3500_v7  ;;  %v3511_v18 = vld [vmem:[%s3621_s25 + $0x30] sm:$0xff]   ;;  %v3513_v20 = vld [vmem:[%s3621_s25 + $0x38] sm:$0xff]   ;;  %v3515_v22 = vld [vmem:[%s3621_s25 + $0x40] sm:$0xff]  }
  0x14   : > { %v3512_v19 = vld [vmem:[%s3621_s25 + $0x130] sm:$0xff]   ;;  %v3514_v21 = vld [vmem:[%s3621_s25 + $0x138] sm:$0xff]   ;;  %v3516_v23 = vld [vmem:[%s3621_s25 + $0x140] sm:$0xff]  }
  0x15   : > { %3355 = vmatpush3.bf16.msra.mxu0 %v3498_v5  ;;  %3487 = vmatpush3.bf16.msra.mxu1 %v3498_v5  ;;  %v3517_v24 = vld [vmem:[%s3621_s25 + $0x48] sm:$0xff]   ;;  %v3519_v26 = vld [vmem:[%s3621_s25 + $0x50] sm:$0xff]   ;;  %v3521_v28 = vld [vmem:[%s3621_s25 + $0x58] sm:$0xff]  }
  0x16   : > { %v3518_v25 = vld [vmem:[%s3621_s25 + $0x148] sm:$0xff]   ;;  %v3520_v27 = vld [vmem:[%s3621_s25 + $0x150] sm:$0xff]   ;;  %v3522_v29 = vld [vmem:[%s3621_s25 + $0x158] sm:$0xff]  }
  0x17   : > { %v3523_v30 = vld [vmem:[%s3621_s25 + $0x60] sm:$0xff]   ;;  %v3525_v32 = vld [vmem:[%s3621_s25 + $0x68] sm:$0xff]   ;;  %v3527_v34 = vld [vmem:[%s3621_s25 + $0x70] sm:$0xff]  }
  0x18   : > { %3357 = vmatmul.mubr.msk.bf16.vlgmr.msra.gmra.mxu0 %vm665_vm2, %v3501_v8  ;;  %3421 = vmatmul.mubr.msk.bf16.vlgmr.msra.gmra.mxu1 %vm665_vm2, %v3502_v9  ;;  %v3524_v31 = vld [vmem:[%s3621_s25 + $0x160] sm:$0xff]   ;;  %v3526_v33 = vld [vmem:[%s3621_s25 + $0x168] sm:$0xff]   ;;  %v3528_v35 = vld [vmem:[%s3621_s25 + $0x170] sm:$0xff]  }
  0x19   : > { %3360 = vmatprep.mubr.msk.bf16.mxu0 %vm665_vm2, %v3503_v10  ;;  %3424 = vmatprep.mubr.msk.bf16.mxu1 %vm665_vm2, %v3504_v11  ;;  %v3529_v36 = vld [vmem:[%s3621_s25 + $0x78] sm:$0xff]   ;;  %v3531_v38 = vld [vmem:[%s3621_s25 + $0x80] sm:$0xff]   ;;  %v3533_v40 = vld [vmem:[%s3621_s25 + $0x88] sm:$0xff]  }
  0x1a   : > { %v3530_v37 = vld [vmem:[%s3621_s25 + $0x178] sm:$0xff]   ;;  %v3532_v39 = vld [vmem:[%s3621_s25 + $0x180] sm:$0xff]   ;;  %v3534_v41 = vld [vmem:[%s3621_s25 + $0x188] sm:$0xff]  }
  0x1b   : > { %v3535_v42 = vld [vmem:[%s3621_s25 + $0x90] sm:$0xff]   ;;  %v3537_v44 = vld [vmem:[%s3621_s25 + $0x98] sm:$0xff]   ;;  %v3539_v46 = vld [vmem:[%s3621_s25 + $0xa0] sm:$0xff]  }
  0x1c   : > { %v3536_v43 = vld [vmem:[%s3621_s25 + $0x190] sm:$0xff]   ;;  %v3538_v45 = vld [vmem:[%s3621_s25 + $0x198] sm:$0xff]   ;;  %v3540_v47 = vld [vmem:[%s3621_s25 + $0x1a0] sm:$0xff]  }
  0x1d   : > { %v3541_v48 = vld [vmem:[%s3621_s25 + $0xa8] sm:$0xff]   ;;  %v3543_v50 = vld [vmem:[%s3621_s25 + $0xb0] sm:$0xff]   ;;  %v3545_v52 = vld [vmem:[%s3621_s25 + $0xb8] sm:$0xff]  }
  0x1e   : > { %v3542_v49 = vld [vmem:[%s3621_s25 + $0x1a8] sm:$0xff]   ;;  %v3544_v51 = vld [vmem:[%s3621_s25 + $0x1b0] sm:$0xff]   ;;  %v3546_v53 = vld [vmem:[%s3621_s25 + $0x1b8] sm:$0xff]  }
  0x1f   : > { %v3547_v54 = vld [vmem:[%s3621_s25 + $0xc0] sm:$0xff]   ;;  %v3549_v56 = vld [vmem:[%s3621_s25 + $0xc8] sm:$0xff]   ;;  %v3551_v58 = vld [vmem:[%s3621_s25 + $0xd0] sm:$0xff]  }
  0x20   : > { %3361 = vmatmul.mubr.msk.bf16.gmra.mxu0 %vm665_vm2, %v3505_v12  ;;  %3425 = vmatmul.mubr.msk.bf16.gmra.mxu1 %vm665_vm2, %v3506_v13  ;;  %v3548_v55 = vld [vmem:[%s3621_s25 + $0x1c0] sm:$0xff]   ;;  %v3550_v57 = vld [vmem:[%s3621_s25 + $0x1c8] sm:$0xff]   ;;  %v3552_v59 = vld [vmem:[%s3621_s25 + $0x1d0] sm:$0xff]  }
  0x21   : > { %3364 = vmatprep.mubr.msk.bf16.mxu0 %vm665_vm2, %v3507_v14  ;;  %3428 = vmatprep.mubr.msk.bf16.mxu1 %vm665_vm2, %v3508_v15  ;;  %v3553_v60 = vld [vmem:[%s3621_s25 + $0xd8] sm:$0xff]   ;;  %v3555_v62 = vld [vmem:[%s3621_s25 + $0xe0] sm:$0xff]   ;;  %v3557_v0 = vld [vmem:[%s3621_s25 + $0xe8] sm:$0xff]  }
  0x22   : > { %v3554_v61 = vld [vmem:[%s3621_s25 + $0x1d8] sm:$0xff]   ;;  %v3556_v63 = vld [vmem:[%s3621_s25 + $0x1e0] sm:$0xff]   ;;  %v3558_v1 = vld [vmem:[%s3621_s25 + $0x1e8] sm:$0xff]  }
  0x23   : > { %v3559_v2 = vld [vmem:[%s3621_s25 + $0xf0] sm:$0xff]   ;;  %v3561_v4 = vld [vmem:[%s3621_s25 + $0xf8] sm:$0xff]   ;;  %v3754_v6 = vld [vmem:[%s4103_s2] ss:$0 sm:$0xff] }
  0x24   : > { %v3560_v3 = vld [vmem:[%s3621_s25 + $0x1f0] sm:$0xff]   ;;  %v3562_v5 = vld [vmem:[%s3621_s25 + $0x1f8] sm:$0xff]   ;;  %v3761_v11 = vld [vmem:[%s4104_s3] ss:$0 sm:$0xff] }
  0x28   : > { %3365 = vmatmul.mubr.msk.bf16.gmra.mxu0 %vm665_vm2, %v3509_v16  ;;  %3429 = vmatmul.mubr.msk.bf16.gmra.mxu1 %vm665_vm2, %v3510_v17 }
  0x29   : > { %3368 = vmatprep.mubr.msk.bf16.mxu0 %vm665_vm2, %v3511_v18  ;;  %3432 = vmatprep.mubr.msk.bf16.mxu1 %vm665_vm2, %v3512_v19 }
  0x30   : > { %3369 = vmatmul.mubr.msk.bf16.gmra.mxu0 %vm665_vm2, %v3513_v20  ;;  %3433 = vmatmul.mubr.msk.bf16.gmra.mxu1 %vm665_vm2, %v3514_v21 }
  0x31   : > { %3372 = vmatprep.mubr.msk.bf16.mxu0 %vm665_vm2, %v3515_v22  ;;  %3436 = vmatprep.mubr.msk.bf16.mxu1 %vm665_vm2, %v3516_v23 }
  0x38   : > { %3373 = vmatmul.mubr.msk.bf16.gmra.mxu0 %vm665_vm2, %v3517_v24  ;;  %3437 = vmatmul.mubr.msk.bf16.gmra.mxu1 %vm665_vm2, %v3518_v25 }
  0x39   : > { %3376 = vmatprep.mubr.msk.bf16.mxu0 %vm665_vm2, %v3519_v26  ;;  %3440 = vmatprep.mubr.msk.bf16.mxu1 %vm665_vm2, %v3520_v27 }
  0x40   : > { %3377 = vmatmul.mubr.msk.bf16.gmra.mxu0 %vm665_vm2, %v3521_v28  ;;  %3441 = vmatmul.mubr.msk.bf16.gmra.mxu1 %vm665_vm2, %v3522_v29 }
  0x41   : > { %3380 = vmatprep.mubr.msk.bf16.mxu0 %vm665_vm2, %v3523_v30  ;;  %3444 = vmatprep.mubr.msk.bf16.mxu1 %vm665_vm2, %v3524_v31 }
  0x48   : > { %3381 = vmatmul.mubr.msk.bf16.gmra.mxu0 %vm665_vm2, %v3525_v32  ;;  %3445 = vmatmul.mubr.msk.bf16.gmra.mxu1 %vm665_vm2, %v3526_v33 }
  0x49   : > { %3384 = vmatprep.mubr.msk.bf16.mxu0 %vm665_vm2, %v3527_v34  ;;  %3448 = vmatprep.mubr.msk.bf16.mxu1 %vm665_vm2, %v3528_v35 }
  0x50   : > { %3385 = vmatmul.mubr.msk.bf16.gmra.mxu0 %vm665_vm2, %v3529_v36  ;;  %3449 = vmatmul.mubr.msk.bf16.gmra.mxu1 %vm665_vm2, %v3530_v37 }
  0x51   : > { %3388 = vmatprep.mubr.msk.bf16.mxu0 %vm665_vm2, %v3531_v38  ;;  %3452 = vmatprep.mubr.msk.bf16.mxu1 %vm665_vm2, %v3532_v39 }
  0x58   : > { %3389 = vmatmul.mubr.msk.bf16.gmra.mxu0 %vm665_vm2, %v3533_v40  ;;  %3453 = vmatmul.mubr.msk.bf16.gmra.mxu1 %vm665_vm2, %v3534_v41 }
  0x59   : > { %3392 = vmatprep.mubr.msk.bf16.mxu0 %vm665_vm2, %v3535_v42  ;;  %3456 = vmatprep.mubr.msk.bf16.mxu1 %vm665_vm2, %v3536_v43 }
  0x60   : > { %3393 = vmatmul.mubr.msk.bf16.gmra.mxu0 %vm665_vm2, %v3537_v44  ;;  %3457 = vmatmul.mubr.msk.bf16.gmra.mxu1 %vm665_vm2, %v3538_v45 }
  0x61   : > { %3396 = vmatprep.mubr.msk.bf16.mxu0 %vm665_vm2, %v3539_v46  ;;  %3460 = vmatprep.mubr.msk.bf16.mxu1 %vm665_vm2, %v3540_v47 }
  0x68   : > { %3397 = vmatmul.mubr.msk.bf16.gmra.mxu0 %vm665_vm2, %v3541_v48  ;;  %3461 = vmatmul.mubr.msk.bf16.gmra.mxu1 %vm665_vm2, %v3542_v49 }
  0x69   : > { %3400 = vmatprep.mubr.msk.bf16.mxu0 %vm665_vm2, %v3543_v50  ;;  %3464 = vmatprep.mubr.msk.bf16.mxu1 %vm665_vm2, %v3544_v51 }
  0x70   : > { %3401 = vmatmul.mubr.msk.bf16.gmra.mxu0 %vm665_vm2, %v3545_v52  ;;  %3465 = vmatmul.mubr.msk.bf16.gmra.mxu1 %vm665_vm2, %v3546_v53 }
  0x71   : > { %3404 = vmatprep.mubr.msk.bf16.mxu0 %vm665_vm2, %v3547_v54  ;;  %3468 = vmatprep.mubr.msk.bf16.mxu1 %vm665_vm2, %v3548_v55 }
  0x78   : > { %3405 = vmatmul.mubr.msk.bf16.gmra.mxu0 %vm665_vm2, %v3549_v56  ;;  %3469 = vmatmul.mubr.msk.bf16.gmra.mxu1 %vm665_vm2, %v3550_v57 }
  0x79   : > { %3408 = vmatprep.mubr.msk.bf16.mxu0 %vm665_vm2, %v3551_v58  ;;  %3472 = vmatprep.mubr.msk.bf16.mxu1 %vm665_vm2, %v3552_v59 }
  0x80   : > { %3409 = vmatmul.mubr.msk.bf16.gmra.mxu0 %vm665_vm2, %v3553_v60  ;;  %3473 = vmatmul.mubr.msk.bf16.gmra.mxu1 %vm665_vm2, %v3554_v61 }
  0x81   : > { %3412 = vmatprep.mubr.msk.bf16.mxu0 %vm665_vm2, %v3555_v62  ;;  %3476 = vmatprep.mubr.msk.bf16.mxu1 %vm665_vm2, %v3556_v63 }
  0x88   : > { %3413 = vmatmul.mubr.msk.bf16.gmra.mxu0 %vm665_vm2, %v3557_v0  ;;  %3477 = vmatmul.mubr.msk.bf16.gmra.mxu1 %vm665_vm2, %v3558_v1 }
  0x89   : > { %3416 = vmatprep.mubr.msk.bf16.mxu0 %vm665_vm2, %v3559_v2  ;;  %3480 = vmatprep.mubr.msk.bf16.mxu1 %vm665_vm2, %v3560_v3 }
  0x90   : > { %3417 = vmatmul.mubr.msk.bf16.gmra.mxu0 %vm665_vm2, %v3561_v4  ;;  %3481 = vmatmul.mubr.msk.bf16.gmra.mxu1 %vm665_vm2, %v3562_v5 }
  0xd8   : > { %v3358_v7 = vpop.f32.mrf.mxu0  ;;  %v3422_v8 = vpop.f32.mrf.mxu1 }
  0xd9   : > { %v1419_v9 = vmul.f32 %v3358_v7, %v3754_v6  ;;  %v1483_v10 = vmul.f32 %v3422_v8, %v3754_v6 }
  0xda   : > { %v899_v12 = vpop.f32.mrf.mxu0  ;;  %v1155_v13 = vpop.f32.mrf.mxu1 }
  0xdb   : > { %v1417_v14 = vmul.f32 %v3754_v6, %v899_v12  ;;  %v1481_v15 = vmul.f32 %v3754_v6, %v1155_v13  ;;  %v1554_v18 = vadd.f32 %v3761_v11, %v1419_v9  ;;  %v1618_v19 = vadd.f32 %v3761_v11, %v1483_v10 }
  0xdc   : > { %v3359_v16 = vpop.f32.mrf.mxu0  ;;  %v3423_v17 = vpop.f32.mrf.mxu1 }
  0xdd   : > { %v1420_v20 = vmul.f32 %v3359_v16, %v3754_v6  ;;  %v1484_v21 = vmul.f32 %v3423_v17, %v3754_v6  ;;  %v1552_v24 = vadd.f32 %v3761_v11, %v1417_v14  ;;  %v1616_v25 = vadd.f32 %v3761_v11, %v1481_v15 }
  0xde   : > { %v902_v22 = vpop.f32.mrf.mxu0  ;;  %v1158_v23 = vpop.f32.mrf.mxu1  ;;  %v1682_v32 = vmax.f32 %v1554_v18, 0.0  ;;  %v1746_v33 = vmax.f32 %v1618_v19, 0.0 }
  0xdf   : > { %v1418_v26 = vmul.f32 %v3754_v6, %v902_v22  ;;  %v1482_v27 = vmul.f32 %v3754_v6, %v1158_v23  ;;  %v1555_v28 = vadd.f32 %v3761_v11, %v1420_v20  ;;  %v1619_v29 = vadd.f32 %v3761_v11, %v1484_v21 }
  0xe0   : > { %v3362_v30 = vpop.f32.mrf.mxu0  ;;  %v3426_v31 = vpop.f32.mrf.mxu1  ;;  %v1680_v42 = vmax.f32 %v1552_v24, 0.0  ;;  %v1744_v43 = vmax.f32 %v1616_v25, 0.0 }
  0xe1   : > { %v1553_v34 = vadd.f32 %v3761_v11, %v1418_v26  ;;  %v1617_v35 = vadd.f32 %v3761_v11, %v1482_v27  ;;  %v1683_v36 = vmax.f32 %v1555_v28, 0.0  ;;  %v1747_v37 = vmax.f32 %v1619_v29, 0.0 }
  0xe2   : > { %v1423_v38 = vmul.f32 %v3362_v30, %v3754_v6  ;;  %v1487_v39 = vmul.f32 %v3426_v31, %v3754_v6  ;;  %v915_v40 = vpop.f32.mrf.mxu0  ;;  %v1171_v41 = vpop.f32.mrf.mxu1 }
  0xe3   : > { %v1681_v44 = vmax.f32 %v1553_v34, 0.0  ;;  %v1745_v45 = vmax.f32 %v1617_v35, 0.0  ;;  %v2911_v46 = vpack.c.bf16 %v1683_v36, %v1682_v32  ;;  %v3071_v47 = vpack.c.bf16 %v1747_v37, %v1746_v33 }
  0xe4   : > { %v1421_v48 = vmul.f32 %v3754_v6, %v915_v40  ;;  %v1485_v49 = vmul.f32 %v3754_v6, %v1171_v41  ;;  %v3363_v50 = vpop.f32.mrf.mxu0  ;;  %v3427_v51 = vpop.f32.mrf.mxu1  ;;  %v1558_v54 = vadd.f32 %v3761_v11, %v1423_v38  ;;  %v1622_v55 = vadd.f32 %v3761_v11, %v1487_v39 }
  0xe5   : > { %v2906_v52 = vpack.c.bf16 %v1681_v44, %v1680_v42  ;;  %v3066_v53 = vpack.c.bf16 %v1745_v45, %v1744_v43  ;;  %3223 = vst [vmem:[%s3784_s6 + $0x8] sm:$0xff] %v2911_v46   ;;  %3255 = vst [vmem:[%s3784_s6 + $0x108] sm:$0xff] %v3071_v47   ;;  %v1424_v56 = vmul.f32 %v3363_v50, %v3754_v6 }
  0xe6   : > { %v1488_v57 = vmul.f32 %v3427_v51, %v3754_v6  ;;  %v918_v58 = vpop.f32.mrf.mxu0  ;;  %v1174_v59 = vpop.f32.mrf.mxu1  ;;  %v1556_v60 = vadd.f32 %v3761_v11, %v1421_v48  ;;  %v1620_v61 = vadd.f32 %v3761_v11, %v1485_v49  ;;  %v1686_v9 = vmax.f32 %v1558_v54, 0.0 }
  0xe7   : > { %2907 = vst [vmem:[%s3784_s6] sm:$0xff] %v2906_v52   ;;  %3254 = vst [vmem:[%s3784_s6 + $0x100] sm:$0xff] %v3066_v53   ;;  %v1422_v62 = vmul.f32 %v3754_v6, %v918_v58  ;;  %v1486_v63 = vmul.f32 %v3754_v6, %v1174_v59  ;;  %v1559_v0 = vadd.f32 %v3761_v11, %v1424_v56  ;;  %v1750_v10 = vmax.f32 %v1622_v55, 0.0 }
  0xe8   : > { %v1623_v1 = vadd.f32 %v3761_v11, %v1488_v57  ;;  %v3366_v2 = vpop.f32.mrf.mxu0  ;;  %v3430_v3 = vpop.f32.mrf.mxu1  ;;  %v1684_v16 = vmax.f32 %v1556_v60, 0.0  ;;  %v1748_v17 = vmax.f32 %v1620_v61, 0.0 }
  0xe9   : > { %v1557_v4 = vadd.f32 %v3761_v11, %v1422_v62  ;;  %v1621_v5 = vadd.f32 %v3761_v11, %v1486_v63  ;;  %v1427_v7 = vmul.f32 %v3366_v2, %v3754_v6  ;;  %v1491_v8 = vmul.f32 %v3430_v3, %v3754_v6 }
  0xea   : > { %v1687_v12 = vmax.f32 %v1559_v0, 0.0  ;;  %v1751_v13 = vmax.f32 %v1623_v1, 0.0  ;;  %v931_v14 = vpop.f32.mrf.mxu0  ;;  %v1187_v15 = vpop.f32.mrf.mxu1 }
  0xeb   : > { %v1685_v18 = vmax.f32 %v1557_v4, 0.0  ;;  %v1749_v19 = vmax.f32 %v1621_v5, 0.0  ;;  %v1425_v22 = vmul.f32 %v3754_v6, %v931_v14  ;;  %v1489_v23 = vmul.f32 %v3754_v6, %v1187_v15 }
  0xec   : > { %v2921_v20 = vpack.c.bf16 %v1687_v12, %v1686_v9  ;;  %v3081_v21 = vpack.c.bf16 %v1751_v13, %v1750_v10  ;;  %v3367_v24 = vpop.f32.mrf.mxu0  ;;  %v3431_v25 = vpop.f32.mrf.mxu1  ;;  %v1562_v28 = vadd.f32 %v3761_v11, %v1427_v7  ;;  %v1626_v29 = vadd.f32 %v3761_v11, %v1491_v8 }
  0xed   : > { %v2916_v26 = vpack.c.bf16 %v1685_v18, %v1684_v16  ;;  %v3076_v27 = vpack.c.bf16 %v1749_v19, %v1748_v17  ;;  %v1428_v30 = vmul.f32 %v3367_v24, %v3754_v6  ;;  %v1492_v31 = vmul.f32 %v3431_v25, %v3754_v6 }
  0xee   : > { %3225 = vst [vmem:[%s3784_s6 + $0x18] sm:$0xff] %v2921_v20   ;;  %3257 = vst [vmem:[%s3784_s6 + $0x118] sm:$0xff] %v3081_v21   ;;  %v934_v32 = vpop.f32.mrf.mxu0  ;;  %v1190_v33 = vpop.f32.mrf.mxu1  ;;  %v1560_v34 = vadd.f32 %v3761_v11, %v1425_v22  ;;  %v1624_v35 = vadd.f32 %v3761_v11, %v1489_v23  ;;  %v1690_v42 = vmax.f32 %v1562_v28, 0.0  ;;  %v1754_v43 = vmax.f32 %v1626_v29, 0.0 }
  0xef   : > { %3224 = vst [vmem:[%s3784_s6 + $0x10] sm:$0xff] %v2916_v26   ;;  %3256 = vst [vmem:[%s3784_s6 + $0x110] sm:$0xff] %v3076_v27   ;;  %v1426_v36 = vmul.f32 %v3754_v6, %v934_v32  ;;  %v1490_v37 = vmul.f32 %v3754_v6, %v1190_v33  ;;  %v1563_v38 = vadd.f32 %v3761_v11, %v1428_v30 }
  0xf0   : > { %v1627_v39 = vadd.f32 %v3761_v11, %v1492_v31  ;;  %v3370_v40 = vpop.f32.mrf.mxu0  ;;  %v3434_v41 = vpop.f32.mrf.mxu1  ;;  %v1688_v52 = vmax.f32 %v1560_v34, 0.0  ;;  %v1752_v53 = vmax.f32 %v1624_v35, 0.0 }
  0xf1   : > { %v1561_v44 = vadd.f32 %v3761_v11, %v1426_v36  ;;  %v1625_v45 = vadd.f32 %v3761_v11, %v1490_v37  ;;  %v1691_v46 = vmax.f32 %v1563_v38, 0.0  ;;  %v1431_v48 = vmul.f32 %v3370_v40, %v3754_v6 }
  0xf2   : > { %v1755_v47 = vmax.f32 %v1627_v39, 0.0  ;;  %v1495_v49 = vmul.f32 %v3434_v41, %v3754_v6  ;;  %v947_v50 = vpop.f32.mrf.mxu0  ;;  %v1203_v51 = vpop.f32.mrf.mxu1 }
  0xf3   : > { %v1689_v54 = vmax.f32 %v1561_v44, 0.0  ;;  %v1753_v55 = vmax.f32 %v1625_v45, 0.0  ;;  %v2931_v56 = vpack.c.bf16 %v1691_v46, %v1690_v42  ;;  %v1429_v58 = vmul.f32 %v3754_v6, %v947_v50 }
  0xf4   : > { %v3091_v57 = vpack.c.bf16 %v1755_v47, %v1754_v43  ;;  %v1493_v59 = vmul.f32 %v3754_v6, %v1203_v51  ;;  %v3371_v60 = vpop.f32.mrf.mxu0  ;;  %v3435_v61 = vpop.f32.mrf.mxu1  ;;  %v1566_v0 = vadd.f32 %v3761_v11, %v1431_v48  ;;  %v1630_v1 = vadd.f32 %v3761_v11, %v1495_v49 }
  0xf5   : > { %v2926_v62 = vpack.c.bf16 %v1689_v54, %v1688_v52  ;;  %v3086_v63 = vpack.c.bf16 %v1753_v55, %v1752_v53  ;;  %3227 = vst [vmem:[%s3784_s6 + $0x28] sm:$0xff] %v2931_v56   ;;  %v1432_v2 = vmul.f32 %v3371_v60, %v3754_v6  ;;  %v1496_v3 = vmul.f32 %v3435_v61, %v3754_v6 }
  0xf6   : > { %3259 = vst [vmem:[%s3784_s6 + $0x128] sm:$0xff] %v3091_v57   ;;  %v950_v4 = vpop.f32.mrf.mxu0  ;;  %v1206_v5 = vpop.f32.mrf.mxu1  ;;  %v1564_v7 = vadd.f32 %v3761_v11, %v1429_v58  ;;  %v1628_v8 = vadd.f32 %v3761_v11, %v1493_v59  ;;  %v1694_v20 = vmax.f32 %v1566_v0, 0.0  ;;  %v1758_v21 = vmax.f32 %v1630_v1, 0.0 }
  0xf7   : > { %3226 = vst [vmem:[%s3784_s6 + $0x20] sm:$0xff] %v2926_v62   ;;  %3258 = vst [vmem:[%s3784_s6 + $0x120] sm:$0xff] %v3086_v63   ;;  %v1430_v9 = vmul.f32 %v3754_v6, %v950_v4  ;;  %v1494_v10 = vmul.f32 %v3754_v6, %v1206_v5  ;;  %v1567_v12 = vadd.f32 %v3761_v11, %v1432_v2 }
  0xf8   : > { %v1631_v13 = vadd.f32 %v3761_v11, %v1496_v3  ;;  %v3374_v14 = vpop.f32.mrf.mxu0  ;;  %v3438_v15 = vpop.f32.mrf.mxu1  ;;  %v1692_v26 = vmax.f32 %v1564_v7, 0.0  ;;  %v1756_v27 = vmax.f32 %v1628_v8, 0.0 }
  0xf9   : > { %v1565_v16 = vadd.f32 %v3761_v11, %v1430_v9  ;;  %v1629_v17 = vadd.f32 %v3761_v11, %v1494_v10  ;;  %v1435_v18 = vmul.f32 %v3374_v14, %v3754_v6  ;;  %v1499_v19 = vmul.f32 %v3438_v15, %v3754_v6 }
  0xfa   : > { %v1695_v22 = vmax.f32 %v1567_v12, 0.0  ;;  %v1759_v23 = vmax.f32 %v1631_v13, 0.0  ;;  %v963_v24 = vpop.f32.mrf.mxu0  ;;  %v1219_v25 = vpop.f32.mrf.mxu1 }
  0xfb   : > { %v1693_v28 = vmax.f32 %v1565_v16, 0.0  ;;  %v1757_v29 = vmax.f32 %v1629_v17, 0.0  ;;  %v1433_v32 = vmul.f32 %v3754_v6, %v963_v24  ;;  %v1497_v33 = vmul.f32 %v3754_v6, %v1219_v25 }
  0xfc   : > { %v2941_v30 = vpack.c.bf16 %v1695_v22, %v1694_v20  ;;  %v3101_v31 = vpack.c.bf16 %v1759_v23, %v1758_v21  ;;  %v3375_v34 = vpop.f32.mrf.mxu0  ;;  %v3439_v35 = vpop.f32.mrf.mxu1  ;;  %v1570_v38 = vadd.f32 %v3761_v11, %v1435_v18  ;;  %v1634_v39 = vadd.f32 %v3761_v11, %v1499_v19 }
  0xfd   : > { %v2936_v36 = vpack.c.bf16 %v1693_v28, %v1692_v26  ;;  %v3096_v37 = vpack.c.bf16 %v1757_v29, %v1756_v27  ;;  %v1436_v40 = vmul.f32 %v3375_v34, %v3754_v6  ;;  %v1500_v41 = vmul.f32 %v3439_v35, %v3754_v6 }
  0xfe   : > { %3229 = vst [vmem:[%s3784_s6 + $0x38] sm:$0xff] %v2941_v30   ;;  %3261 = vst [vmem:[%s3784_s6 + $0x138] sm:$0xff] %v3101_v31   ;;  %v966_v42 = vpop.f32.mrf.mxu0  ;;  %v1222_v43 = vpop.f32.mrf.mxu1  ;;  %v1568_v44 = vadd.f32 %v3761_v11, %v1433_v32  ;;  %v1632_v45 = vadd.f32 %v3761_v11, %v1497_v33  ;;  %v1698_v52 = vmax.f32 %v1570_v38, 0.0  ;;  %v1762_v53 = vmax.f32 %v1634_v39, 0.0 }
  0xff   : > { %3228 = vst [vmem:[%s3784_s6 + $0x30] sm:$0xff] %v2936_v36   ;;  %3260 = vst [vmem:[%s3784_s6 + $0x130] sm:$0xff] %v3096_v37   ;;  %v1434_v46 = vmul.f32 %v3754_v6, %v966_v42  ;;  %v1498_v47 = vmul.f32 %v3754_v6, %v1222_v43  ;;  %v1571_v48 = vadd.f32 %v3761_v11, %v1436_v40 }
 0x100   : > { %v1635_v49 = vadd.f32 %v3761_v11, %v1500_v41  ;;  %v3378_v50 = vpop.f32.mrf.mxu0  ;;  %v3442_v51 = vpop.f32.mrf.mxu1  ;;  %v1696_v62 = vmax.f32 %v1568_v44, 0.0  ;;  %v1760_v63 = vmax.f32 %v1632_v45, 0.0 }
 0x101   : > { %v1569_v54 = vadd.f32 %v3761_v11, %v1434_v46  ;;  %v1633_v55 = vadd.f32 %v3761_v11, %v1498_v47  ;;  %v1699_v56 = vmax.f32 %v1571_v48, 0.0  ;;  %v1439_v58 = vmul.f32 %v3378_v50, %v3754_v6 }
 0x102   : > { %v1763_v57 = vmax.f32 %v1635_v49, 0.0  ;;  %v1503_v59 = vmul.f32 %v3442_v51, %v3754_v6  ;;  %v979_v60 = vpop.f32.mrf.mxu0  ;;  %v1235_v61 = vpop.f32.mrf.mxu1 }
 0x103   : > { %v1697_v0 = vmax.f32 %v1569_v54, 0.0  ;;  %v1761_v1 = vmax.f32 %v1633_v55, 0.0  ;;  %v2951_v2 = vpack.c.bf16 %v1699_v56, %v1698_v52  ;;  %v1437_v4 = vmul.f32 %v3754_v6, %v979_v60 }
 0x104   : > { %v3111_v3 = vpack.c.bf16 %v1763_v57, %v1762_v53  ;;  %v1501_v5 = vmul.f32 %v3754_v6, %v1235_v61  ;;  %v3379_v7 = vpop.f32.mrf.mxu0  ;;  %v3443_v8 = vpop.f32.mrf.mxu1  ;;  %v1574_v12 = vadd.f32 %v3761_v11, %v1439_v58  ;;  %v1638_v13 = vadd.f32 %v3761_v11, %v1503_v59 }
 0x105   : > { %v2946_v9 = vpack.c.bf16 %v1697_v0, %v1696_v62  ;;  %v3106_v10 = vpack.c.bf16 %v1761_v1, %v1760_v63  ;;  %3231 = vst [vmem:[%s3784_s6 + $0x48] sm:$0xff] %v2951_v2   ;;  %v1440_v14 = vmul.f32 %v3379_v7, %v3754_v6  ;;  %v1504_v15 = vmul.f32 %v3443_v8, %v3754_v6 }
 0x106   : > { %3263 = vst [vmem:[%s3784_s6 + $0x148] sm:$0xff] %v3111_v3   ;;  %v982_v16 = vpop.f32.mrf.mxu0  ;;  %v1238_v17 = vpop.f32.mrf.mxu1  ;;  %v1572_v18 = vadd.f32 %v3761_v11, %v1437_v4  ;;  %v1636_v19 = vadd.f32 %v3761_v11, %v1501_v5  ;;  %v1702_v30 = vmax.f32 %v1574_v12, 0.0  ;;  %v1766_v31 = vmax.f32 %v1638_v13, 0.0 }
 0x107   : > { %3230 = vst [vmem:[%s3784_s6 + $0x40] sm:$0xff] %v2946_v9   ;;  %3262 = vst [vmem:[%s3784_s6 + $0x140] sm:$0xff] %v3106_v10   ;;  %v1438_v20 = vmul.f32 %v3754_v6, %v982_v16  ;;  %v1502_v21 = vmul.f32 %v3754_v6, %v1238_v17  ;;  %v1575_v22 = vadd.f32 %v3761_v11, %v1440_v14 }
 0x108   : > { %v1639_v23 = vadd.f32 %v3761_v11, %v1504_v15  ;;  %v3382_v24 = vpop.f32.mrf.mxu0  ;;  %v3446_v25 = vpop.f32.mrf.mxu1  ;;  %v1700_v36 = vmax.f32 %v1572_v18, 0.0  ;;  %v1764_v37 = vmax.f32 %v1636_v19, 0.0 }
 0x109   : > { %v1573_v26 = vadd.f32 %v3761_v11, %v1438_v20  ;;  %v1637_v27 = vadd.f32 %v3761_v11, %v1502_v21  ;;  %v1443_v28 = vmul.f32 %v3382_v24, %v3754_v6  ;;  %v1507_v29 = vmul.f32 %v3446_v25, %v3754_v6 }
 0x10a   : > { %v1703_v32 = vmax.f32 %v1575_v22, 0.0  ;;  %v1767_v33 = vmax.f32 %v1639_v23, 0.0  ;;  %v995_v34 = vpop.f32.mrf.mxu0  ;;  %v1251_v35 = vpop.f32.mrf.mxu1 }
 0x10b   : > { %v1701_v38 = vmax.f32 %v1573_v26, 0.0  ;;  %v1765_v39 = vmax.f32 %v1637_v27, 0.0  ;;  %v1441_v42 = vmul.f32 %v3754_v6, %v995_v34  ;;  %v1505_v43 = vmul.f32 %v3754_v6, %v1251_v35 }
 0x10c   : > { %v2961_v40 = vpack.c.bf16 %v1703_v32, %v1702_v30  ;;  %v3121_v41 = vpack.c.bf16 %v1767_v33, %v1766_v31  ;;  %v3383_v44 = vpop.f32.mrf.mxu0  ;;  %v3447_v45 = vpop.f32.mrf.mxu1  ;;  %v1578_v48 = vadd.f32 %v3761_v11, %v1443_v28  ;;  %v1642_v49 = vadd.f32 %v3761_v11, %v1507_v29 }
 0x10d   : > { %v2956_v46 = vpack.c.bf16 %v1701_v38, %v1700_v36  ;;  %v3116_v47 = vpack.c.bf16 %v1765_v39, %v1764_v37  ;;  %v1444_v50 = vmul.f32 %v3383_v44, %v3754_v6  ;;  %v1508_v51 = vmul.f32 %v3447_v45, %v3754_v6 }
 0x10e   : > { %3233 = vst [vmem:[%s3784_s6 + $0x58] sm:$0xff] %v2961_v40   ;;  %3265 = vst [vmem:[%s3784_s6 + $0x158] sm:$0xff] %v3121_v41   ;;  %v998_v52 = vpop.f32.mrf.mxu0  ;;  %v1254_v53 = vpop.f32.mrf.mxu1  ;;  %v1576_v54 = vadd.f32 %v3761_v11, %v1441_v42  ;;  %v1640_v55 = vadd.f32 %v3761_v11, %v1505_v43  ;;  %v1706_v62 = vmax.f32 %v1578_v48, 0.0  ;;  %v1770_v63 = vmax.f32 %v1642_v49, 0.0 }
 0x10f   : > { %3232 = vst [vmem:[%s3784_s6 + $0x50] sm:$0xff] %v2956_v46   ;;  %3264 = vst [vmem:[%s3784_s6 + $0x150] sm:$0xff] %v3116_v47   ;;  %v1442_v56 = vmul.f32 %v3754_v6, %v998_v52  ;;  %v1506_v57 = vmul.f32 %v3754_v6, %v1254_v53  ;;  %v1579_v58 = vadd.f32 %v3761_v11, %v1444_v50 }
 0x110   : > { %v1643_v59 = vadd.f32 %v3761_v11, %v1508_v51  ;;  %v3386_v60 = vpop.f32.mrf.mxu0  ;;  %v3450_v61 = vpop.f32.mrf.mxu1  ;;  %v1704_v9 = vmax.f32 %v1576_v54, 0.0  ;;  %v1768_v10 = vmax.f32 %v1640_v55, 0.0 }
 0x111   : > { %v1577_v0 = vadd.f32 %v3761_v11, %v1442_v56  ;;  %v1641_v1 = vadd.f32 %v3761_v11, %v1506_v57  ;;  %v1707_v2 = vmax.f32 %v1579_v58, 0.0  ;;  %v1447_v4 = vmul.f32 %v3386_v60, %v3754_v6 }
 0x112   : > { %v1771_v3 = vmax.f32 %v1643_v59, 0.0  ;;  %v1511_v5 = vmul.f32 %v3450_v61, %v3754_v6  ;;  %v1011_v7 = vpop.f32.mrf.mxu0  ;;  %v1267_v8 = vpop.f32.mrf.mxu1 }
 0x113   : > { %v1705_v12 = vmax.f32 %v1577_v0, 0.0  ;;  %v1769_v13 = vmax.f32 %v1641_v1, 0.0  ;;  %v2971_v14 = vpack.c.bf16 %v1707_v2, %v1706_v62  ;;  %v1445_v16 = vmul.f32 %v3754_v6, %v1011_v7 }
 0x114   : > { %v3131_v15 = vpack.c.bf16 %v1771_v3, %v1770_v63  ;;  %v1509_v17 = vmul.f32 %v3754_v6, %v1267_v8  ;;  %v3387_v18 = vpop.f32.mrf.mxu0  ;;  %v3451_v19 = vpop.f32.mrf.mxu1  ;;  %v1582_v22 = vadd.f32 %v3761_v11, %v1447_v4  ;;  %v1646_v23 = vadd.f32 %v3761_v11, %v1511_v5 }
 0x115   : > { %v2966_v20 = vpack.c.bf16 %v1705_v12, %v1704_v9  ;;  %v3126_v21 = vpack.c.bf16 %v1769_v13, %v1768_v10  ;;  %3235 = vst [vmem:[%s3784_s6 + $0x68] sm:$0xff] %v2971_v14   ;;  %v1448_v24 = vmul.f32 %v3387_v18, %v3754_v6  ;;  %v1512_v25 = vmul.f32 %v3451_v19, %v3754_v6 }
 0x116   : > { %3267 = vst [vmem:[%s3784_s6 + $0x168] sm:$0xff] %v3131_v15   ;;  %v1014_v26 = vpop.f32.mrf.mxu0  ;;  %v1270_v27 = vpop.f32.mrf.mxu1  ;;  %v1580_v28 = vadd.f32 %v3761_v11, %v1445_v16  ;;  %v1644_v29 = vadd.f32 %v3761_v11, %v1509_v17  ;;  %v1710_v40 = vmax.f32 %v1582_v22, 0.0  ;;  %v1774_v41 = vmax.f32 %v1646_v23, 0.0 }
 0x117   : > { %3234 = vst [vmem:[%s3784_s6 + $0x60] sm:$0xff] %v2966_v20   ;;  %3266 = vst [vmem:[%s3784_s6 + $0x160] sm:$0xff] %v3126_v21   ;;  %v1446_v30 = vmul.f32 %v3754_v6, %v1014_v26  ;;  %v1510_v31 = vmul.f32 %v3754_v6, %v1270_v27  ;;  %v1583_v32 = vadd.f32 %v3761_v11, %v1448_v24 }
 0x118   : > { %v1647_v33 = vadd.f32 %v3761_v11, %v1512_v25  ;;  %v3390_v34 = vpop.f32.mrf.mxu0  ;;  %v3454_v35 = vpop.f32.mrf.mxu1  ;;  %v1708_v46 = vmax.f32 %v1580_v28, 0.0  ;;  %v1772_v47 = vmax.f32 %v1644_v29, 0.0 }
 0x119   : > { %v1581_v36 = vadd.f32 %v3761_v11, %v1446_v30  ;;  %v1645_v37 = vadd.f32 %v3761_v11, %v1510_v31  ;;  %v1451_v38 = vmul.f32 %v3390_v34, %v3754_v6  ;;  %v1515_v39 = vmul.f32 %v3454_v35, %v3754_v6 }
 0x11a   : > { %v1711_v42 = vmax.f32 %v1583_v32, 0.0  ;;  %v1775_v43 = vmax.f32 %v1647_v33, 0.0  ;;  %v1027_v44 = vpop.f32.mrf.mxu0  ;;  %v1283_v45 = vpop.f32.mrf.mxu1 }
 0x11b   : > { %v1709_v48 = vmax.f32 %v1581_v36, 0.0  ;;  %v1773_v49 = vmax.f32 %v1645_v37, 0.0  ;;  %v1449_v52 = vmul.f32 %v3754_v6, %v1027_v44  ;;  %v1513_v53 = vmul.f32 %v3754_v6, %v1283_v45 }
 0x11c   : > { %v2981_v50 = vpack.c.bf16 %v1711_v42, %v1710_v40  ;;  %v3141_v51 = vpack.c.bf16 %v1775_v43, %v1774_v41  ;;  %v3391_v54 = vpop.f32.mrf.mxu0  ;;  %v3455_v55 = vpop.f32.mrf.mxu1  ;;  %v1586_v58 = vadd.f32 %v3761_v11, %v1451_v38  ;;  %v1650_v59 = vadd.f32 %v3761_v11, %v1515_v39 }
 0x11d   : > { %v2976_v56 = vpack.c.bf16 %v1709_v48, %v1708_v46  ;;  %v3136_v57 = vpack.c.bf16 %v1773_v49, %v1772_v47  ;;  %v1452_v60 = vmul.f32 %v3391_v54, %v3754_v6  ;;  %v1516_v61 = vmul.f32 %v3455_v55, %v3754_v6 }
 0x11e   : > { %3237 = vst [vmem:[%s3784_s6 + $0x78] sm:$0xff] %v2981_v50   ;;  %3269 = vst [vmem:[%s3784_s6 + $0x178] sm:$0xff] %v3141_v51   ;;  %v1030_v62 = vpop.f32.mrf.mxu0  ;;  %v1286_v63 = vpop.f32.mrf.mxu1  ;;  %v1584_v0 = vadd.f32 %v3761_v11, %v1449_v52  ;;  %v1648_v1 = vadd.f32 %v3761_v11, %v1513_v53  ;;  %v1714_v9 = vmax.f32 %v1586_v58, 0.0  ;;  %v1778_v10 = vmax.f32 %v1650_v59, 0.0 }
 0x11f   : > { %3236 = vst [vmem:[%s3784_s6 + $0x70] sm:$0xff] %v2976_v56   ;;  %3268 = vst [vmem:[%s3784_s6 + $0x170] sm:$0xff] %v3136_v57   ;;  %v1450_v2 = vmul.f32 %v3754_v6, %v1030_v62  ;;  %v1514_v3 = vmul.f32 %v3754_v6, %v1286_v63  ;;  %v1587_v4 = vadd.f32 %v3761_v11, %v1452_v60 }
 0x120   : > { %v1651_v5 = vadd.f32 %v3761_v11, %v1516_v61  ;;  %v3394_v7 = vpop.f32.mrf.mxu0  ;;  %v3458_v8 = vpop.f32.mrf.mxu1  ;;  %v1712_v20 = vmax.f32 %v1584_v0, 0.0  ;;  %v1776_v21 = vmax.f32 %v1648_v1, 0.0 }
 0x121   : > { %v1585_v12 = vadd.f32 %v3761_v11, %v1450_v2  ;;  %v1649_v13 = vadd.f32 %v3761_v11, %v1514_v3  ;;  %v1715_v14 = vmax.f32 %v1587_v4, 0.0  ;;  %v1455_v16 = vmul.f32 %v3394_v7, %v3754_v6 }
 0x122   : > { %v1779_v15 = vmax.f32 %v1651_v5, 0.0  ;;  %v1519_v17 = vmul.f32 %v3458_v8, %v3754_v6  ;;  %v1043_v18 = vpop.f32.mrf.mxu0  ;;  %v1299_v19 = vpop.f32.mrf.mxu1 }
 0x123   : > { %v1713_v22 = vmax.f32 %v1585_v12, 0.0  ;;  %v1777_v23 = vmax.f32 %v1649_v13, 0.0  ;;  %v2991_v24 = vpack.c.bf16 %v1715_v14, %v1714_v9  ;;  %v1453_v26 = vmul.f32 %v3754_v6, %v1043_v18 }
 0x124   : > { %v3151_v25 = vpack.c.bf16 %v1779_v15, %v1778_v10  ;;  %v1517_v27 = vmul.f32 %v3754_v6, %v1299_v19  ;;  %v3395_v28 = vpop.f32.mrf.mxu0  ;;  %v3459_v29 = vpop.f32.mrf.mxu1  ;;  %v1590_v32 = vadd.f32 %v3761_v11, %v1455_v16  ;;  %v1654_v33 = vadd.f32 %v3761_v11, %v1519_v17 }
 0x125   : > { %v2986_v30 = vpack.c.bf16 %v1713_v22, %v1712_v20  ;;  %v3146_v31 = vpack.c.bf16 %v1777_v23, %v1776_v21  ;;  %3239 = vst [vmem:[%s3784_s6 + $0x88] sm:$0xff] %v2991_v24   ;;  %v1456_v34 = vmul.f32 %v3395_v28, %v3754_v6  ;;  %v1520_v35 = vmul.f32 %v3459_v29, %v3754_v6 }
 0x126   : > { %3271 = vst [vmem:[%s3784_s6 + $0x188] sm:$0xff] %v3151_v25   ;;  %v1046_v36 = vpop.f32.mrf.mxu0  ;;  %v1302_v37 = vpop.f32.mrf.mxu1  ;;  %v1588_v38 = vadd.f32 %v3761_v11, %v1453_v26  ;;  %v1652_v39 = vadd.f32 %v3761_v11, %v1517_v27  ;;  %v1718_v50 = vmax.f32 %v1590_v32, 0.0  ;;  %v1782_v51 = vmax.f32 %v1654_v33, 0.0 }
 0x127   : > { %3238 = vst [vmem:[%s3784_s6 + $0x80] sm:$0xff] %v2986_v30   ;;  %3270 = vst [vmem:[%s3784_s6 + $0x180] sm:$0xff] %v3146_v31   ;;  %v1454_v40 = vmul.f32 %v3754_v6, %v1046_v36  ;;  %v1518_v41 = vmul.f32 %v3754_v6, %v1302_v37  ;;  %v1591_v42 = vadd.f32 %v3761_v11, %v1456_v34 }
 0x128   : > { %v1655_v43 = vadd.f32 %v3761_v11, %v1520_v35  ;;  %v3398_v44 = vpop.f32.mrf.mxu0  ;;  %v3462_v45 = vpop.f32.mrf.mxu1  ;;  %v1716_v56 = vmax.f32 %v1588_v38, 0.0  ;;  %v1780_v57 = vmax.f32 %v1652_v39, 0.0 }
 0x129   : > { %v1589_v46 = vadd.f32 %v3761_v11, %v1454_v40  ;;  %v1653_v47 = vadd.f32 %v3761_v11, %v1518_v41  ;;  %v1459_v48 = vmul.f32 %v3398_v44, %v3754_v6  ;;  %v1523_v49 = vmul.f32 %v3462_v45, %v3754_v6 }
 0x12a   : > { %v1719_v52 = vmax.f32 %v1591_v42, 0.0  ;;  %v1783_v53 = vmax.f32 %v1655_v43, 0.0  ;;  %v1059_v54 = vpop.f32.mrf.mxu0  ;;  %v1315_v55 = vpop.f32.mrf.mxu1 }
 0x12b   : > { %v1717_v58 = vmax.f32 %v1589_v46, 0.0  ;;  %v1781_v59 = vmax.f32 %v1653_v47, 0.0  ;;  %v1457_v62 = vmul.f32 %v3754_v6, %v1059_v54  ;;  %v1521_v63 = vmul.f32 %v3754_v6, %v1315_v55 }
 0x12c   : > { %v3001_v60 = vpack.c.bf16 %v1719_v52, %v1718_v50  ;;  %v3161_v61 = vpack.c.bf16 %v1783_v53, %v1782_v51  ;;  %v3399_v0 = vpop.f32.mrf.mxu0  ;;  %v3463_v1 = vpop.f32.mrf.mxu1  ;;  %v1594_v4 = vadd.f32 %v3761_v11, %v1459_v48  ;;  %v1658_v5 = vadd.f32 %v3761_v11, %v1523_v49 }
 0x12d   : > { %v2996_v2 = vpack.c.bf16 %v1717_v58, %v1716_v56  ;;  %v3156_v3 = vpack.c.bf16 %v1781_v59, %v1780_v57  ;;  %v1460_v7 = vmul.f32 %v3399_v0, %v3754_v6  ;;  %v1524_v8 = vmul.f32 %v3463_v1, %v3754_v6 }
 0x12e   : > { %3241 = vst [vmem:[%s3784_s6 + $0x98] sm:$0xff] %v3001_v60   ;;  %3273 = vst [vmem:[%s3784_s6 + $0x198] sm:$0xff] %v3161_v61   ;;  %v1062_v9 = vpop.f32.mrf.mxu0  ;;  %v1318_v10 = vpop.f32.mrf.mxu1  ;;  %v1592_v12 = vadd.f32 %v3761_v11, %v1457_v62  ;;  %v1656_v13 = vadd.f32 %v3761_v11, %v1521_v63  ;;  %v1722_v20 = vmax.f32 %v1594_v4, 0.0  ;;  %v1786_v21 = vmax.f32 %v1658_v5, 0.0 }
 0x12f   : > { %3240 = vst [vmem:[%s3784_s6 + $0x90] sm:$0xff] %v2996_v2   ;;  %3272 = vst [vmem:[%s3784_s6 + $0x190] sm:$0xff] %v3156_v3   ;;  %v1458_v14 = vmul.f32 %v3754_v6, %v1062_v9  ;;  %v1522_v15 = vmul.f32 %v3754_v6, %v1318_v10  ;;  %v1595_v16 = vadd.f32 %v3761_v11, %v1460_v7 }
 0x130   : > { %v1659_v17 = vadd.f32 %v3761_v11, %v1524_v8  ;;  %v3402_v18 = vpop.f32.mrf.mxu0  ;;  %v3466_v19 = vpop.f32.mrf.mxu1  ;;  %v1720_v30 = vmax.f32 %v1592_v12, 0.0  ;;  %v1784_v31 = vmax.f32 %v1656_v13, 0.0 }
 0x131   : > { %v1593_v22 = vadd.f32 %v3761_v11, %v1458_v14  ;;  %v1657_v23 = vadd.f32 %v3761_v11, %v1522_v15  ;;  %v1723_v24 = vmax.f32 %v1595_v16, 0.0  ;;  %v1463_v26 = vmul.f32 %v3402_v18, %v3754_v6 }
 0x132   : > { %v1787_v25 = vmax.f32 %v1659_v17, 0.0  ;;  %v1527_v27 = vmul.f32 %v3466_v19, %v3754_v6  ;;  %v1075_v28 = vpop.f32.mrf.mxu0  ;;  %v1331_v29 = vpop.f32.mrf.mxu1 }
 0x133   : > { %v1721_v32 = vmax.f32 %v1593_v22, 0.0  ;;  %v1785_v33 = vmax.f32 %v1657_v23, 0.0  ;;  %v3011_v34 = vpack.c.bf16 %v1723_v24, %v1722_v20  ;;  %v1461_v36 = vmul.f32 %v3754_v6, %v1075_v28 }
 0x134   : > { %v3171_v35 = vpack.c.bf16 %v1787_v25, %v1786_v21  ;;  %v1525_v37 = vmul.f32 %v3754_v6, %v1331_v29  ;;  %v3403_v38 = vpop.f32.mrf.mxu0  ;;  %v3467_v39 = vpop.f32.mrf.mxu1  ;;  %v1598_v42 = vadd.f32 %v3761_v11, %v1463_v26  ;;  %v1662_v43 = vadd.f32 %v3761_v11, %v1527_v27 }
 0x135   : > { %v3006_v40 = vpack.c.bf16 %v1721_v32, %v1720_v30  ;;  %v3166_v41 = vpack.c.bf16 %v1785_v33, %v1784_v31  ;;  %3243 = vst [vmem:[%s3784_s6 + $0xa8] sm:$0xff] %v3011_v34   ;;  %v1464_v44 = vmul.f32 %v3403_v38, %v3754_v6  ;;  %v1528_v45 = vmul.f32 %v3467_v39, %v3754_v6 }
 0x136   : > { %3275 = vst [vmem:[%s3784_s6 + $0x1a8] sm:$0xff] %v3171_v35   ;;  %v1078_v46 = vpop.f32.mrf.mxu0  ;;  %v1334_v47 = vpop.f32.mrf.mxu1  ;;  %v1596_v48 = vadd.f32 %v3761_v11, %v1461_v36  ;;  %v1660_v49 = vadd.f32 %v3761_v11, %v1525_v37  ;;  %v1726_v60 = vmax.f32 %v1598_v42, 0.0  ;;  %v1790_v61 = vmax.f32 %v1662_v43, 0.0  ;;  %v4027_v36 = vld [vmem:[%s4103_s2] ss:$0 sm:$0xff] }
 0x137   : > { %3242 = vst [vmem:[%s3784_s6 + $0xa0] sm:$0xff] %v3006_v40   ;;  %3274 = vst [vmem:[%s3784_s6 + $0x1a0] sm:$0xff] %v3166_v41   ;;  %v1462_v50 = vmul.f32 %v3754_v6, %v1078_v46  ;;  %v1526_v51 = vmul.f32 %v3754_v6, %v1334_v47  ;;  %v1599_v52 = vadd.f32 %v3761_v11, %v1464_v44 }
 0x138   : > { %v1663_v53 = vadd.f32 %v3761_v11, %v1528_v45  ;;  %v3406_v54 = vpop.f32.mrf.mxu0  ;;  %v3470_v55 = vpop.f32.mrf.mxu1  ;;  %v1724_v2 = vmax.f32 %v1596_v48, 0.0  ;;  %v1788_v3 = vmax.f32 %v1660_v49, 0.0 }
 0x139   : > { %v1597_v56 = vadd.f32 %v3761_v11, %v1462_v50  ;;  %v1661_v57 = vadd.f32 %v3761_v11, %v1526_v51  ;;  %v1467_v58 = vmul.f32 %v3406_v54, %v3754_v6  ;;  %v1531_v59 = vmul.f32 %v3470_v55, %v3754_v6  ;;  %v4038_v51 = vld [vmem:[%s4104_s3] ss:$0 sm:$0xff] }
 0x13a   : > { %v1727_v62 = vmax.f32 %v1599_v52, 0.0  ;;  %v1791_v63 = vmax.f32 %v1663_v53, 0.0  ;;  %v1091_v0 = vpop.f32.mrf.mxu0  ;;  %v1347_v1 = vpop.f32.mrf.mxu1 }
 0x13b   : > { %v1725_v4 = vmax.f32 %v1597_v56, 0.0  ;;  %v1789_v5 = vmax.f32 %v1661_v57, 0.0  ;;  %v1465_v9 = vmul.f32 %v3754_v6, %v1091_v0  ;;  %v1529_v10 = vmul.f32 %v3754_v6, %v1347_v1 }
 0x13c   : > { %v3021_v7 = vpack.c.bf16 %v1727_v62, %v1726_v60  ;;  %v3181_v8 = vpack.c.bf16 %v1791_v63, %v1790_v61  ;;  %v3407_v12 = vpop.f32.mrf.mxu0  ;;  %v3471_v13 = vpop.f32.mrf.mxu1  ;;  %v1602_v16 = vadd.f32 %v3761_v11, %v1467_v58  ;;  %v1666_v17 = vadd.f32 %v3761_v11, %v1531_v59 }
 0x13d   : > { %v3016_v14 = vpack.c.bf16 %v1725_v4, %v1724_v2  ;;  %v3176_v15 = vpack.c.bf16 %v1789_v5, %v1788_v3  ;;  %v1468_v18 = vmul.f32 %v3407_v12, %v3754_v6  ;;  %v1532_v19 = vmul.f32 %v3471_v13, %v3754_v6 }
 0x13e   : > { %3245 = vst [vmem:[%s3784_s6 + $0xb8] sm:$0xff] %v3021_v7   ;;  %3277 = vst [vmem:[%s3784_s6 + $0x1b8] sm:$0xff] %v3181_v8   ;;  %v1094_v20 = vpop.f32.mrf.mxu0  ;;  %v1350_v21 = vpop.f32.mrf.mxu1  ;;  %v1600_v22 = vadd.f32 %v3761_v11, %v1465_v9  ;;  %v1664_v23 = vadd.f32 %v3761_v11, %v1529_v10  ;;  %v1730_v30 = vmax.f32 %v1602_v16, 0.0  ;;  %v1794_v31 = vmax.f32 %v1666_v17, 0.0 }
 0x13f   : > { %3244 = vst [vmem:[%s3784_s6 + $0xb0] sm:$0xff] %v3016_v14   ;;  %3276 = vst [vmem:[%s3784_s6 + $0x1b0] sm:$0xff] %v3176_v15   ;;  %v1466_v24 = vmul.f32 %v3754_v6, %v1094_v20  ;;  %v1530_v25 = vmul.f32 %v3754_v6, %v1350_v21  ;;  %v1603_v26 = vadd.f32 %v3761_v11, %v1468_v18 }
 0x140   : > { %v1667_v27 = vadd.f32 %v3761_v11, %v1532_v19  ;;  %v3410_v28 = vpop.f32.mrf.mxu0  ;;  %v3474_v29 = vpop.f32.mrf.mxu1  ;;  %v1728_v40 = vmax.f32 %v1600_v22, 0.0  ;;  %v1792_v41 = vmax.f32 %v1664_v23, 0.0 }
 0x141   : > { %v1601_v32 = vadd.f32 %v3761_v11, %v1466_v24  ;;  %v1665_v33 = vadd.f32 %v3761_v11, %v1530_v25  ;;  %v1731_v34 = vmax.f32 %v1603_v26, 0.0  ;;  %v1471_v6 = vmul.f32 %v4027_v36, %v3410_v28 }
 0x142   : > { %v1795_v35 = vmax.f32 %v1667_v27, 0.0  ;;  %v1535_v37 = vmul.f32 %v4027_v36, %v3474_v29  ;;  %v1107_v38 = vpop.f32.mrf.mxu0  ;;  %v1363_v39 = vpop.f32.mrf.mxu1 }
 0x143   : > { %v1729_v42 = vmax.f32 %v1601_v32, 0.0  ;;  %v1793_v43 = vmax.f32 %v1665_v33, 0.0  ;;  %v3031_v11 = vpack.c.bf16 %v1731_v34, %v1730_v30  ;;  %v1469_v45 = vmul.f32 %v4027_v36, %v1107_v38 }
 0x144   : > { %v3191_v44 = vpack.c.bf16 %v1795_v35, %v1794_v31  ;;  %v1533_v46 = vmul.f32 %v4027_v36, %v1363_v39  ;;  %v3411_v47 = vpop.f32.mrf.mxu0  ;;  %v3475_v48 = vpop.f32.mrf.mxu1  ;;  %v1606_v52 = vadd.f32 %v4038_v51, %v1471_v6  ;;  %v1670_v53 = vadd.f32 %v4038_v51, %v1535_v37 }
 0x145   : > { %v3026_v49 = vpack.c.bf16 %v1729_v42, %v1728_v40  ;;  %v3186_v50 = vpack.c.bf16 %v1793_v43, %v1792_v41  ;;  %3247 = vst [vmem:[%s3784_s6 + $0xc8] sm:$0xff] %v3031_v11   ;;  %v1472_v54 = vmul.f32 %v4027_v36, %v3411_v47  ;;  %v1536_v55 = vmul.f32 %v4027_v36, %v3475_v48 }
 0x146   : > { %3279 = vst [vmem:[%s3784_s6 + $0x1c8] sm:$0xff] %v3191_v44   ;;  %v1110_v56 = vpop.f32.mrf.mxu0  ;;  %v1366_v57 = vpop.f32.mrf.mxu1  ;;  %v1604_v58 = vadd.f32 %v4038_v51, %v1469_v45  ;;  %v1668_v59 = vadd.f32 %v4038_v51, %v1533_v46  ;;  %v1734_v7 = vmax.f32 %v1606_v52, 0.0  ;;  %v1798_v8 = vmax.f32 %v1670_v53, 0.0 }
 0x147   : > { %3246 = vst [vmem:[%s3784_s6 + $0xc0] sm:$0xff] %v3026_v49   ;;  %3278 = vst [vmem:[%s3784_s6 + $0x1c0] sm:$0xff] %v3186_v50   ;;  %v1470_v60 = vmul.f32 %v4027_v36, %v1110_v56  ;;  %v1534_v61 = vmul.f32 %v4027_v36, %v1366_v57  ;;  %v1607_v62 = vadd.f32 %v4038_v51, %v1472_v54 }
 0x148   : > { %v1671_v63 = vadd.f32 %v4038_v51, %v1536_v55  ;;  %v3414_v0 = vpop.f32.mrf.mxu0  ;;  %v3478_v1 = vpop.f32.mrf.mxu1  ;;  %v1732_v14 = vmax.f32 %v1604_v58, 0.0  ;;  %v1796_v15 = vmax.f32 %v1668_v59, 0.0 }
 0x149   : > { %v1605_v2 = vadd.f32 %v4038_v51, %v1470_v60  ;;  %v1669_v3 = vadd.f32 %v4038_v51, %v1534_v61  ;;  %v1475_v4 = vmul.f32 %v4027_v36, %v3414_v0  ;;  %v1539_v5 = vmul.f32 %v4027_v36, %v3478_v1 }
 0x14a   : > { %v1735_v9 = vmax.f32 %v1607_v62, 0.0  ;;  %v1799_v10 = vmax.f32 %v1671_v63, 0.0  ;;  %v1123_v12 = vpop.f32.mrf.mxu0  ;;  %v1379_v13 = vpop.f32.mrf.mxu1 }
 0x14b   : > { %v1733_v16 = vmax.f32 %v1605_v2, 0.0  ;;  %v1797_v17 = vmax.f32 %v1669_v3, 0.0  ;;  %v1473_v20 = vmul.f32 %v4027_v36, %v1123_v12  ;;  %v1537_v21 = vmul.f32 %v4027_v36, %v1379_v13 }
 0x14c   : > { %v3041_v18 = vpack.c.bf16 %v1735_v9, %v1734_v7  ;;  %v3201_v19 = vpack.c.bf16 %v1799_v10, %v1798_v8  ;;  %v3415_v22 = vpop.f32.mrf.mxu0  ;;  %v3479_v23 = vpop.f32.mrf.mxu1  ;;  %v1610_v26 = vadd.f32 %v4038_v51, %v1475_v4  ;;  %v1674_v27 = vadd.f32 %v4038_v51, %v1539_v5 }
 0x14d   : > { %v3036_v24 = vpack.c.bf16 %v1733_v16, %v1732_v14  ;;  %v3196_v25 = vpack.c.bf16 %v1797_v17, %v1796_v15  ;;  %v1476_v28 = vmul.f32 %v4027_v36, %v3415_v22  ;;  %v1540_v29 = vmul.f32 %v4027_v36, %v3479_v23 }
 0x14e   : > { %3249 = vst [vmem:[%s3784_s6 + $0xd8] sm:$0xff] %v3041_v18   ;;  %3281 = vst [vmem:[%s3784_s6 + $0x1d8] sm:$0xff] %v3201_v19   ;;  %v1126_v30 = vpop.f32.mrf.mxu0  ;;  %v1382_v31 = vpop.f32.mrf.mxu1  ;;  %v1608_v32 = vadd.f32 %v4038_v51, %v1473_v20  ;;  %v1672_v33 = vadd.f32 %v4038_v51, %v1537_v21  ;;  %v1738_v40 = vmax.f32 %v1610_v26, 0.0  ;;  %v1802_v41 = vmax.f32 %v1674_v27, 0.0 }
 0x14f   : > { %3248 = vst [vmem:[%s3784_s6 + $0xd0] sm:$0xff] %v3036_v24   ;;  %3280 = vst [vmem:[%s3784_s6 + $0x1d0] sm:$0xff] %v3196_v25   ;;  %v1474_v34 = vmul.f32 %v4027_v36, %v1126_v30  ;;  %v1538_v35 = vmul.f32 %v4027_v36, %v1382_v31  ;;  %v1611_v6 = vadd.f32 %v4038_v51, %v1476_v28 }
 0x150   : > { %v1675_v37 = vadd.f32 %v4038_v51, %v1540_v29  ;;  %v3418_v38 = vpop.f32.mrf.mxu0  ;;  %v3482_v39 = vpop.f32.mrf.mxu1  ;;  %v1736_v49 = vmax.f32 %v1608_v32, 0.0  ;;  %v1800_v50 = vmax.f32 %v1672_v33, 0.0 }
 0x151   : > { %v1609_v42 = vadd.f32 %v4038_v51, %v1474_v34  ;;  %v1673_v43 = vadd.f32 %v4038_v51, %v1538_v35  ;;  %v1739_v11 = vmax.f32 %v1611_v6, 0.0  ;;  %v1479_v45 = vmul.f32 %v4027_v36, %v3418_v38 }
 0x152   : > { %v1803_v44 = vmax.f32 %v1675_v37, 0.0  ;;  %v1543_v46 = vmul.f32 %v4027_v36, %v3482_v39  ;;  %v1139_v47 = vpop.f32.mrf.mxu0  ;;  %v1395_v48 = vpop.f32.mrf.mxu1 }
 0x153   : > { %v1737_v52 = vmax.f32 %v1609_v42, 0.0  ;;  %v1801_v53 = vmax.f32 %v1673_v43, 0.0  ;;  %v3051_v54 = vpack.c.bf16 %v1739_v11, %v1738_v40  ;;  %v1477_v56 = vmul.f32 %v4027_v36, %v1139_v47 }
 0x154   : > { %v3211_v55 = vpack.c.bf16 %v1803_v44, %v1802_v41  ;;  %v1541_v57 = vmul.f32 %v4027_v36, %v1395_v48  ;;  %v3419_v58 = vpop.f32.mrf.mxu0  ;;  %v3483_v59 = vpop.f32.mrf.mxu1  ;;  %v1614_v62 = vadd.f32 %v4038_v51, %v1479_v45  ;;  %v1678_v63 = vadd.f32 %v4038_v51, %v1543_v46 }
 0x155   : > { %v3046_v60 = vpack.c.bf16 %v1737_v52, %v1736_v49  ;;  %v3206_v61 = vpack.c.bf16 %v1801_v53, %v1800_v50  ;;  %3251 = vst [vmem:[%s3784_s6 + $0xe8] sm:$0xff] %v3051_v54   ;;  %v1480_v0 = vmul.f32 %v4027_v36, %v3419_v58  ;;  %v1544_v1 = vmul.f32 %v4027_v36, %v3483_v59 }
 0x156   : > { %3283 = vst [vmem:[%s3784_s6 + $0x1e8] sm:$0xff] %v3211_v55   ;;  %v1142_v2 = vpop.f32.mrf.mxu0  ;;  %v1398_v3 = vpop.f32.mrf.mxu1  ;;  %v1612_v4 = vadd.f32 %v4038_v51, %v1477_v56  ;;  %v1676_v5 = vadd.f32 %v4038_v51, %v1541_v57  ;;  %v1742_v14 = vmax.f32 %v1614_v62, 0.0  ;;  %v1806_v15 = vmax.f32 %v1678_v63, 0.0 }
 0x157   : > { %3250 = vst [vmem:[%s3784_s6 + $0xe0] sm:$0xff] %v3046_v60   ;;  %3282 = vst [vmem:[%s3784_s6 + $0x1e0] sm:$0xff] %v3206_v61   ;;  %v1478_v7 = vmul.f32 %v4027_v36, %v1142_v2  ;;  %v1542_v8 = vmul.f32 %v4027_v36, %v1398_v3  ;;  %v1615_v9 = vadd.f32 %v4038_v51, %v1480_v0 }
 0x158   : > { %v1679_v10 = vadd.f32 %v4038_v51, %v1544_v1  ;;  %v1740_v18 = vmax.f32 %v1612_v4, 0.0  ;;  %v1804_v19 = vmax.f32 %v1676_v5, 0.0 }
 0x159   : > { %v1613_v12 = vadd.f32 %v4038_v51, %v1478_v7  ;;  %v1677_v13 = vadd.f32 %v4038_v51, %v1542_v8  ;;  %v1743_v16 = vmax.f32 %v1615_v9, 0.0 }
 0x15a   : > { %v1807_v17 = vmax.f32 %v1679_v10, 0.0 }
 0x15b   : > { %v1741_v20 = vmax.f32 %v1613_v12, 0.0  ;;  %v1805_v36 = vmax.f32 %v1677_v13, 0.0  ;;  %v3061_v21 = vpack.c.bf16 %v1743_v16, %v1742_v14 }
 0x15c   : > { %v3221_v22 = vpack.c.bf16 %v1807_v17, %v1806_v15 }
 0x15d   : > { %v3056_v23 = vpack.c.bf16 %v1741_v20, %v1740_v18  ;;  %v3216_v24 = vpack.c.bf16 %v1805_v36, %v1804_v19  ;;  %3253 = vst [vmem:[%s3784_s6 + $0xf8] sm:$0xff] %v3061_v21  }
 0x15e   : > { %3285 = vst [vmem:[%s3784_s6 + $0x1f8] sm:$0xff] %v3221_v22  }
 0x15f   : > { %3252 = vst [vmem:[%s3784_s6 + $0xf0] sm:$0xff] %v3056_v23   ;;  %3284 = vst [vmem:[%s3784_s6 + $0x1f0] sm:$0xff] %v3216_v24  }
 0x160 PF: > { %s14_s15 = sadd.s32 1, %s3571_s15  }
 0x161   : > { %p11_p4 = scmp.ge.s32.totalorder %s14_s15, 4  }
 0x163   :  { %13 = sbr.rel (!%p11_p4) target bundleno = 1 (0x1), region = 66 }

// kernel: svgg11_forward.10
= control target key start
LH: loop header
LB: loop body
LE: loop exit
PB: predicated region body
PF: predicated region fallthrough
CT: control target
= control target key end

     0   :  { %s1236_s15 = smov 0   ;;  %s1401_s0 = inlined_call_operand.vmem [shape: bf16[512,72], index: 0, kind: input, shape index: {}]   ;;  %s1402_s1 = inlined_call_operand.vmem [shape: bf16[72,128], index: 1, kind: input, shape index: {}]   ;;  %s1403_s2 = inlined_call_operand.vmem [shape: f32[1,128], index: 2, kind: input, shape index: {}]   ;;  %s1404_s3 = inlined_call_operand.vmem [shape: f32[1,128], index: 3, kind: input, shape index: {}]   ;;  %s1405_s4 = inlined_call_operand.vmem [shape: bf16[512,128], index: 4, kind: output, shape index: {}]  }
   0x1 LB: > { %s890_s16 = sadd.s32 4294967295, %s1209_s15   ;;  %p894_p0 = scmp.ge.s32.totalorder %s1209_s15, 1  ;;  %s1209_s15 = sphi %s1236_s15, %s14_s15  }
   0x2   : > { %p163_p1 = scmp.lt.s32.totalorder %s1209_s15, 3 }
   0x4   : > { %p164_p2 = pnand %p894_p0, %p163_p1 }
   0x5   : > { %s895_s21 = sshll.u32 (!%p164_p2), %s890_s16, 5 }
   0x6   : > { %167 = sbr.rel (%p164_p2) target bundleno = 264 (0x108), region = 36  ;;  %p190_p3 = scmp.lt.s32.totalorder (!%p164_p2), %s895_s21, 63 }
   0xb   : > { %v1182_v0 = vld [vmem:[%s1402_s1 + $0x20] ss:$0 sps:$4 sm:$0xff]   ;;  %vm399_vm0 = vcmask 1043456   ;;  %v1183_v1 = vld [vmem:[%s1402_s1 + $0x18] sm:$0xff]   ;;  %v1184_v3 = vld [vmem:[%s1402_s1 + $0x10] sm:$0xff]   ;;  %s1407_s21 = smov (!%p190_p3, %s895_s21), 63 }
   0xc   : > { %1172 = vmatprep.subr.msk.bf16.mxu0 %vm399_vm0, %v1182_v0  ;;  %1173 = vmatprep.subr.msk.bf16.mxu1 %vm399_vm0, %v1182_v0  ;;  %v401_v2 = vsel %vm399_vm0, %v1182_v0, 0  ;;  %v1185_v4 = vld [vmem:[%s1402_s1 + $0x8] sm:$0xff]   ;;  %s896_s26 = sshll.u32 %s1407_s21, 2  ;;  %vm350_vm1 = vcmask 588800   ;;  %v1186_v7 = vld [vmem:[%s1402_s1] sm:$0xff]  }
   0xd   : > { %1121 = vmatpush3.bf16.msra.mxu0 %v401_v2  ;;  %1167 = vmatpush3.bf16.msra.mxu1 %v401_v2  ;;  %s1264_s29 = scalar_lea.vmem %s1401_s0, %s896_s26  ;;  %v1304_v22 = vld [vmem:[%s1403_s2] ss:$0 sm:$0xff]  ;;  %s1334_s12 = scalar_lea.vmem %s1405_s4, %s896_s26 }
   0xe   : > { %1122 = vmatprep.subr.bf16.mxu0 %v1183_v1  ;;  %1163 = vmatprep.subr.bf16.mxu1 %v1183_v1  ;;  %v1187_v5 = vld [vmem:[%s1264_s29] sm:$0xff]   ;;  %v1189_v8 = vld [vmem:[%s1264_s29 + $0x8] sm:$0xff]   ;;  %v1191_v10 = vld [vmem:[%s1264_s29 + $0x10] sm:$0xff]  }
   0xf   : > { %v1188_v6 = vld [vmem:[%s1264_s29 + $0x40] sm:$0xff]   ;;  %1130 = vmatprep.mubr.msk.bf16.mxu0 %vm350_vm1, %v1187_v5  ;;  %v1190_v9 = vld [vmem:[%s1264_s29 + $0x48] sm:$0xff]   ;;  %v1192_v11 = vld [vmem:[%s1264_s29 + $0x50] sm:$0xff]  }
  0x10   : > { %1146 = vmatprep.mubr.msk.bf16.mxu1 %vm350_vm1, %v1188_v6  ;;  %v1193_v12 = vld [vmem:[%s1264_s29 + $0x18] sm:$0xff]   ;;  %v1195_v14 = vld [vmem:[%s1264_s29 + $0x20] sm:$0xff]   ;;  %v1197_v16 = vld [vmem:[%s1264_s29 + $0x28] sm:$0xff]  }
  0x11   : > { %1123 = vmatpush3.bf16.msra.mxu0 %v1183_v1  ;;  %1168 = vmatpush3.bf16.msra.mxu1 %v1183_v1  ;;  %v1194_v13 = vld [vmem:[%s1264_s29 + $0x58] sm:$0xff]   ;;  %v1196_v15 = vld [vmem:[%s1264_s29 + $0x60] sm:$0xff]   ;;  %v1198_v17 = vld [vmem:[%s1264_s29 + $0x68] sm:$0xff]  }
  0x12   : > { %1124 = vmatprep.subr.bf16.mxu0 %v1184_v3  ;;  %1164 = vmatprep.subr.bf16.mxu1 %v1184_v3  ;;  %v1199_v18 = vld [vmem:[%s1264_s29 + $0x30] sm:$0xff]   ;;  %v1201_v20 = vld [vmem:[%s1264_s29 + $0x38] sm:$0xff]   ;;  %v1311_v27 = vld [vmem:[%s1404_s3] ss:$0 sm:$0xff] }
  0x13   : > { %v1200_v19 = vld [vmem:[%s1264_s29 + $0x70] sm:$0xff]   ;;  %v1202_v21 = vld [vmem:[%s1264_s29 + $0x78] sm:$0xff]  }
  0x15   : > { %1125 = vmatpush3.bf16.msra.mxu0 %v1184_v3  ;;  %1169 = vmatpush3.bf16.msra.mxu1 %v1184_v3 }
  0x16   : > { %1126 = vmatprep.subr.bf16.mxu0 %v1185_v4  ;;  %1165 = vmatprep.subr.bf16.mxu1 %v1185_v4 }
  0x19   : > { %1127 = vmatpush3.bf16.msra.mxu0 %v1185_v4  ;;  %1170 = vmatpush3.bf16.msra.mxu1 %v1185_v4 }
  0x1a   : > { %1128 = vmatprep.subr.bf16.mxu0 %v1186_v7  ;;  %1166 = vmatprep.subr.bf16.mxu1 %v1186_v7 }
  0x1d   : > { %1129 = vmatpush3.bf16.msra.mxu0 %v1186_v7  ;;  %1171 = vmatpush3.bf16.msra.mxu1 %v1186_v7 }
  0x20   : > { %1131 = vmatmul.mubr.msk.bf16.vlgmr.msra.gmra.mxu0 %vm350_vm1, %v1189_v8  ;;  %1147 = vmatmul.mubr.msk.bf16.vlgmr.msra.gmra.mxu1 %vm350_vm1, %v1190_v9 }
  0x21   : > { %1134 = vmatprep.mubr.msk.bf16.mxu0 %vm350_vm1, %v1191_v10  ;;  %1150 = vmatprep.mubr.msk.bf16.mxu1 %vm350_vm1, %v1192_v11 }
  0x28   : > { %1135 = vmatmul.mubr.msk.bf16.gmra.mxu0 %vm350_vm1, %v1193_v12  ;;  %1151 = vmatmul.mubr.msk.bf16.gmra.mxu1 %vm350_vm1, %v1194_v13 }
  0x29   : > { %1138 = vmatprep.mubr.msk.bf16.mxu0 %vm350_vm1, %v1195_v14  ;;  %1154 = vmatprep.mubr.msk.bf16.mxu1 %vm350_vm1, %v1196_v15 }
  0x30   : > { %1139 = vmatmul.mubr.msk.bf16.gmra.mxu0 %vm350_vm1, %v1197_v16  ;;  %1155 = vmatmul.mubr.msk.bf16.gmra.mxu1 %vm350_vm1, %v1198_v17 }
  0x31   : > { %1142 = vmatprep.mubr.msk.bf16.mxu0 %vm350_vm1, %v1199_v18  ;;  %1158 = vmatprep.mubr.msk.bf16.mxu1 %vm350_vm1, %v1200_v19 }
  0x38   : > { %1143 = vmatmul.mubr.msk.bf16.gmra.mxu0 %vm350_vm1, %v1201_v20  ;;  %1159 = vmatmul.mubr.msk.bf16.gmra.mxu1 %vm350_vm1, %v1202_v21 }
  0xe0   : > { %v1132_v23 = vpop.f32.mrf.mxu0  ;;  %v1148_v24 = vpop.f32.mrf.mxu1 }
  0xe1   : > { %v573_v25 = vmul.f32 %v1132_v23, %v1304_v22  ;;  %v589_v26 = vmul.f32 %v1148_v24, %v1304_v22 }
  0xe2   : > { %v437_v28 = vpop.f32.mrf.mxu0  ;;  %v501_v29 = vpop.f32.mrf.mxu1 }
  0xe3   : > { %v571_v30 = vmul.f32 %v1304_v22, %v437_v28  ;;  %v587_v31 = vmul.f32 %v1304_v22, %v501_v29  ;;  %v612_v34 = vadd.f32 %v1311_v27, %v573_v25  ;;  %v628_v35 = vadd.f32 %v1311_v27, %v589_v26 }
  0xe4   : > { %v1133_v32 = vpop.f32.mrf.mxu0  ;;  %v1149_v33 = vpop.f32.mrf.mxu1 }
  0xe5   : > { %v574_v36 = vmul.f32 %v1133_v32, %v1304_v22  ;;  %v590_v37 = vmul.f32 %v1149_v33, %v1304_v22  ;;  %v610_v40 = vadd.f32 %v1311_v27, %v571_v30  ;;  %v626_v41 = vadd.f32 %v1311_v27, %v587_v31 }
  0xe6   : > { %v440_v38 = vpop.f32.mrf.mxu0  ;;  %v504_v39 = vpop.f32.mrf.mxu1  ;;  %v644_v48 = vmax.f32 %v612_v34, 0.0  ;;  %v660_v49 = vmax.f32 %v628_v35, 0.0 }
  0xe7   : > { %v572_v42 = vmul.f32 %v1304_v22, %v440_v38  ;;  %v588_v43 = vmul.f32 %v1304_v22, %v504_v39  ;;  %v613_v44 = vadd.f32 %v1311_v27, %v574_v36  ;;  %v629_v45 = vadd.f32 %v1311_v27, %v590_v37 }
  0xe8   : > { %v1136_v46 = vpop.f32.mrf.mxu0  ;;  %v1152_v47 = vpop.f32.mrf.mxu1  ;;  %v642_v58 = vmax.f32 %v610_v40, 0.0  ;;  %v658_v59 = vmax.f32 %v626_v41, 0.0 }
  0xe9   : > { %v611_v50 = vadd.f32 %v1311_v27, %v572_v42  ;;  %v627_v51 = vadd.f32 %v1311_v27, %v588_v43  ;;  %v645_v52 = vmax.f32 %v613_v44, 0.0  ;;  %v661_v53 = vmax.f32 %v629_v45, 0.0 }
  0xea   : > { %v577_v54 = vmul.f32 %v1136_v46, %v1304_v22  ;;  %v593_v55 = vmul.f32 %v1152_v47, %v1304_v22  ;;  %v453_v56 = vpop.f32.mrf.mxu0  ;;  %v517_v57 = vpop.f32.mrf.mxu1 }
  0xeb   : > { %v643_v60 = vmax.f32 %v611_v50, 0.0  ;;  %v659_v61 = vmax.f32 %v627_v51, 0.0  ;;  %v1012_v62 = vpack.c.bf16 %v645_v52, %v644_v48  ;;  %v1052_v63 = vpack.c.bf16 %v661_v53, %v660_v49 }
  0xec   : > { %v575_v0 = vmul.f32 %v1304_v22, %v453_v56  ;;  %v591_v1 = vmul.f32 %v1304_v22, %v517_v57  ;;  %v1137_v2 = vpop.f32.mrf.mxu0  ;;  %v1153_v3 = vpop.f32.mrf.mxu1  ;;  %v616_v6 = vadd.f32 %v1311_v27, %v577_v54  ;;  %v632_v7 = vadd.f32 %v1311_v27, %v593_v55 }
  0xed   : > { %v1007_v4 = vpack.c.bf16 %v643_v60, %v642_v58  ;;  %v1047_v5 = vpack.c.bf16 %v659_v61, %v658_v59  ;;  %1084 = vst [vmem:[%s1334_s12 + $0x8] sm:$0xff] %v1012_v62   ;;  %1092 = vst [vmem:[%s1334_s12 + $0x48] sm:$0xff] %v1052_v63   ;;  %v578_v8 = vmul.f32 %v1137_v2, %v1304_v22 }
  0xee   : > { %v594_v9 = vmul.f32 %v1153_v3, %v1304_v22  ;;  %v456_v10 = vpop.f32.mrf.mxu0  ;;  %v520_v11 = vpop.f32.mrf.mxu1  ;;  %v614_v12 = vadd.f32 %v1311_v27, %v575_v0  ;;  %v630_v13 = vadd.f32 %v1311_v27, %v591_v1  ;;  %v648_v25 = vmax.f32 %v616_v6, 0.0 }
  0xef   : > { %1008 = vst [vmem:[%s1334_s12] sm:$0xff] %v1007_v4   ;;  %1091 = vst [vmem:[%s1334_s12 + $0x40] sm:$0xff] %v1047_v5   ;;  %v576_v14 = vmul.f32 %v1304_v22, %v456_v10  ;;  %v592_v15 = vmul.f32 %v1304_v22, %v520_v11  ;;  %v617_v16 = vadd.f32 %v1311_v27, %v578_v8  ;;  %v664_v26 = vmax.f32 %v632_v7, 0.0 }
  0xf0   : > { %v633_v17 = vadd.f32 %v1311_v27, %v594_v9  ;;  %v1140_v18 = vpop.f32.mrf.mxu0  ;;  %v1156_v19 = vpop.f32.mrf.mxu1  ;;  %v646_v32 = vmax.f32 %v614_v12, 0.0  ;;  %v662_v33 = vmax.f32 %v630_v13, 0.0 }
  0xf1   : > { %v615_v20 = vadd.f32 %v1311_v27, %v576_v14  ;;  %v631_v21 = vadd.f32 %v1311_v27, %v592_v15  ;;  %v581_v23 = vmul.f32 %v1140_v18, %v1304_v22  ;;  %v597_v24 = vmul.f32 %v1156_v19, %v1304_v22 }
  0xf2   : > { %v649_v28 = vmax.f32 %v617_v16, 0.0  ;;  %v665_v29 = vmax.f32 %v633_v17, 0.0  ;;  %v469_v30 = vpop.f32.mrf.mxu0  ;;  %v533_v31 = vpop.f32.mrf.mxu1 }
  0xf3   : > { %v647_v34 = vmax.f32 %v615_v20, 0.0  ;;  %v663_v35 = vmax.f32 %v631_v21, 0.0  ;;  %v579_v38 = vmul.f32 %v1304_v22, %v469_v30  ;;  %v595_v39 = vmul.f32 %v1304_v22, %v533_v31 }
  0xf4   : > { %v1022_v36 = vpack.c.bf16 %v649_v28, %v648_v25  ;;  %v1062_v37 = vpack.c.bf16 %v665_v29, %v664_v26  ;;  %v1141_v40 = vpop.f32.mrf.mxu0  ;;  %v1157_v41 = vpop.f32.mrf.mxu1  ;;  %v620_v44 = vadd.f32 %v1311_v27, %v581_v23  ;;  %v636_v45 = vadd.f32 %v1311_v27, %v597_v24 }
  0xf5   : > { %v1017_v42 = vpack.c.bf16 %v647_v34, %v646_v32  ;;  %v1057_v43 = vpack.c.bf16 %v663_v35, %v662_v33  ;;  %v582_v46 = vmul.f32 %v1141_v40, %v1304_v22  ;;  %v598_v47 = vmul.f32 %v1157_v41, %v1304_v22 }
  0xf6   : > { %1086 = vst [vmem:[%s1334_s12 + $0x18] sm:$0xff] %v1022_v36   ;;  %1094 = vst [vmem:[%s1334_s12 + $0x58] sm:$0xff] %v1062_v37   ;;  %v472_v48 = vpop.f32.mrf.mxu0  ;;  %v536_v49 = vpop.f32.mrf.mxu1  ;;  %v618_v50 = vadd.f32 %v1311_v27, %v579_v38  ;;  %v634_v51 = vadd.f32 %v1311_v27, %v595_v39  ;;  %v652_v58 = vmax.f32 %v620_v44, 0.0  ;;  %v668_v59 = vmax.f32 %v636_v45, 0.0 }
  0xf7   : > { %1085 = vst [vmem:[%s1334_s12 + $0x10] sm:$0xff] %v1017_v42   ;;  %1093 = vst [vmem:[%s1334_s12 + $0x50] sm:$0xff] %v1057_v43   ;;  %v580_v52 = vmul.f32 %v1304_v22, %v472_v48  ;;  %v596_v53 = vmul.f32 %v1304_v22, %v536_v49  ;;  %v621_v54 = vadd.f32 %v1311_v27, %v582_v46 }
  0xf8   : > { %v637_v55 = vadd.f32 %v1311_v27, %v598_v47  ;;  %v1144_v56 = vpop.f32.mrf.mxu0  ;;  %v1160_v57 = vpop.f32.mrf.mxu1  ;;  %v650_v4 = vmax.f32 %v618_v50, 0.0  ;;  %v666_v5 = vmax.f32 %v634_v51, 0.0 }
  0xf9   : > { %v619_v60 = vadd.f32 %v1311_v27, %v580_v52  ;;  %v635_v61 = vadd.f32 %v1311_v27, %v596_v53  ;;  %v653_v62 = vmax.f32 %v621_v54, 0.0  ;;  %v585_v0 = vmul.f32 %v1144_v56, %v1304_v22 }
  0xfa   : > { %v669_v63 = vmax.f32 %v637_v55, 0.0  ;;  %v601_v1 = vmul.f32 %v1160_v57, %v1304_v22  ;;  %v485_v2 = vpop.f32.mrf.mxu0  ;;  %v549_v3 = vpop.f32.mrf.mxu1 }
  0xfb   : > { %v651_v6 = vmax.f32 %v619_v60, 0.0  ;;  %v667_v7 = vmax.f32 %v635_v61, 0.0  ;;  %v1032_v8 = vpack.c.bf16 %v653_v62, %v652_v58  ;;  %v583_v10 = vmul.f32 %v1304_v22, %v485_v2 }
  0xfc   : > { %v1072_v9 = vpack.c.bf16 %v669_v63, %v668_v59  ;;  %v599_v11 = vmul.f32 %v1304_v22, %v549_v3  ;;  %v1145_v12 = vpop.f32.mrf.mxu0  ;;  %v1161_v13 = vpop.f32.mrf.mxu1  ;;  %v624_v16 = vadd.f32 %v1311_v27, %v585_v0  ;;  %v640_v17 = vadd.f32 %v1311_v27, %v601_v1 }
  0xfd   : > { %v1027_v14 = vpack.c.bf16 %v651_v6, %v650_v4  ;;  %v1067_v15 = vpack.c.bf16 %v667_v7, %v666_v5  ;;  %1088 = vst [vmem:[%s1334_s12 + $0x28] sm:$0xff] %v1032_v8   ;;  %v586_v18 = vmul.f32 %v1145_v12, %v1304_v22  ;;  %v602_v19 = vmul.f32 %v1161_v13, %v1304_v22 }
  0xfe   : > { %1096 = vst [vmem:[%s1334_s12 + $0x68] sm:$0xff] %v1072_v9   ;;  %v488_v20 = vpop.f32.mrf.mxu0  ;;  %v552_v21 = vpop.f32.mrf.mxu1  ;;  %v622_v23 = vadd.f32 %v1311_v27, %v583_v10  ;;  %v638_v24 = vadd.f32 %v1311_v27, %v599_v11  ;;  %v656_v32 = vmax.f32 %v624_v16, 0.0  ;;  %v672_v33 = vmax.f32 %v640_v17, 0.0 }
  0xff   : > { %1087 = vst [vmem:[%s1334_s12 + $0x20] sm:$0xff] %v1027_v14   ;;  %1095 = vst [vmem:[%s1334_s12 + $0x60] sm:$0xff] %v1067_v15   ;;  %v584_v25 = vmul.f32 %v1304_v22, %v488_v20  ;;  %v600_v26 = vmul.f32 %v1304_v22, %v552_v21  ;;  %v625_v28 = vadd.f32 %v1311_v27, %v586_v18 }
 0x100   : > { %v641_v29 = vadd.f32 %v1311_v27, %v602_v19  ;;  %v654_v36 = vmax.f32 %v622_v23, 0.0  ;;  %v670_v37 = vmax.f32 %v638_v24, 0.0 }
 0x101   : > { %v623_v30 = vadd.f32 %v1311_v27, %v584_v25  ;;  %v639_v31 = vadd.f32 %v1311_v27, %v600_v26  ;;  %v657_v34 = vmax.f32 %v625_v28, 0.0 }
 0x102   : > { %v673_v35 = vmax.f32 %v641_v29, 0.0 }
 0x103   : > { %v655_v38 = vmax.f32 %v623_v30, 0.0  ;;  %v671_v22 = vmax.f32 %v639_v31, 0.0  ;;  %v1042_v39 = vpack.c.bf16 %v657_v34, %v656_v32 }
 0x104   : > { %v1082_v40 = vpack.c.bf16 %v673_v35, %v672_v33 }
 0x105   : > { %v1037_v41 = vpack.c.bf16 %v655_v38, %v654_v36  ;;  %v1077_v42 = vpack.c.bf16 %v671_v22, %v670_v37  ;;  %1090 = vst [vmem:[%s1334_s12 + $0x38] sm:$0xff] %v1042_v39  }
 0x106   : > { %1098 = vst [vmem:[%s1334_s12 + $0x78] sm:$0xff] %v1082_v40  }
 0x107   : > { %1089 = vst [vmem:[%s1334_s12 + $0x30] sm:$0xff] %v1037_v41   ;;  %1097 = vst [vmem:[%s1334_s12 + $0x70] sm:$0xff] %v1077_v42  }
 0x108 PF: > { %s14_s15 = sadd.s32 1, %s1209_s15  }
 0x109   : > { %p11_p4 = scmp.ge.s32.totalorder %s14_s15, 4  }
 0x10b   :  { %13 = sbr.rel (!%p11_p4) target bundleno = 1 (0x1), region = 66 }

// kernel: svgg11_forward.11
= control target key start
LH: loop header
LB: loop body
LE: loop exit
PB: predicated region body
PF: predicated region fallthrough
CT: control target
= control target key end

     0   :  { %s1338_s15 = smov 0   ;;  %s1528_s0 = inlined_call_operand.vmem [shape: bf16[512,144], index: 0, kind: input, shape index: {}]   ;;  %s1529_s1 = inlined_call_operand.vmem [shape: bf16[144,128], index: 1, kind: input, shape index: {}]   ;;  %s1530_s2 = inlined_call_operand.vmem [shape: f32[1,128], index: 2, kind: input, shape index: {}]   ;;  %s1531_s3 = inlined_call_operand.vmem [shape: f32[1,128], index: 3, kind: input, shape index: {}]   ;;  %s1532_s4 = inlined_call_operand.vmem [shape: bf16[512,128], index: 4, kind: output, shape index: {}]  }
   0x1 LB: > { %s989_s16 = sadd.s32 4294967295, %s1310_s15   ;;  %p993_p0 = scmp.ge.s32.totalorder %s1310_s15, 1  ;;  %s1310_s15 = sphi %s1338_s15, %s14_s15  }
   0x2   : > { %p164_p1 = scmp.lt.s32.totalorder %s1310_s15, 3 }
   0x4   : > { %p165_p2 = pnand %p993_p0, %p164_p1 }
   0x5   : > { %s994_s19 = sshll.u32 (!%p165_p2), %s989_s16, 5 }
   0x6   : > { %168 = sbr.rel (%p165_p2) target bundleno = 310 (0x136), region = 36  ;;  %p192_p3 = scmp.lt.s32.totalorder (!%p165_p2), %s994_s19, 63 }
   0xb   : > { %v1247_v0 = vld [vmem:[%s1529_s1 + $0x38] sm:$0xff]   ;;  %v1312_v1 = vmov 0   ;;  %v1248_v2 = vld [vmem:[%s1529_s1 + $0x30] sm:$0xff]   ;;  %s1534_s19 = smov (!%p192_p3, %s994_s19), 63  ;;  %v1249_v3 = vld [vmem:[%s1529_s1 + $0x28] sm:$0xff]   ;;  %vm453_vm0 = vcmask 130048  }
   0xc   : > { %502 = vmatprep.subr.bf16.mxu0 %v1312_v1  ;;  %1220 = vmatprep.subr.bf16.mxu1 %v1312_v1  ;;  %s1092_s24 = sshll.u32 %s1534_s19, 3  ;;  %v1250_v4 = vld [vmem:[%s1529_s1 + $0x20] sm:$0xff]   ;;  %v1251_v7 = vld [vmem:[%s1529_s1 + $0x18] sm:$0xff]   ;;  %v1252_v8 = vld [vmem:[%s1529_s1 + $0x10] sm:$0xff]   ;;  %s998_s20 = sshll.u32 %s1534_s19, 2 }
   0xd   : > { %503 = vmatpush1.bf16.msra.mxu0 %v1247_v0  ;;  %1229 = vmatpush1.bf16.msra.mxu1 %v1247_v0  ;;  %s1361_s27 = scalar_lea.vmem %s1528_s0, %s1092_s24  ;;  %v1253_v9 = vld [vmem:[%s1529_s1 + $0x8] sm:$0xff]   ;;  %v1254_v10 = vld [vmem:[%s1529_s1] sm:$0xff]   ;;  %s1453_s23 = scalar_lea.vmem %s1532_s4, %s998_s20 }
   0xe   : > { %504 = vmatprep.subr.bf16.mxu0 %v1312_v1  ;;  %1221 = vmatprep.subr.bf16.mxu1 %v1312_v1  ;;  %v1258_v5 = vld [vmem:[%s1361_s27 + $0x4] ss:$8 sps:$4 sm:$0xff]   ;;  %v1256_v12 = vld [vmem:[%s1361_s27] ss:$8 sps:$4 sm:$0xff]   ;;  %v1262_v14 = vld [vmem:[%s1361_s27 + $0x14] ss:$8 sps:$4 sm:$0xff]  }
   0xf   : > { %v1261_v6 = vld [vmem:[%s1361_s27 + $0x84] ss:$8 sps:$4 sm:$0xff]   ;;  %1040 = vmatprep.mubr.msk.bf16.mxu0 %vm453_vm0, %v1258_v5  ;;  %v1259_v13 = vld [vmem:[%s1361_s27 + $0x80] ss:$8 sps:$4 sm:$0xff]   ;;  %v1264_v15 = vld [vmem:[%s1361_s27 + $0x94] ss:$8 sps:$4 sm:$0xff]  }
  0x10   : > { %1048 = vmatprep.mubr.msk.bf16.mxu1 %vm453_vm0, %v1261_v6  ;;  %v1255_v11 = vld [vmem:[%s1529_s1 + $0x40] sm:$0xff]   ;;  %v1266_v16 = vld [vmem:[%s1361_s27 + $0x10] ss:$8 sps:$4 sm:$0xff]   ;;  %v1274_v22 = vld [vmem:[%s1361_s27 + $0x34] ss:$8 sps:$4 sm:$0xff]  }
  0x11   : > { %505 = vmatpush1.bf16.msra.mxu0 %v1248_v2  ;;  %1230 = vmatpush1.bf16.msra.mxu1 %v1248_v2  ;;  %v1267_v17 = vld [vmem:[%s1361_s27 + $0x90] ss:$8 sps:$4 sm:$0xff]   ;;  %v1268_v18 = vld [vmem:[%s1361_s27 + $0x24] ss:$8 sps:$4 sm:$0xff]   ;;  %v1272_v20 = vld [vmem:[%s1361_s27 + $0x20] ss:$8 sps:$4 sm:$0xff]  }
  0x12   : > { %506 = vmatprep.subr.bf16.mxu0 %v1312_v1  ;;  %1222 = vmatprep.subr.bf16.mxu1 %v1312_v1  ;;  %v1270_v19 = vld [vmem:[%s1361_s27 + $0xa4] ss:$8 sps:$4 sm:$0xff]   ;;  %v1273_v21 = vld [vmem:[%s1361_s27 + $0xa0] ss:$8 sps:$4 sm:$0xff]   ;;  %v1276_v23 = vld [vmem:[%s1361_s27 + $0xb4] ss:$8 sps:$4 sm:$0xff]  }
  0x13   : > { %v1278_v24 = vld [vmem:[%s1361_s27 + $0x30] ss:$8 sps:$4 sm:$0xff]   ;;  %v1280_v26 = vld [vmem:[%s1361_s27 + $0x44] ss:$8 sps:$4 sm:$0xff]   ;;  %v1284_v28 = vld [vmem:[%s1361_s27 + $0x40] ss:$8 sps:$4 sm:$0xff]  }
  0x14   : > { %v1279_v25 = vld [vmem:[%s1361_s27 + $0xb0] ss:$8 sps:$4 sm:$0xff]   ;;  %v1282_v27 = vld [vmem:[%s1361_s27 + $0xc4] ss:$8 sps:$4 sm:$0xff]   ;;  %v1285_v29 = vld [vmem:[%s1361_s27 + $0xc0] ss:$8 sps:$4 sm:$0xff]  }
  0x15   : > { %507 = vmatpush1.bf16.msra.mxu0 %v1249_v3  ;;  %1231 = vmatpush1.bf16.msra.mxu1 %v1249_v3  ;;  %v1286_v30 = vld [vmem:[%s1361_s27 + $0x54] ss:$8 sps:$4 sm:$0xff]   ;;  %v1290_v32 = vld [vmem:[%s1361_s27 + $0x50] ss:$8 sps:$4 sm:$0xff]   ;;  %v1292_v34 = vld [vmem:[%s1361_s27 + $0x64] ss:$8 sps:$4 sm:$0xff]  }
  0x16   : > { %508 = vmatprep.subr.bf16.mxu0 %v1312_v1  ;;  %1223 = vmatprep.subr.bf16.mxu1 %v1312_v1  ;;  %v1288_v31 = vld [vmem:[%s1361_s27 + $0xd4] ss:$8 sps:$4 sm:$0xff]   ;;  %v1291_v33 = vld [vmem:[%s1361_s27 + $0xd0] ss:$8 sps:$4 sm:$0xff]   ;;  %v1294_v35 = vld [vmem:[%s1361_s27 + $0xe4] ss:$8 sps:$4 sm:$0xff]  }
  0x17   : > { %v1296_v36 = vld [vmem:[%s1361_s27 + $0x60] ss:$8 sps:$4 sm:$0xff]   ;;  %v1298_v38 = vld [vmem:[%s1361_s27 + $0x74] ss:$8 sps:$4 sm:$0xff]   ;;  %v1302_v40 = vld [vmem:[%s1361_s27 + $0x70] ss:$8 sps:$4 sm:$0xff]  }
  0x18   : > { %v1297_v37 = vld [vmem:[%s1361_s27 + $0xe0] ss:$8 sps:$4 sm:$0xff]   ;;  %v1300_v39 = vld [vmem:[%s1361_s27 + $0xf4] ss:$8 sps:$4 sm:$0xff]   ;;  %v1303_v41 = vld [vmem:[%s1361_s27 + $0xf0] ss:$8 sps:$4 sm:$0xff]  }
  0x19   : > { %509 = vmatpush1.bf16.msra.mxu0 %v1250_v4  ;;  %1232 = vmatpush1.bf16.msra.mxu1 %v1250_v4  ;;  %v1432_v42 = vld [vmem:[%s1530_s2] ss:$0 sm:$0xff] }
  0x1a   : > { %510 = vmatprep.subr.bf16.mxu0 %v1312_v1  ;;  %1224 = vmatprep.subr.bf16.mxu1 %v1312_v1  ;;  %v1438_v46 = vld [vmem:[%s1531_s3] ss:$0 sm:$0xff] }
  0x1d   : > { %511 = vmatpush1.bf16.msra.mxu0 %v1251_v7  ;;  %1233 = vmatpush1.bf16.msra.mxu1 %v1251_v7 }
  0x1e   : > { %512 = vmatprep.subr.bf16.mxu0 %v1312_v1  ;;  %1225 = vmatprep.subr.bf16.mxu1 %v1312_v1 }
  0x21   : > { %513 = vmatpush1.bf16.msra.mxu0 %v1252_v8  ;;  %1234 = vmatpush1.bf16.msra.mxu1 %v1252_v8 }
  0x22   : > { %514 = vmatprep.subr.bf16.mxu0 %v1312_v1  ;;  %1226 = vmatprep.subr.bf16.mxu1 %v1312_v1 }
  0x25   : > { %515 = vmatpush1.bf16.msra.mxu0 %v1253_v9  ;;  %1235 = vmatpush1.bf16.msra.mxu1 %v1253_v9 }
  0x26   : > { %516 = vmatprep.subr.bf16.mxu0 %v1312_v1  ;;  %1227 = vmatprep.subr.bf16.mxu1 %v1312_v1 }
  0x29   : > { %517 = vmatpush1.bf16.msra.mxu0 %v1254_v10  ;;  %1236 = vmatpush1.bf16.msra.mxu1 %v1254_v10 }
  0x2a   : > { %532 = vmatprep.subr.bf16.mxu0 %v1312_v1  ;;  %1228 = vmatprep.subr.bf16.mxu1 %v1312_v1 }
  0x2d   : > { %533 = vmatpush2.bf16.msra.mxu0 %v1255_v11  ;;  %1237 = vmatpush2.bf16.msra.mxu1 %v1255_v11 }
  0x30   : > { %535 = vmatmul.mubr.bf16.vlgmr.msra.gmra.mxu0 %v1256_v12  ;;  %599 = vmatmul.mubr.bf16.vlgmr.msra.gmra.mxu1 %v1259_v13 }
  0x31   : > { %1041 = vmatprep.mubr.msk.bf16.mxu0 %vm453_vm0, %v1262_v14  ;;  %1049 = vmatprep.mubr.msk.bf16.mxu1 %vm453_vm0, %v1264_v15 }
  0x38   : > { %543 = vmatmul.mubr.bf16.gmra.mxu0 %v1266_v16  ;;  %607 = vmatmul.mubr.bf16.gmra.mxu1 %v1267_v17 }
  0x39   : > { %1042 = vmatprep.mubr.msk.bf16.mxu0 %vm453_vm0, %v1268_v18  ;;  %1050 = vmatprep.mubr.msk.bf16.mxu1 %vm453_vm0, %v1270_v19 }
  0x40   : > { %551 = vmatmul.mubr.bf16.gmra.mxu0 %v1272_v20  ;;  %615 = vmatmul.mubr.bf16.gmra.mxu1 %v1273_v21 }
  0x41   : > { %1043 = vmatprep.mubr.msk.bf16.mxu0 %vm453_vm0, %v1274_v22  ;;  %1051 = vmatprep.mubr.msk.bf16.mxu1 %vm453_vm0, %v1276_v23 }
  0x48   : > { %559 = vmatmul.mubr.bf16.gmra.mxu0 %v1278_v24  ;;  %623 = vmatmul.mubr.bf16.gmra.mxu1 %v1279_v25 }
  0x49   : > { %1044 = vmatprep.mubr.msk.bf16.mxu0 %vm453_vm0, %v1280_v26  ;;  %1052 = vmatprep.mubr.msk.bf16.mxu1 %vm453_vm0, %v1282_v27 }
  0x50   : > { %567 = vmatmul.mubr.bf16.gmra.mxu0 %v1284_v28  ;;  %631 = vmatmul.mubr.bf16.gmra.mxu1 %v1285_v29 }
  0x51   : > { %1045 = vmatprep.mubr.msk.bf16.mxu0 %vm453_vm0, %v1286_v30  ;;  %1053 = vmatprep.mubr.msk.bf16.mxu1 %vm453_vm0, %v1288_v31 }
  0x58   : > { %575 = vmatmul.mubr.bf16.gmra.mxu0 %v1290_v32  ;;  %639 = vmatmul.mubr.bf16.gmra.mxu1 %v1291_v33 }
  0x59   : > { %1046 = vmatprep.mubr.msk.bf16.mxu0 %vm453_vm0, %v1292_v34  ;;  %1054 = vmatprep.mubr.msk.bf16.mxu1 %vm453_vm0, %v1294_v35 }
  0x60   : > { %583 = vmatmul.mubr.bf16.gmra.mxu0 %v1296_v36  ;;  %647 = vmatmul.mubr.bf16.gmra.mxu1 %v1297_v37 }
  0x61   : > { %1047 = vmatprep.mubr.msk.bf16.mxu0 %vm453_vm0, %v1298_v38  ;;  %1055 = vmatprep.mubr.msk.bf16.mxu1 %vm453_vm0, %v1300_v39 }
  0x68   : > { %591 = vmatmul.mubr.bf16.gmra.mxu0 %v1302_v40  ;;  %655 = vmatmul.mubr.bf16.gmra.mxu1 %v1303_v41 }
  0xf0   : > { %v536_v43 = vpop.f32.mrf.mxu0  ;;  %v600_v44 = vpop.f32.mrf.mxu1 }
  0xf1   : > { %v670_v45 = vmul.f32 %v1432_v42, %v536_v43  ;;  %v686_v47 = vmul.f32 %v1432_v42, %v600_v44 }
  0xf2   : > { %v538_v48 = vpop.f32.mrf.mxu0  ;;  %v602_v49 = vpop.f32.mrf.mxu1 }
  0xf3   : > { %v709_v50 = vadd.f32 %v1438_v46, %v670_v45  ;;  %v725_v51 = vadd.f32 %v1438_v46, %v686_v47 }
  0xf4   : > { %v539_v52 = vpop.f32.mrf.mxu0  ;;  %v603_v53 = vpop.f32.mrf.mxu1 }
  0xf5   : > { %v671_v54 = vmul.f32 %v1432_v42, %v539_v52  ;;  %v687_v55 = vmul.f32 %v1432_v42, %v603_v53  ;;  %v741_v60 = vmax.f32 %v709_v50, 0.0  ;;  %v757_v61 = vmax.f32 %v725_v51, 0.0 }
  0xf6   : > { %v541_v56 = vpop.f32.mrf.mxu0  ;;  %v605_v57 = vpop.f32.mrf.mxu1 }
  0xf7   : > { %v710_v58 = vadd.f32 %v1438_v46, %v671_v54  ;;  %v726_v59 = vadd.f32 %v1438_v46, %v687_v55 }
  0xf8   : > { %v544_v62 = vpop.f32.mrf.mxu0  ;;  %v608_v63 = vpop.f32.mrf.mxu1 }
  0xf9   : > { %v742_v0 = vmax.f32 %v710_v58, 0.0  ;;  %v758_v1 = vmax.f32 %v726_v59, 0.0  ;;  %v672_v2 = vmul.f32 %v1432_v42, %v544_v62  ;;  %v688_v3 = vmul.f32 %v1432_v42, %v608_v63 }
  0xfa   : > { %v546_v4 = vpop.f32.mrf.mxu0  ;;  %v610_v5 = vpop.f32.mrf.mxu1 }
  0xfb   : > { %v1128_v6 = vpack.c.bf16 %v742_v0, %v741_v60  ;;  %v1168_v7 = vpack.c.bf16 %v758_v1, %v757_v61  ;;  %v711_v8 = vadd.f32 %v1438_v46, %v672_v2  ;;  %v727_v9 = vadd.f32 %v1438_v46, %v688_v3 }
  0xfc   : > { %v547_v10 = vpop.f32.mrf.mxu0  ;;  %v611_v11 = vpop.f32.mrf.mxu1 }
  0xfd   : > { %1129 = vst [vmem:[%s1453_s23] sm:$0xff] %v1128_v6   ;;  %1212 = vst [vmem:[%s1453_s23 + $0x40] sm:$0xff] %v1168_v7   ;;  %v673_v12 = vmul.f32 %v1432_v42, %v547_v10  ;;  %v689_v13 = vmul.f32 %v1432_v42, %v611_v11  ;;  %v743_v18 = vmax.f32 %v711_v8, 0.0  ;;  %v759_v19 = vmax.f32 %v727_v9, 0.0 }
  0xfe   : > { %v549_v14 = vpop.f32.mrf.mxu0  ;;  %v613_v15 = vpop.f32.mrf.mxu1 }
  0xff   : > { %v712_v16 = vadd.f32 %v1438_v46, %v673_v12  ;;  %v728_v17 = vadd.f32 %v1438_v46, %v689_v13 }
 0x100   : > { %v552_v20 = vpop.f32.mrf.mxu0  ;;  %v616_v21 = vpop.f32.mrf.mxu1 }
 0x101   : > { %v744_v22 = vmax.f32 %v712_v16, 0.0  ;;  %v760_v23 = vmax.f32 %v728_v17, 0.0  ;;  %v674_v24 = vmul.f32 %v1432_v42, %v552_v20  ;;  %v690_v25 = vmul.f32 %v1432_v42, %v616_v21 }
 0x102   : > { %v554_v26 = vpop.f32.mrf.mxu0  ;;  %v618_v27 = vpop.f32.mrf.mxu1 }
 0x103   : > { %v1133_v28 = vpack.c.bf16 %v744_v22, %v743_v18  ;;  %v1173_v29 = vpack.c.bf16 %v760_v23, %v759_v19  ;;  %v713_v30 = vadd.f32 %v1438_v46, %v674_v24  ;;  %v729_v31 = vadd.f32 %v1438_v46, %v690_v25 }
 0x104   : > { %v555_v32 = vpop.f32.mrf.mxu0  ;;  %v619_v33 = vpop.f32.mrf.mxu1 }
 0x105   : > { %1205 = vst [vmem:[%s1453_s23 + $0x8] sm:$0xff] %v1133_v28   ;;  %1213 = vst [vmem:[%s1453_s23 + $0x48] sm:$0xff] %v1173_v29   ;;  %v675_v34 = vmul.f32 %v1432_v42, %v555_v32  ;;  %v691_v35 = vmul.f32 %v1432_v42, %v619_v33  ;;  %v745_v40 = vmax.f32 %v713_v30, 0.0  ;;  %v761_v41 = vmax.f32 %v729_v31, 0.0 }
 0x106   : > { %v557_v36 = vpop.f32.mrf.mxu0  ;;  %v621_v37 = vpop.f32.mrf.mxu1 }
 0x107   : > { %v714_v38 = vadd.f32 %v1438_v46, %v675_v34  ;;  %v730_v39 = vadd.f32 %v1438_v46, %v691_v35 }
 0x108   : > { %v560_v43 = vpop.f32.mrf.mxu0  ;;  %v624_v44 = vpop.f32.mrf.mxu1 }
 0x109   : > { %v746_v45 = vmax.f32 %v714_v38, 0.0  ;;  %v762_v47 = vmax.f32 %v730_v39, 0.0  ;;  %v676_v48 = vmul.f32 %v1432_v42, %v560_v43  ;;  %v692_v49 = vmul.f32 %v1432_v42, %v624_v44 }
 0x10a   : > { %v562_v50 = vpop.f32.mrf.mxu0  ;;  %v626_v51 = vpop.f32.mrf.mxu1 }
 0x10b   : > { %v1138_v52 = vpack.c.bf16 %v746_v45, %v745_v40  ;;  %v1178_v53 = vpack.c.bf16 %v762_v47, %v761_v41  ;;  %v715_v54 = vadd.f32 %v1438_v46, %v676_v48  ;;  %v731_v55 = vadd.f32 %v1438_v46, %v692_v49 }
 0x10c   : > { %v563_v56 = vpop.f32.mrf.mxu0  ;;  %v627_v57 = vpop.f32.mrf.mxu1 }
 0x10d   : > { %1206 = vst [vmem:[%s1453_s23 + $0x10] sm:$0xff] %v1138_v52   ;;  %1214 = vst [vmem:[%s1453_s23 + $0x50] sm:$0xff] %v1178_v53   ;;  %v677_v58 = vmul.f32 %v1432_v42, %v563_v56  ;;  %v693_v59 = vmul.f32 %v1432_v42, %v627_v57  ;;  %v747_v0 = vmax.f32 %v715_v54, 0.0  ;;  %v763_v1 = vmax.f32 %v731_v55, 0.0 }
 0x10e   : > { %v565_v60 = vpop.f32.mrf.mxu0  ;;  %v629_v61 = vpop.f32.mrf.mxu1 }
 0x10f   : > { %v716_v62 = vadd.f32 %v1438_v46, %v677_v58  ;;  %v732_v63 = vadd.f32 %v1438_v46, %v693_v59 }
 0x110   : > { %v568_v2 = vpop.f32.mrf.mxu0  ;;  %v632_v3 = vpop.f32.mrf.mxu1 }
 0x111   : > { %v748_v4 = vmax.f32 %v716_v62, 0.0  ;;  %v764_v5 = vmax.f32 %v732_v63, 0.0  ;;  %v678_v6 = vmul.f32 %v1432_v42, %v568_v2  ;;  %v694_v7 = vmul.f32 %v1432_v42, %v632_v3 }
 0x112   : > { %v570_v8 = vpop.f32.mrf.mxu0  ;;  %v634_v9 = vpop.f32.mrf.mxu1 }
 0x113   : > { %v1143_v10 = vpack.c.bf16 %v748_v4, %v747_v0  ;;  %v1183_v11 = vpack.c.bf16 %v764_v5, %v763_v1  ;;  %v717_v12 = vadd.f32 %v1438_v46, %v678_v6  ;;  %v733_v13 = vadd.f32 %v1438_v46, %v694_v7 }
 0x114   : > { %v571_v14 = vpop.f32.mrf.mxu0  ;;  %v635_v15 = vpop.f32.mrf.mxu1 }
 0x115   : > { %1207 = vst [vmem:[%s1453_s23 + $0x18] sm:$0xff] %v1143_v10   ;;  %1215 = vst [vmem:[%s1453_s23 + $0x58] sm:$0xff] %v1183_v11   ;;  %v679_v16 = vmul.f32 %v1432_v42, %v571_v14  ;;  %v695_v17 = vmul.f32 %v1432_v42, %v635_v15  ;;  %v749_v22 = vmax.f32 %v717_v12, 0.0  ;;  %v765_v23 = vmax.f32 %v733_v13, 0.0 }
 0x116   : > { %v573_v18 = vpop.f32.mrf.mxu0  ;;  %v637_v19 = vpop.f32.mrf.mxu1 }
 0x117   : > { %v718_v20 = vadd.f32 %v1438_v46, %v679_v16  ;;  %v734_v21 = vadd.f32 %v1438_v46, %v695_v17 }
 0x118   : > { %v576_v24 = vpop.f32.mrf.mxu0  ;;  %v640_v25 = vpop.f32.mrf.mxu1 }
 0x119   : > { %v750_v26 = vmax.f32 %v718_v20, 0.0  ;;  %v766_v27 = vmax.f32 %v734_v21, 0.0  ;;  %v680_v28 = vmul.f32 %v1432_v42, %v576_v24  ;;  %v696_v29 = vmul.f32 %v1432_v42, %v640_v25 }
 0x11a   : > { %v578_v30 = vpop.f32.mrf.mxu0  ;;  %v642_v31 = vpop.f32.mrf.mxu1 }
 0x11b   : > { %v1148_v32 = vpack.c.bf16 %v750_v26, %v749_v22  ;;  %v1188_v33 = vpack.c.bf16 %v766_v27, %v765_v23  ;;  %v719_v34 = vadd.f32 %v1438_v46, %v680_v28  ;;  %v735_v35 = vadd.f32 %v1438_v46, %v696_v29 }
 0x11c   : > { %v579_v36 = vpop.f32.mrf.mxu0  ;;  %v643_v37 = vpop.f32.mrf.mxu1 }
 0x11d   : > { %1208 = vst [vmem:[%s1453_s23 + $0x20] sm:$0xff] %v1148_v32   ;;  %1216 = vst [vmem:[%s1453_s23 + $0x60] sm:$0xff] %v1188_v33   ;;  %v681_v38 = vmul.f32 %v1432_v42, %v579_v36  ;;  %v697_v39 = vmul.f32 %v1432_v42, %v643_v37  ;;  %v751_v45 = vmax.f32 %v719_v34, 0.0  ;;  %v767_v47 = vmax.f32 %v735_v35, 0.0 }
 0x11e   : > { %v581_v40 = vpop.f32.mrf.mxu0  ;;  %v645_v41 = vpop.f32.mrf.mxu1 }
 0x11f   : > { %v720_v43 = vadd.f32 %v1438_v46, %v681_v38  ;;  %v736_v44 = vadd.f32 %v1438_v46, %v697_v39 }
 0x120   : > { %v584_v48 = vpop.f32.mrf.mxu0  ;;  %v648_v49 = vpop.f32.mrf.mxu1 }
 0x121   : > { %v752_v50 = vmax.f32 %v720_v43, 0.0  ;;  %v768_v51 = vmax.f32 %v736_v44, 0.0  ;;  %v682_v52 = vmul.f32 %v1432_v42, %v584_v48  ;;  %v698_v53 = vmul.f32 %v1432_v42, %v648_v49 }
 0x122   : > { %v586_v54 = vpop.f32.mrf.mxu0  ;;  %v650_v55 = vpop.f32.mrf.mxu1 }
 0x123   : > { %v1153_v56 = vpack.c.bf16 %v752_v50, %v751_v45  ;;  %v1193_v57 = vpack.c.bf16 %v768_v51, %v767_v47  ;;  %v721_v58 = vadd.f32 %v1438_v46, %v682_v52  ;;  %v737_v59 = vadd.f32 %v1438_v46, %v698_v53 }
 0x124   : > { %v587_v60 = vpop.f32.mrf.mxu0  ;;  %v651_v61 = vpop.f32.mrf.mxu1 }
 0x125   : > { %1209 = vst [vmem:[%s1453_s23 + $0x28] sm:$0xff] %v1153_v56   ;;  %1217 = vst [vmem:[%s1453_s23 + $0x68] sm:$0xff] %v1193_v57   ;;  %v683_v62 = vmul.f32 %v1432_v42, %v587_v60  ;;  %v699_v63 = vmul.f32 %v1432_v42, %v651_v61  ;;  %v753_v4 = vmax.f32 %v721_v58, 0.0  ;;  %v769_v5 = vmax.f32 %v737_v59, 0.0 }
 0x126   : > { %v589_v0 = vpop.f32.mrf.mxu0  ;;  %v653_v1 = vpop.f32.mrf.mxu1 }
 0x127   : > { %v722_v2 = vadd.f32 %v1438_v46, %v683_v62  ;;  %v738_v3 = vadd.f32 %v1438_v46, %v699_v63 }
 0x128   : > { %v592_v6 = vpop.f32.mrf.mxu0  ;;  %v656_v7 = vpop.f32.mrf.mxu1 }
 0x129   : > { %v754_v8 = vmax.f32 %v722_v2, 0.0  ;;  %v770_v9 = vmax.f32 %v738_v3, 0.0  ;;  %v684_v10 = vmul.f32 %v1432_v42, %v592_v6  ;;  %v700_v11 = vmul.f32 %v1432_v42, %v656_v7 }
 0x12a   : > { %v594_v12 = vpop.f32.mrf.mxu0  ;;  %v658_v13 = vpop.f32.mrf.mxu1 }
 0x12b   : > { %v1158_v14 = vpack.c.bf16 %v754_v8, %v753_v4  ;;  %v1198_v15 = vpack.c.bf16 %v770_v9, %v769_v5  ;;  %v723_v18 = vadd.f32 %v1438_v46, %v684_v10  ;;  %v739_v19 = vadd.f32 %v1438_v46, %v700_v11 }
 0x12c   : > { %v595_v16 = vpop.f32.mrf.mxu0  ;;  %v659_v17 = vpop.f32.mrf.mxu1 }
 0x12d   : > { %1210 = vst [vmem:[%s1453_s23 + $0x30] sm:$0xff] %v1158_v14   ;;  %1218 = vst [vmem:[%s1453_s23 + $0x70] sm:$0xff] %v1198_v15   ;;  %v685_v20 = vmul.f32 %v1432_v42, %v595_v16  ;;  %v701_v21 = vmul.f32 %v1432_v42, %v659_v17  ;;  %v755_v26 = vmax.f32 %v723_v18, 0.0  ;;  %v771_v27 = vmax.f32 %v739_v19, 0.0 }
 0x12e   : > { %v597_v22 = vpop.f32.mrf.mxu0  ;;  %v661_v23 = vpop.f32.mrf.mxu1 }
 0x12f   : > { %v724_v24 = vadd.f32 %v1438_v46, %v685_v20  ;;  %v740_v25 = vadd.f32 %v1438_v46, %v701_v21 }
 0x131   : > { %v756_v28 = vmax.f32 %v724_v24, 0.0  ;;  %v772_v29 = vmax.f32 %v740_v25, 0.0 }
 0x133   : > { %v1163_v30 = vpack.c.bf16 %v756_v28, %v755_v26  ;;  %v1203_v31 = vpack.c.bf16 %v772_v29, %v771_v27 }
 0x135   : > { %1211 = vst [vmem:[%s1453_s23 + $0x38] sm:$0xff] %v1163_v30   ;;  %1219 = vst [vmem:[%s1453_s23 + $0x78] sm:$0xff] %v1203_v31  }
 0x136 PF: > { %s14_s15 = sadd.s32 1, %s1310_s15  }
 0x137   : > { %p11_p4 = scmp.ge.s32.totalorder %s14_s15, 4  }
 0x139   :  { %13 = sbr.rel (!%p11_p4) target bundleno = 1 (0x1), region = 66 }

// kernel: svgg11_forward.12
= control target key start
LH: loop header
LB: loop body
LE: loop exit
PB: predicated region body
PF: predicated region fallthrough
CT: control target
= control target key end

     0   :  { %s690_s15 = smov 0   ;;  %s758_s0 = inlined_call_operand.vmem [shape: bf16[128,144], index: 0, kind: input, shape index: {}]   ;;  %s759_s1 = inlined_call_operand.vmem [shape: bf16[144,128], index: 1, kind: input, shape index: {}]   ;;  %s760_s2 = inlined_call_operand.vmem [shape: f32[1,128], index: 2, kind: input, shape index: {}]   ;;  %s761_s3 = inlined_call_operand.vmem [shape: f32[1,128], index: 3, kind: input, shape index: {}]   ;;  %s762_s4 = inlined_call_operand.vmem [shape: bf16[128,128], index: 4, kind: output, shape index: {}]  }
   0x1 LB: > { %s533_s16 = sadd.s32 4294967295, %s662_s15   ;;  %p537_p0 = scmp.ge.s32.totalorder %s662_s15, 1  ;;  %s662_s15 = sphi %s690_s15, %s14_s15  }
   0x2   : > { %p164_p1 = scmp.lt.s32.totalorder %s662_s15, 3 }
   0x4   : > { %p165_p2 = pnand %p537_p0, %p164_p1 }
   0x5   : > { %s538_s19 = sshll.u32 (!%p165_p2), %s533_s16, 3 }
   0x6   : > { %168 = sbr.rel (%p165_p2) target bundleno = 262 (0x106), region = 36  ;;  %p192_p3 = scmp.lt.s32.totalorder (!%p165_p2), %s538_s19, 15 }
   0xb   : > { %v635_v0 = vld [vmem:[%s759_s1 + $0x38] sm:$0xff]   ;;  %v664_v1 = vmov 0   ;;  %v636_v2 = vld [vmem:[%s759_s1 + $0x30] sm:$0xff]   ;;  %s764_s19 = smov (!%p192_p3, %s538_s19), 15  ;;  %v637_v3 = vld [vmem:[%s759_s1 + $0x28] sm:$0xff]   ;;  %vm321_vm0 = vcmask 130048  }
   0xc   : > { %334 = vmatprep.subr.bf16.mxu0 %v664_v1  ;;  %608 = vmatprep.subr.bf16.mxu1 %v664_v1  ;;  %s576_s24 = sshll.u32 %s764_s19, 3  ;;  %v638_v4 = vld [vmem:[%s759_s1 + $0x20] sm:$0xff]   ;;  %v639_v7 = vld [vmem:[%s759_s1 + $0x18] sm:$0xff]   ;;  %v640_v8 = vld [vmem:[%s759_s1 + $0x10] sm:$0xff]   ;;  %s542_s20 = sshll.u32 %s764_s19, 2 }
   0xd   : > { %335 = vmatpush1.bf16.msra.mxu0 %v635_v0  ;;  %617 = vmatpush1.bf16.msra.mxu1 %v635_v0  ;;  %s713_s27 = scalar_lea.vmem %s758_s0, %s576_s24  ;;  %v641_v9 = vld [vmem:[%s759_s1 + $0x8] sm:$0xff]   ;;  %v642_v10 = vld [vmem:[%s759_s1] sm:$0xff]   ;;  %s202_s23 = scalar_lea.vmem %s762_s4, %s542_s20 }
   0xe   : > { %336 = vmatprep.subr.bf16.mxu0 %v664_v1  ;;  %609 = vmatprep.subr.bf16.mxu1 %v664_v1  ;;  %v646_v5 = vld [vmem:[%s713_s27 + $0x4] ss:$8 sps:$4 sm:$0xff]   ;;  %v644_v12 = vld [vmem:[%s713_s27] ss:$8 sps:$4 sm:$0xff]   ;;  %v650_v14 = vld [vmem:[%s713_s27 + $0x14] ss:$8 sps:$4 sm:$0xff]  }
   0xf   : > { %v649_v6 = vld [vmem:[%s713_s27 + $0x24] ss:$8 sps:$4 sm:$0xff]   ;;  %560 = vmatprep.mubr.msk.bf16.mxu0 %vm321_vm0, %v646_v5  ;;  %v647_v13 = vld [vmem:[%s713_s27 + $0x20] ss:$8 sps:$4 sm:$0xff]   ;;  %v652_v15 = vld [vmem:[%s713_s27 + $0x34] ss:$8 sps:$4 sm:$0xff]  }
  0x10   : > { %562 = vmatprep.mubr.msk.bf16.mxu1 %vm321_vm0, %v649_v6  ;;  %v643_v11 = vld [vmem:[%s759_s1 + $0x40] sm:$0xff]   ;;  %v654_v16 = vld [vmem:[%s713_s27 + $0x10] ss:$8 sps:$4 sm:$0xff]  }
  0x11   : > { %337 = vmatpush1.bf16.msra.mxu0 %v636_v2  ;;  %618 = vmatpush1.bf16.msra.mxu1 %v636_v2  ;;  %v655_v17 = vld [vmem:[%s713_s27 + $0x30] ss:$8 sps:$4 sm:$0xff]   ;;  %v564_v18 = vld [vmem:[%s760_s2] ss:$0 sm:$0xff] }
  0x12   : > { %338 = vmatprep.subr.bf16.mxu0 %v664_v1  ;;  %610 = vmatprep.subr.bf16.mxu1 %v664_v1  ;;  %v565_v22 = vld [vmem:[%s761_s3] ss:$0 sm:$0xff] }
  0x15   : > { %339 = vmatpush1.bf16.msra.mxu0 %v637_v3  ;;  %619 = vmatpush1.bf16.msra.mxu1 %v637_v3 }
  0x16   : > { %340 = vmatprep.subr.bf16.mxu0 %v664_v1  ;;  %611 = vmatprep.subr.bf16.mxu1 %v664_v1 }
  0x19   : > { %341 = vmatpush1.bf16.msra.mxu0 %v638_v4  ;;  %620 = vmatpush1.bf16.msra.mxu1 %v638_v4 }
  0x1a   : > { %342 = vmatprep.subr.bf16.mxu0 %v664_v1  ;;  %612 = vmatprep.subr.bf16.mxu1 %v664_v1 }
  0x1d   : > { %343 = vmatpush1.bf16.msra.mxu0 %v639_v7  ;;  %621 = vmatpush1.bf16.msra.mxu1 %v639_v7 }
  0x1e   : > { %344 = vmatprep.subr.bf16.mxu0 %v664_v1  ;;  %613 = vmatprep.subr.bf16.mxu1 %v664_v1 }
  0x21   : > { %345 = vmatpush1.bf16.msra.mxu0 %v640_v8  ;;  %622 = vmatpush1.bf16.msra.mxu1 %v640_v8 }
  0x22   : > { %346 = vmatprep.subr.bf16.mxu0 %v664_v1  ;;  %614 = vmatprep.subr.bf16.mxu1 %v664_v1 }
  0x25   : > { %347 = vmatpush1.bf16.msra.mxu0 %v641_v9  ;;  %623 = vmatpush1.bf16.msra.mxu1 %v641_v9 }
  0x26   : > { %348 = vmatprep.subr.bf16.mxu0 %v664_v1  ;;  %615 = vmatprep.subr.bf16.mxu1 %v664_v1 }
  0x29   : > { %349 = vmatpush1.bf16.msra.mxu0 %v642_v10  ;;  %624 = vmatpush1.bf16.msra.mxu1 %v642_v10 }
  0x2a   : > { %364 = vmatprep.subr.bf16.mxu0 %v664_v1  ;;  %616 = vmatprep.subr.bf16.mxu1 %v664_v1 }
  0x2d   : > { %365 = vmatpush2.bf16.msra.mxu0 %v643_v11  ;;  %625 = vmatpush2.bf16.msra.mxu1 %v643_v11 }
  0x30   : > { %367 = vmatmul.mubr.bf16.vlgmr.msra.gmra.mxu0 %v644_v12  ;;  %383 = vmatmul.mubr.bf16.vlgmr.msra.gmra.mxu1 %v647_v13 }
  0x31   : > { %561 = vmatprep.mubr.msk.bf16.mxu0 %vm321_vm0, %v650_v14  ;;  %563 = vmatprep.mubr.msk.bf16.mxu1 %vm321_vm0, %v652_v15 }
  0x38   : > { %375 = vmatmul.mubr.bf16.gmra.mxu0 %v654_v16  ;;  %391 = vmatmul.mubr.bf16.gmra.mxu1 %v655_v17 }
  0xf0   : > { %v368_v19 = vpop.f32.mrf.mxu0  ;;  %v384_v20 = vpop.f32.mrf.mxu1 }
  0xf1   : > { %v406_v21 = vmul.f32 %v564_v18, %v368_v19  ;;  %v410_v23 = vmul.f32 %v564_v18, %v384_v20 }
  0xf2   : > { %v370_v24 = vpop.f32.mrf.mxu0  ;;  %v386_v25 = vpop.f32.mrf.mxu1 }
  0xf3   : > { %v421_v26 = vadd.f32 %v565_v22, %v406_v21  ;;  %v425_v27 = vadd.f32 %v565_v22, %v410_v23 }
  0xf4   : > { %v371_v28 = vpop.f32.mrf.mxu0  ;;  %v387_v29 = vpop.f32.mrf.mxu1 }
  0xf5   : > { %v407_v30 = vmul.f32 %v564_v18, %v371_v28  ;;  %v411_v31 = vmul.f32 %v564_v18, %v387_v29  ;;  %v429_v36 = vmax.f32 %v421_v26, 0.0  ;;  %v433_v37 = vmax.f32 %v425_v27, 0.0 }
  0xf6   : > { %v373_v32 = vpop.f32.mrf.mxu0  ;;  %v389_v33 = vpop.f32.mrf.mxu1 }
  0xf7   : > { %v422_v34 = vadd.f32 %v565_v22, %v407_v30  ;;  %v426_v35 = vadd.f32 %v565_v22, %v411_v31 }
  0xf8   : > { %v376_v38 = vpop.f32.mrf.mxu0  ;;  %v392_v39 = vpop.f32.mrf.mxu1 }
  0xf9   : > { %v430_v40 = vmax.f32 %v422_v34, 0.0  ;;  %v434_v41 = vmax.f32 %v426_v35, 0.0  ;;  %v408_v42 = vmul.f32 %v564_v18, %v376_v38  ;;  %v412_v43 = vmul.f32 %v564_v18, %v392_v39 }
  0xfa   : > { %v378_v44 = vpop.f32.mrf.mxu0  ;;  %v394_v45 = vpop.f32.mrf.mxu1 }
  0xfb   : > { %v588_v46 = vpack.c.bf16 %v430_v40, %v429_v36  ;;  %v598_v47 = vpack.c.bf16 %v434_v41, %v433_v37  ;;  %v423_v50 = vadd.f32 %v565_v22, %v408_v42  ;;  %v427_v51 = vadd.f32 %v565_v22, %v412_v43 }
  0xfc   : > { %v379_v48 = vpop.f32.mrf.mxu0  ;;  %v395_v49 = vpop.f32.mrf.mxu1 }
  0xfd   : > { %589 = vst [vmem:[%s202_s23] sm:$0xff] %v588_v46   ;;  %606 = vst [vmem:[%s202_s23 + $0x10] sm:$0xff] %v598_v47   ;;  %v409_v52 = vmul.f32 %v564_v18, %v379_v48  ;;  %v413_v53 = vmul.f32 %v564_v18, %v395_v49  ;;  %v431_v58 = vmax.f32 %v423_v50, 0.0  ;;  %v435_v59 = vmax.f32 %v427_v51, 0.0 }
  0xfe   : > { %v381_v54 = vpop.f32.mrf.mxu0  ;;  %v397_v55 = vpop.f32.mrf.mxu1 }
  0xff   : > { %v424_v56 = vadd.f32 %v565_v22, %v409_v52  ;;  %v428_v57 = vadd.f32 %v565_v22, %v413_v53 }
 0x101   : > { %v432_v60 = vmax.f32 %v424_v56, 0.0  ;;  %v436_v61 = vmax.f32 %v428_v57, 0.0 }
 0x103   : > { %v593_v62 = vpack.c.bf16 %v432_v60, %v431_v58  ;;  %v603_v63 = vpack.c.bf16 %v436_v61, %v435_v59 }
 0x105   : > { %605 = vst [vmem:[%s202_s23 + $0x8] sm:$0xff] %v593_v62   ;;  %607 = vst [vmem:[%s202_s23 + $0x18] sm:$0xff] %v603_v63  }
 0x106 PF: > { %s14_s15 = sadd.s32 1, %s662_s15  }
 0x107   : > { %p11_p4 = scmp.ge.s32.totalorder %s14_s15, 4  }
 0x109   :  { %13 = sbr.rel (!%p11_p4) target bundleno = 1 (0x1), region = 66 }

// kernel: svgg11_forward.14
= control target key start
LH: loop header
LB: loop body
LE: loop exit
PB: predicated region body
PF: predicated region fallthrough
CT: control target
= control target key end

     0   :  { %vm200_vm0 = vcmask 261120   ;;  %s577_s1 = inlined_call_operand.vmem [shape: bf16[288,128], index: 1, kind: input, shape index: {}]   ;;  %s578_s0 = inlined_call_operand.vmem [shape: bf16[32,288], index: 0, kind: input, shape index: {}]   ;;  %s579_s2 = inlined_call_operand.vmem [shape: f32[1,128], index: 2, kind: input, shape index: {}]   ;;  %s580_s3 = inlined_call_operand.vmem [shape: f32[1,128], index: 3, kind: input, shape index: {}]   ;;  %s581_s4 = inlined_call_operand.vmem [shape: bf16[32,128], index: 4, kind: output, shape index: {}]  }
   0x1   :  { %v442_v0 = vld [vmem:[%s577_s1 + $0x78] sm:$0xff]   ;;  %v444_v2 = vld [vmem:[%s577_s1 + $0x70] sm:$0xff]   ;;  %v446_v4 = vld [vmem:[%s577_s1 + $0x68] sm:$0xff]  }
   0x2   :  { %v443_v1 = vld [vmem:[%s577_s1 + $0x38] sm:$0xff]   ;;  %402 = vmatprep.subr.bf16.mxu0 %v442_v0  ;;  %v445_v3 = vld [vmem:[%s577_s1 + $0x30] sm:$0xff]   ;;  %v447_v5 = vld [vmem:[%s577_s1 + $0x28] sm:$0xff]  }
   0x3   :  { %403 = vmatpush3.bf16.msra.mxu0 %v443_v1  ;;  %v448_v6 = vld [vmem:[%s577_s1 + $0x60] sm:$0xff]   ;;  %v450_v8 = vld [vmem:[%s577_s1 + $0x58] sm:$0xff]   ;;  %v456_v9 = vld [vmem:[%s577_s1 + $0x88] sm:$0xff]  }
   0x4   :  { %404 = vmatprep.subr.bf16.mxu0 %v444_v2  ;;  %v449_v7 = vld [vmem:[%s577_s1 + $0x20] sm:$0xff]   ;;  %v451_v10 = vld [vmem:[%s577_s1 + $0x18] sm:$0xff]   ;;  %v452_v11 = vld [vmem:[%s577_s1 + $0x50] sm:$0xff]   ;;  %434 = vmatprep.subr.bf16.mxu1 %v456_v9 }
   0x5   :  { %v453_v12 = vld [vmem:[%s577_s1 + $0x10] sm:$0xff]   ;;  %435 = vmatpush3.bf16.msra.mxu1 %v456_v9  ;;  %v459_v13 = vld [vmem:[%s577_s1 + $0x80] sm:$0xff]   ;;  %v454_v14 = vld [vmem:[%s577_s1 + $0x48] sm:$0xff]  }
   0x6   :  { %436 = vmatprep.subr.bf16.mxu1 %v459_v13  ;;  %v462_v15 = vld [vmem:[%s578_s0 + $0x4] ss:$12 sps:$4 sm:$0xff]   ;;  %v463_v16 = vld [vmem:[%s578_s0 + $0x8] ss:$12 sps:$4 sm:$0xff]   ;;  %v464_v17 = vld [vmem:[%s578_s0 + $0x20] ss:$12 sps:$4 sm:$0xff]  }
   0x7   :  { %405 = vmatpush3.bf16.msra.mxu0 %v445_v3  ;;  %239 = vmatprep.mubr.bf16.mxu0 %v462_v15  ;;  %v455_v18 = vld [vmem:[%s577_s1 + $0x8] sm:$0xff]   ;;  %v457_v19 = vld [vmem:[%s577_s1 + $0x40] sm:$0xff]  }
   0x8   :  { %406 = vmatprep.subr.bf16.mxu0 %v446_v4  ;;  %438 = vmatprep.mubr.msk.bf16.mxu1 %vm200_vm0, %v463_v16  ;;  %v458_v20 = vld [vmem:[%s577_s1] sm:$0xff]   ;;  %v465_v22 = vld [vmem:[%s578_s0 + $0x1c] ss:$12 sps:$4 sm:$0xff]  }
   0x9   :  { %437 = vmatpush3.bf16.msra.mxu1 %v459_v13  ;;  %v460_v21 = vld [vmem:[%s578_s0] ss:$12 sps:$4 sm:$0xff]   ;;  %v467_v23 = vld [vmem:[%s578_s0 + $0x18] ss:$12 sps:$4 sm:$0xff]  }
   0xa   :  { %v381_v31 = vld [vmem:[%s579_s2] ss:$0 sm:$0xff] }
   0xb   :  { %407 = vmatpush3.bf16.msra.mxu0 %v447_v5  ;;  %v382_v37 = vld [vmem:[%s580_s3] ss:$0 sm:$0xff] }
   0xc   :  { %408 = vmatprep.subr.bf16.mxu0 %v448_v6  ;;  %439 = vmatmul.mubr.msk.bf16.vlgmr.msra.gmra.mxu1 %vm200_vm0, %v464_v17 }
   0xf   :  { %409 = vmatpush3.bf16.msra.mxu0 %v449_v7 }
  0x10   :  { %410 = vmatprep.subr.bf16.mxu0 %v450_v8 }
  0x13   :  { %411 = vmatpush3.bf16.msra.mxu0 %v451_v10 }
  0x14   :  { %412 = vmatprep.subr.bf16.mxu0 %v452_v11 }
  0x17   :  { %413 = vmatpush3.bf16.msra.mxu0 %v453_v12 }
  0x18   :  { %414 = vmatprep.subr.bf16.mxu0 %v454_v14 }
  0x1b   :  { %415 = vmatpush3.bf16.msra.mxu0 %v455_v18 }
  0x1c   :  { %416 = vmatprep.subr.bf16.mxu0 %v457_v19 }
  0x1f   :  { %417 = vmatpush3.bf16.msra.mxu0 %v458_v20 }
  0x22   :  { %240 = vmatmul.mubr.bf16.vlgmr.msra.gmra.mxu0 %v460_v21 }
  0x23   :  { %247 = vmatprep.mubr.bf16.mxu0 %v465_v22 }
  0x2a   :  { %248 = vmatmul.mubr.bf16.gmra.mxu0 %v467_v23 }
  0xcc   :  { %v440_v24 = vpop.f32.mrf.mxu1 }
  0xce   :  { %v290_v25 = vpop.f32.mrf.mxu1 }
  0xd0   :  { %v441_v28 = vpop.f32.mrf.mxu1 }
  0xd2   :  { %v293_v34 = vpop.f32.mrf.mxu1 }
  0xe2   :  { %v418_v26 = vpop.f32.mrf.mxu0 }
  0xe4   :  { %v419_v27 = vpop.f32.mrf.mxu0 }
  0xe5   :  { %v420_v29 = vadd.f32 %v419_v27, %v418_v26 }
  0xe6   :  { %v421_v30 = vpop.f32.mrf.mxu0 }
  0xe7   :  { %v291_v32 = vadd.f32 %v420_v29, %v290_v25 }
  0xe8   :  { %v422_v33 = vpop.f32.mrf.mxu0 }
  0xe9   :  { %v312_v35 = vmul.f32 %v381_v31, %v291_v32  ;;  %v423_v36 = vadd.f32 %v422_v33, %v421_v30 }
  0xea   :  { %v424_v38 = vpop.f32.mrf.mxu0 }
  0xeb   :  { %v294_v39 = vadd.f32 %v423_v36, %v293_v34  ;;  %v323_v41 = vadd.f32 %v382_v37, %v312_v35 }
  0xec   :  { %v425_v40 = vpop.f32.mrf.mxu0 }
  0xed   :  { %v313_v42 = vmul.f32 %v381_v31, %v294_v39  ;;  %v426_v43 = vadd.f32 %v425_v40, %v424_v38  ;;  %v327_v48 = vmax.f32 %v323_v41, 0.0 }
  0xee   :  { %v427_v44 = vpop.f32.mrf.mxu0 }
  0xef   :  { %v324_v45 = vadd.f32 %v382_v37, %v313_v42  ;;  %v299_v46 = vadd.f32 %v440_v24, %v426_v43 }
  0xf0   :  { %v428_v47 = vpop.f32.mrf.mxu0 }
  0xf1   :  { %v328_v49 = vmax.f32 %v324_v45, 0.0  ;;  %v314_v50 = vmul.f32 %v381_v31, %v299_v46  ;;  %v429_v51 = vadd.f32 %v428_v47, %v427_v44 }
  0xf3   :  { %v394_v52 = vpack.c.bf16 %v328_v49, %v327_v48  ;;  %v302_v53 = vadd.f32 %v441_v28, %v429_v51  ;;  %v325_v54 = vadd.f32 %v382_v37, %v314_v50 }
  0xf5   :  { %395 = vst [vmem:[%s581_s4] sm:$0xff] %v394_v52   ;;  %v315_v55 = vmul.f32 %v381_v31, %v302_v53  ;;  %v329_v57 = vmax.f32 %v325_v54, 0.0 }
  0xf7   :  { %v326_v56 = vadd.f32 %v382_v37, %v315_v55 }
  0xf9   :  { %v330_v58 = vmax.f32 %v326_v56, 0.0 }
  0xfb   :  { %v399_v59 = vpack.c.bf16 %v330_v58, %v329_v57 }
  0xfd   :  { %401 = vst [vmem:[%s581_s4 + $0x8] sm:$0xff] %v399_v59  }

// kernel: svgg11_forward.16
= control target key start
LH: loop header
LB: loop body
LE: loop exit
PB: predicated region body
PF: predicated region fallthrough
CT: control target
= control target key end

     0   :  { %v361_v1 = vmov 0.0   ;;  %vm362_vm0 = vmmov 0   ;;  %vm174_vm1 = vcmask 261120   ;;  %s457_s1 = inlined_call_operand.vmem [shape: bf16[288,128], index: 1, kind: input, shape index: {}]   ;;  %s458_s0 = inlined_call_operand.vmem [shape: bf16[8,288], index: 0, kind: input, shape index: {}]   ;;  %s459_s2 = inlined_call_operand.vmem [shape: f32[1,128], index: 2, kind: input, shape index: {}]   ;;  %s460_s3 = inlined_call_operand.vmem [shape: f32[1,128], index: 3, kind: input, shape index: {}]   ;;  %s461_s4 = inlined_call_operand.vmem [shape: bf16[8,128], index: 4, kind: output, shape index: {}]  }
   0x1   :  { %v340_v0 = vld [vmem:[%s457_s1 + $0x78] sm:$0xff]   ;;  %330 = vmatprep.subr.bf16.mxu1 %v361_v1  ;;  %334 = vmatprep.mubr.msk.bf16.mxu1 %vm362_vm0, %v361_v1  ;;  %v342_v3 = vld [vmem:[%s457_s1 + $0x70] sm:$0xff]   ;;  %v344_v5 = vld [vmem:[%s457_s1 + $0x68] sm:$0xff]  }
   0x2   :  { %v341_v2 = vld [vmem:[%s457_s1 + $0x38] sm:$0xff]   ;;  %305 = vmatprep.subr.bf16.mxu0 %v340_v0  ;;  %v343_v4 = vld [vmem:[%s457_s1 + $0x30] sm:$0xff]   ;;  %v345_v6 = vld [vmem:[%s457_s1 + $0x28] sm:$0xff]  }
   0x3   :  { %306 = vmatpush3.bf16.msra.mxu0 %v341_v2  ;;  %v346_v7 = vld [vmem:[%s457_s1 + $0x60] sm:$0xff]   ;;  %v348_v9 = vld [vmem:[%s457_s1 + $0x58] sm:$0xff]   ;;  %v352_v10 = vld [vmem:[%s457_s1 + $0x88] sm:$0xff]  }
   0x4   :  { %307 = vmatprep.subr.bf16.mxu0 %v342_v3  ;;  %v347_v8 = vld [vmem:[%s457_s1 + $0x20] sm:$0xff]   ;;  %v349_v11 = vld [vmem:[%s457_s1 + $0x18] sm:$0xff]   ;;  %331 = vmatpush3.bf16.msra.mxu1 %v352_v10  ;;  %v350_v13 = vld [vmem:[%s457_s1 + $0x50] sm:$0xff]  }
   0x5   :  { %332 = vmatprep.subr.bf16.mxu1 %v361_v1  ;;  %v355_v12 = vld [vmem:[%s457_s1 + $0x80] sm:$0xff]   ;;  %v358_v14 = vld [vmem:[%s458_s0 + $0x8] ss:$0 sps:$4 sm:$0xff]   ;;  %v351_v16 = vld [vmem:[%s457_s1 + $0x10] sm:$0xff]  }
   0x6   :  { %v18_v15 = vld [vmem:[%s458_s0] sm:$0xff]  ;;  %v353_v18 = vld [vmem:[%s457_s1 + $0x48] sm:$0xff]  }
   0x7   :  { %308 = vmatpush3.bf16.msra.mxu0 %v343_v4  ;;  %v282_v17 = vcombine.high %v18_v15, %v18_v15  ;;  %v354_v19 = vld [vmem:[%s457_s1 + $0x8] sm:$0xff]   ;;  %v356_v20 = vld [vmem:[%s457_s1 + $0x40] sm:$0xff]   ;;  %v281_v22 = vcombine.low %v18_v15, %v18_v15 }
   0x8   :  { %309 = vmatprep.subr.bf16.mxu0 %v344_v5  ;;  %333 = vmatpush3.bf16.msra.mxu1 %v355_v12  ;;  %v357_v21 = vld [vmem:[%s457_s1] sm:$0xff]  }
   0x9   :  { %210 = vmatprep.mubr.bf16.mxu0 %v282_v17  ;;  %v303_v30 = vld [vmem:[%s459_s2] ss:$0 sm:$0xff] }
   0xa   :  { %v304_v33 = vld [vmem:[%s460_s3] ss:$0 sm:$0xff] }
   0xb   :  { %310 = vmatpush3.bf16.msra.mxu0 %v345_v6  ;;  %335 = vmatmul.mubr.msk.bf16.vlgmr.msra.gmra.mxu1 %vm174_vm1, %v358_v14 }
   0xc   :  { %311 = vmatprep.subr.bf16.mxu0 %v346_v7 }
   0xf   :  { %312 = vmatpush3.bf16.msra.mxu0 %v347_v8 }
  0x10   :  { %313 = vmatprep.subr.bf16.mxu0 %v348_v9 }
  0x13   :  { %314 = vmatpush3.bf16.msra.mxu0 %v349_v11 }
  0x14   :  { %315 = vmatprep.subr.bf16.mxu0 %v350_v13 }
  0x17   :  { %316 = vmatpush3.bf16.msra.mxu0 %v351_v16 }
  0x18   :  { %317 = vmatprep.subr.bf16.mxu0 %v353_v18 }
  0x1b   :  { %318 = vmatpush3.bf16.msra.mxu0 %v354_v19 }
  0x1c   :  { %319 = vmatprep.subr.bf16.mxu0 %v356_v20 }
  0x1f   :  { %320 = vmatpush3.bf16.msra.mxu0 %v357_v21 }
  0x22   :  { %211 = vmatmul.mubr.bf16.vlgmr.msra.gmra.mxu0 %v281_v22 }
  0xcb   :  { %v252_v23 = vpop.f32.mrf.mxu1 }
  0xcd   :  { %v336_v24 = vpop.f32.mrf.mxu1 }
  0xcf   :  { %v255_v25 = vpop.f32.mrf.mxu1 }
  0xd1   :  { %v337_v26 = vpop.f32.mrf.mxu1 }
  0xe2   :  { %v321_v27 = vpop.f32.mrf.mxu0 }
  0xe4   :  { %v322_v28 = vpop.f32.mrf.mxu0 }
  0xe5   :  { %v323_v29 = vadd.f32 %v322_v28, %v321_v27 }
  0xe6   :  { %v324_v31 = vpop.f32.mrf.mxu0 }
  0xe7   :  { %v253_v32 = vadd.f32 %v323_v29, %v252_v23 }
  0xe8   :  { %v325_v34 = vpop.f32.mrf.mxu0 }
  0xe9   :  { %v265_v35 = vmul.f32 %v303_v30, %v253_v32 }
  0xeb   :  { %v273_v36 = vadd.f32 %v304_v33, %v265_v35 }
  0xed   :  { %v274_v37 = vmax.f32 %v273_v36, 0.0 }
  0xef   :  { %v275_v38 = vpack.c.bf16 %v274_v37, %v274_v37 }
  0xf1   :  { %276 = vst [vmem:[%s461_s4] sm:$0xf] %v275_v38 }

// kernel: svgg11_forward.17
= control target key start
LH: loop header
LB: loop body
LE: loop exit
PB: predicated region body
PF: predicated region fallthrough
CT: control target
= control target key end

     0   :  { %v604_v1 = vmov 0.0   ;;  %vm605_vm0 = vmmov 0   ;;  %s788_s0 = inlined_call_operand.vmem [shape: bf16[2,128], index: 0, kind: input, shape index: {}]   ;;  %s789_s1 = inlined_call_operand.vmem [shape: bf16[128,128], index: 1, kind: input, shape index: {}]   ;;  %s790_s2 = inlined_call_operand.vmem [shape: f32[1,128], index: 2, kind: input, shape index: {}]   ;;  %s791_s3 = inlined_call_operand.vmem [shape: f32[1,128], index: 3, kind: input, shape index: {}]   ;;  %s792_s4 = inlined_call_operand.vmem [shape: bf16[128,128], index: 4, kind: input, shape index: {}]   ;;  %s793_s5 = inlined_call_operand.vmem [shape: f32[1,128], index: 5, kind: input, shape index: {}]   ;;  %s794_s6 = inlined_call_operand.vmem [shape: f32[1,128], index: 6, kind: input, shape index: {}]   ;;  %s795_s7 = inlined_call_operand.vmem [shape: bf16[128,128], index: 7, kind: input, shape index: {}]   ;;  %s796_s8 = inlined_call_operand.vmem [shape: f32[1,128], index: 8, kind: input, shape index: {}]   ;;  %s797_s9 = inlined_call_operand.vmem [shape: f32[1,128], index: 9, kind: input, shape index: {}]   ;;  %s798_s10 = inlined_call_operand.hbm [shape: f32[2,128], index: 10, kind: output, shape index: {}]  }
   0x1   :  { %v554_v0 = vld [vmem:[%s789_s1 + $0x38] sm:$0xff]   ;;  %491 = vmatprep.subr.bf16.mxu0 %v604_v1  ;;  %511 = vmatprep.subr.bf16.mxu1 %v604_v1  ;;  %v555_v2 = vld [vmem:[%s789_s1 + $0x30] sm:$0xff]   ;;  %v556_v3 = vld [vmem:[%s789_s1 + $0x28] sm:$0xff]  }
   0x2   :  { %492 = vmatpush3.bf16.msra.mxu0 %v554_v0  ;;  %507 = vmatprep.mubr.msk.bf16.mxu0 %vm605_vm0, %v604_v1  ;;  %v562_v4 = vld [vmem:[%s792_s4 + $0x38] sm:$0xff]   ;;  %v557_v5 = vld [vmem:[%s789_s1 + $0x20] sm:$0xff]   ;;  %v563_v6 = vld [vmem:[%s792_s4 + $0x30] sm:$0xff]  }
   0x3   :  { %493 = vmatprep.subr.bf16.mxu0 %v604_v1  ;;  %527 = vmatprep.mubr.msk.bf16.mxu1 %vm605_vm0, %v604_v1  ;;  %v558_v7 = vld [vmem:[%s789_s1 + $0x18] sm:$0xff]   ;;  %v564_v8 = vld [vmem:[%s792_s4 + $0x28] sm:$0xff]   ;;  %v559_v9 = vld [vmem:[%s789_s1 + $0x10] sm:$0xff]  }
   0x4   :  { %512 = vmatpush3.bf16.msra.mxu1 %v562_v4  ;;  %v565_v10 = vld [vmem:[%s792_s4 + $0x20] sm:$0xff]  }
   0x5   :  { %513 = vmatprep.subr.bf16.mxu1 %v604_v1 }
   0x6   :  { %494 = vmatpush3.bf16.msra.mxu0 %v555_v2 }
   0x7   :  { %495 = vmatprep.subr.bf16.mxu0 %v604_v1 }
   0x8   :  { %514 = vmatpush3.bf16.msra.mxu1 %v563_v6 }
   0x9   :  { %515 = vmatprep.subr.bf16.mxu1 %v604_v1 }
   0xa   :  { %496 = vmatpush3.bf16.msra.mxu0 %v556_v3 }
   0xb   :  { %497 = vmatprep.subr.bf16.mxu0 %v604_v1 }
   0xc   :  { %516 = vmatpush3.bf16.msra.mxu1 %v564_v8 }
   0xd   :  { %517 = vmatprep.subr.bf16.mxu1 %v604_v1 }
   0xe   :  { %498 = vmatpush3.bf16.msra.mxu0 %v557_v5 }
   0xf   :  { %499 = vmatprep.subr.bf16.mxu0 %v604_v1 }
  0x12   :  { %500 = vmatpush3.bf16.msra.mxu0 %v558_v7 }
  0x13   :  { %501 = vmatprep.subr.bf16.mxu0 %v604_v1 }
  0x14   :  { %15 = vsyncpa [#allocation3], 0  ;;  %v560_v11 = vld [vmem:[%s789_s1 + $0x8] sm:$0xff]   ;;  %518 = vmatpush3.bf16.msra.mxu1 %v565_v10  ;;  %v566_v12 = vld [vmem:[%s792_s4 + $0x18] sm:$0xff]   ;;  %v402_v46 = vlaneseq  ;;  %vm406_vm2 = vcmask 1041408  }
  0x15   :  { %519 = vmatprep.subr.bf16.mxu1 %v604_v1  ;;  %v561_v13 = vld [vmem:[%s789_s1] sm:$0xff]   ;;  %v567_v14 = vld [vmem:[%s792_s4 + $0x10] sm:$0xff]   ;;  %v568_v16 = vld [vmem:[%s792_s4 + $0x8] sm:$0xff]  }
  0x16   :  { %502 = vmatpush3.bf16.msra.mxu0 %v559_v9  ;;  %v37_v15 = vld [vmem:[%s788_s0] sm:$0x1]  ;;  %v570_v18 = vld [vmem:[%s795_s7 + $0x38] sm:$0xff]   ;;  %v571_v19 = vld [vmem:[%s795_s7 + $0x30] sm:$0xff]   ;;  %v403_v48 = vand.u32 127, %v402_v46 }
  0x17   :  { %503 = vmatprep.subr.bf16.mxu0 %v604_v1  ;;  %v569_v17 = vld [vmem:[%s792_s4] sm:$0xff]   ;;  %v572_v20 = vld [vmem:[%s795_s7 + $0x28] sm:$0xff]   ;;  %v574_v22 = vld [vmem:[%s795_s7 + $0x18] sm:$0xff]  }
  0x18   :  { %520 = vmatpush3.bf16.msra.mxu1 %v566_v12  ;;  %v573_v21 = vld [vmem:[%s795_s7 + $0x20] sm:$0xff]   ;;  %v575_v23 = vld [vmem:[%s795_s7 + $0x10] sm:$0xff]   ;;  %v576_v34 = vld [vmem:[%s795_s7 + $0x8] sm:$0xff]   ;;  %vm404_vm1 = vcmp.lt.s32.totalorder %v403_v48, 10 }
  0x19   :  { %521 = vmatprep.subr.bf16.mxu1 %v604_v1  ;;  %v442_v24 = vld [vmem:[%s790_s2] ss:$0 sm:$0xff] }
  0x1a   :  { %504 = vmatpush3.bf16.msra.mxu0 %v560_v11  ;;  %v443_v26 = vld [vmem:[%s791_s3] ss:$0 sm:$0xff] }
  0x1b   :  { %505 = vmatprep.subr.bf16.mxu0 %v604_v1  ;;  %v577_v35 = vld [vmem:[%s795_s7] sm:$0xff]  }
  0x1c   :  { %522 = vmatpush3.bf16.msra.mxu1 %v567_v14  ;;  %v452_v36 = vld [vmem:[%s793_s5] ss:$0 sm:$0xff] }
  0x1d   :  { %523 = vmatprep.subr.bf16.mxu1 %v604_v1  ;;  %v453_v38 = vld [vmem:[%s794_s6] ss:$0 sm:$0xff]  ;;  %s606_s6 = smov [#allocation2]  }
  0x1e   :  { %506 = vmatpush3.bf16.msra.mxu0 %v561_v13  ;;  %v462_v47 = vld [vmem:[%s796_s8] ss:$0 sm:$0xff]  ;;  %s426_s8 = sshll.u32 %s606_s6, 4  ;;  %s427_s8 = int_to_ptr.vmem [resolvable:$true] %s426_s8 }
  0x1f   :  { %531 = vmatprep.subr.bf16.mxu0 %v604_v1  ;;  %v463_v50 = vld [vmem:[%s797_s9] ss:$0 sm:$0xff]  ;;  %s582_s9 = scalar_lea.vmem %s427_s8, 32  ;;  %p587_p1 = scmp.lt.s32.totalorder %s427_s8, %s427_s8 }
  0x20   :  { %524 = vmatpush3.bf16.msra.mxu1 %v568_v16  ;;  %p583_p0 = scmp.ne.s32.totalorder %s427_s8, %s582_s9  ;;  %p588_p2 = scmp.lt.s32.totalorder %s582_s9, %s582_s9 }
  0x21   :  { %508 = vmatmul.mubr.bf16.vlgmr.msra.gmra.mxu0 %v37_v15  ;;  %525 = vmatprep.subr.bf16.mxu1 %v604_v1 }
  0x22   :  { %547 = vmatprep.mubr.msk.bf16.mxu0 %vm605_vm0, %v604_v1  ;;  %532 = vmatpush3.bf16.msra.mxu0 %v570_v18  ;;  %p589_p3 = por %p588_p2, %p587_p1 }
  0x23   :  { %533 = vmatprep.subr.bf16.mxu0 %v604_v1 }
  0x24   :  { %526 = vmatpush3.bf16.msra.mxu1 %v569_v17  ;;  %p590_p4 = pnand %p589_p3, %p583_p0 }
  0x26   :  { %534 = vmatpush3.bf16.msra.mxu0 %v571_v19 }
  0x27   :  { %535 = vmatprep.subr.bf16.mxu0 %v604_v1 }
  0x2a   :  { %536 = vmatpush3.bf16.msra.mxu0 %v572_v20 }
  0x2b   :  { %537 = vmatprep.subr.bf16.mxu0 %v604_v1 }
  0x2e   :  { %538 = vmatpush3.bf16.msra.mxu0 %v573_v21 }
  0x2f   :  { %539 = vmatprep.subr.bf16.mxu0 %v604_v1 }
  0x32   :  { %540 = vmatpush3.bf16.msra.mxu0 %v574_v22 }
  0x33   :  { %541 = vmatprep.subr.bf16.mxu0 %v604_v1 }
  0x36   :  { %542 = vmatpush3.bf16.msra.mxu0 %v575_v23 }
  0x37   :  { %543 = vmatprep.subr.bf16.mxu0 %v604_v1 }
  0x3a   :  { %544 = vmatpush3.bf16.msra.mxu0 %v576_v34 }
  0x3b   :  { %545 = vmatprep.subr.bf16.mxu0 %v604_v1 }
  0x3e   :  { %546 = vmatpush3.bf16.msra.mxu0 %v577_v35 }
  0xe1   :  { %v136_v25 = vpop.f32.mrf.mxu0 }
  0xe2   :  { %v149_v27 = vmul.f32 %v442_v24, %v136_v25 }
  0xe3   :  { %v509_v28 = vpop.f32.mrf.mxu0 }
  0xe4   :  { %v157_v29 = vadd.f32 %v443_v26, %v149_v27 }
  0xe5   :  { %v139_v30 = vpop.f32.mrf.mxu0 }
  0xe6   :  { %v158_v31 = vmax.f32 %v157_v29, 0.0 }
  0xe7   :  { %v510_v32 = vpop.f32.mrf.mxu0 }
  0xe8   :  { %v159_v33 = vpack.c.bf16 %v158_v31, %v158_v31 }
  0xea   :  { %528 = vmatmul.mubr.bf16.vlgmr.msra.gmra.mxu1 %v159_v33 }
 0x1aa   :  { %v258_v37 = vpop.f32.mrf.mxu1 }
 0x1ab   :  { %v271_v39 = vmul.f32 %v452_v36, %v258_v37 }
 0x1ac   :  { %v529_v40 = vpop.f32.mrf.mxu1 }
 0x1ad   :  { %v279_v41 = vadd.f32 %v453_v38, %v271_v39 }
 0x1ae   :  { %v261_v42 = vpop.f32.mrf.mxu1 }
 0x1af   :  { %v280_v43 = vmax.f32 %v279_v41, 0.0 }
 0x1b0   :  { %v530_v44 = vpop.f32.mrf.mxu1 }
 0x1b1   :  { %v281_v45 = vpack.c.bf16 %v280_v43, %v280_v43 }
 0x1b3   :  { %548 = vmatmul.mubr.bf16.vlgmr.msra.gmra.mxu0 %v281_v45 }
 0x273   :  { %v380_v49 = vpop.f32.mrf.mxu0 }
 0x274   :  { %v393_v51 = vmul.f32 %v462_v47, %v380_v49 }
 0x275   :  { %v549_v52 = vpop.f32.mrf.mxu0 }
 0x276   :  { %v401_v53 = vadd.f32 %v463_v50, %v393_v51 }
 0x277   :  { %v383_v54 = vpop.f32.mrf.mxu0 }
 0x278   :  { %v405_v55 = vsel %vm404_vm1, %v401_v53, -1e+30 }
 0x279   :  { %v550_v56 = vpop.f32.mrf.mxu0  ;;  %v407_v57 = vsel %vm406_vm2, %v405_v55, -inf }
 0x27a   :  { %408 = vmax.xlane.f32.xlu0 %v407_v57 }
 0x303   :  { %v409_v58 = vpop.xlane.xlu0 %408 }
 0x304   :  { %v410_v59 = vsub.f32 %v405_v55, %v409_v58 }
 0x306   :  { %v411_v60 = vmul.f32 1.442695, %v410_v59 }
 0x308   :  { %578 = vpow2.f32 %v411_v60 }
 0x315   :  { %v579_v61 = vpop.eup %578 }
 0x316   :  { %v413_v62 = vsel %vm406_vm2, %v579_v61, 0.0 }
 0x317   :  { %414 = vadd.xlane.f32.xlu0 %v413_v62 }
 0x3a0   :  { %v415_v63 = vpop.xlane.xlu0 %414 }
 0x3a1   :  { %580 = vlog2.f32 %v415_v63 }
 0x3ae   :  { %v581_v0 = vpop.eup %580 }
 0x3af   :  { %v417_v1 = vmul.f32 0.6931472, %v581_v0 }
 0x3b1   :  { %v418_v2 = vsub.f32 %v410_v59, %v417_v1 }
 0x3b3   :  { %419 = vst [vmem:[#allocation2] sm:$0x3] %v418_v2 }
 0x3b4   :  { %593 = shalt.err (!%p590_p4)
}
 0x3b5   :  { %429 = dma.vmem_to_hbm [thread:$0]  %s427_s8, 32, %s798_s10, [#allocation3]  }
 0x3b6   :  { %602 = dma.done.wait [#allocation3], 32  }
 0x3b7   :  { %603 = vsyncadd [#allocation3], 4294967264 }
 0x3b8   :  { %433 = vsyncpa [#allocation3], 1 }

</bundles_post_ra>
